<compile_context>
chip_gen: v5e
topology: v5e:2x2
jax: 0.10.0
libtpu: 0.0.40
codegen_flags: <defaults>
</compile_context>

<pallas_src>
import math

import jax
import jax.numpy as jnp
from jax.experimental import pallas as pl
from jax.experimental.pallas import tpu as pltpu

CODE_SIZE = 20
IN_DIM = 784          # 28 * 28  (torch x.view(-1, 784))
HID_DIM = 400
HID_PAD = 512         # 4 * 128 — lane-dense hidden activations, full MXU passes
OUT_PAD = 896         # 7 * 128 — lane-dense decoder output store
ML_PAD = 128          # lane-dense fused [mu | logvar] output (first 40 cols real)


def _round_up(n, m):
    return (n + m - 1) // m * m


def _cdiv(a, b):
    return -(-a // b)


# ---------------------------------------------------------------------------
# Kernel
# ---------------------------------------------------------------------------
def rvae_kernel(
    x_ref, eps_ref,
    w1_ref, b1_ref,
    w2_ref, b2_ref,      # fused fc21 || fc22, padded to 128 output lanes
    w3_ref, b3_ref,
    w4_ref, b4_ref,
    mulv_ref, out_ref,
):
    # ---- encode ----
    x = x_ref[...].astype(jnp.bfloat16)                              # (BT, 784) cast in-kernel
    h1 = jnp.dot(x, w1_ref[...], preferred_element_type=jnp.float32) + b1_ref[...]
    h1 = jnp.maximum(h1, 0.0).astype(jnp.bfloat16)                   # (BT, 512) bf16 for MXU

    y = jnp.dot(h1, w2_ref[...], preferred_element_type=jnp.float32) + b2_ref[...]
    mu = y[:, :CODE_SIZE]                                            # (BT, 20) f32
    logvar = y[:, CODE_SIZE:2 * CODE_SIZE]                           # (BT, 20) f32

    # ---- reparameterize: z = mu + eps * exp(0.5 * logvar) ----
    std = jnp.exp(0.5 * logvar)
    z = (mu + eps_ref[...] * std).astype(jnp.bfloat16)               # (BT, 20)

    # ---- decode ----
    h3 = jnp.dot(z, w3_ref[...], preferred_element_type=jnp.float32) + b3_ref[...]
    h3 = jnp.maximum(h3, 0.0).astype(jnp.bfloat16)                   # (BT, 512)
    logits = jnp.dot(h3, w4_ref[...], preferred_element_type=jnp.float32) + b4_ref[...]

    # [mu | logvar | zeros] — 128-lane unmasked f32 store
    mulv_ref[...] = y
    # f32 sigmoid (v5e EUP has no bf16 path); bf16 store halves the biggest HBM stream
    out_ref[...] = jax.nn.sigmoid(logits).astype(jnp.bfloat16)


# ---------------------------------------------------------------------------
# Parameters
# ---------------------------------------------------------------------------
def init_params(key):
    """Deterministic init mimicking nn.Linear default (uniform +/- 1/sqrt(fan_in)).

    Weights are stored as (in_features, out_features); biases as (1, out_features).
    Kept in float32 (the "PyTorch" reference parameters).
    """
    def linear(key, fan_in, fan_out):
        kw, kb = jax.random.split(key)
        bound = 1.0 / math.sqrt(fan_in)
        w = jax.random.uniform(kw, (fan_in, fan_out), jnp.float32, -bound, bound)
        b = jax.random.uniform(kb, (1, fan_out), jnp.float32, -bound, bound)
        return w, b

    keys = jax.random.split(key, 5)
    w1, b1 = linear(keys[0], IN_DIM, HID_DIM)        # fc1
    w21, b21 = linear(keys[1], HID_DIM, CODE_SIZE)   # fc21
    w22, b22 = linear(keys[2], HID_DIM, CODE_SIZE)   # fc22
    w3, b3 = linear(keys[3], CODE_SIZE, HID_DIM)     # fc3
    w4, b4 = linear(keys[4], HID_DIM, IN_DIM)        # fc4
    # fc5 is defined in the PyTorch module but unused in forward(); omitted.
    return (w1, b1, w21, b21, w22, b22, w3, b3, w4, b4)


def pack_params(params):
    """One-time packing: bf16 weights, hidden 400->512 pad, fc21||fc22 fused and
    padded to 128 output lanes, decoder output padded 784->896."""
    w1, b1, w21, b21, w22, b22, w3, b3, w4, b4 = params

    w1p = jnp.zeros((IN_DIM, HID_PAD), jnp.bfloat16).at[:, :HID_DIM].set(
        w1.astype(jnp.bfloat16))
    b1p = jnp.zeros((1, HID_PAD), jnp.float32).at[:, :HID_DIM].set(b1)

    w2p = jnp.zeros((HID_PAD, ML_PAD), jnp.bfloat16)
    w2p = w2p.at[:HID_DIM, :CODE_SIZE].set(w21.astype(jnp.bfloat16))
    w2p = w2p.at[:HID_DIM, CODE_SIZE:2 * CODE_SIZE].set(w22.astype(jnp.bfloat16))
    b2p = jnp.zeros((1, ML_PAD), jnp.float32)
    b2p = b2p.at[:, :CODE_SIZE].set(b21).at[:, CODE_SIZE:2 * CODE_SIZE].set(b22)

    w3p = jnp.zeros((CODE_SIZE, HID_PAD), jnp.bfloat16).at[:, :HID_DIM].set(
        w3.astype(jnp.bfloat16))
    b3p = jnp.zeros((1, HID_PAD), jnp.float32).at[:, :HID_DIM].set(b3)

    w4p = jnp.zeros((HID_PAD, OUT_PAD), jnp.bfloat16).at[:HID_DIM, :IN_DIM].set(
        w4.astype(jnp.bfloat16))
    b4p = jnp.zeros((1, OUT_PAD), jnp.float32).at[:, :IN_DIM].set(b4)

    return (w1p, b1p, w2p, b2p, w3p, b3p, w4p, b4p)


# ---------------------------------------------------------------------------
# Tiling policy
# ---------------------------------------------------------------------------
def _tile_policy():
    """Return (max_batch_tile, min_tiles_for_large_batch) for this device generation."""
    try:
        kind = jax.devices()[0].device_kind.lower()
    except Exception:  # pragma: no cover
        kind = ""
    if "v5" in kind or "v6" in kind:
        # Single TensorCore per chip: big tiles amortize the ~0.35us/step overhead.
        return 512, 1
    # v7x (2 TensorCores) / unknown: keep tiles <= 256 and ensure >= 2 tiles so the
    # "parallel" batch axis can split across both cores.
    return 256, 2


def _choose_batch_tile(B, cap, min_tiles):
    """Smallest tile count (>= min_tiles when B >= 32) whose 16-row-rounded tile
    fits under `cap`; minimizes dead padded rows."""
    want = min_tiles if B >= 32 else 1
    n = want
    while True:
        bt = _round_up(_cdiv(B, n), 16)
        if bt <= cap:
            break
        n += 1
    n_tiles = max(_cdiv(B, bt), want)
    return bt, n_tiles


# ---------------------------------------------------------------------------
# Forward wrapper
# ---------------------------------------------------------------------------
def rvae_forward(x_nchw, eps, packed_params):
    """x_nchw: (B, 1, 28, 28) float32; eps: (B, CODE_SIZE) float32.

    Returns (mu, logvar, mu_out) with mu/logvar f32 and mu_out bf16."""
    B = x_nchw.shape[0]
    x2d = x_nchw.reshape(B, IN_DIM).astype(jnp.float32)   # matches torch x.view(-1, 784)

    cap, min_tiles = _tile_policy()
    BT, n_tiles = _choose_batch_tile(B, cap, min_tiles)
    B_pad = BT * n_tiles

    if B_pad != B:
        xp = jnp.zeros((B_pad, IN_DIM), jnp.float32).at[:B].set(x2d)
        epsp = jnp.zeros((B_pad, CODE_SIZE), jnp.float32).at[:B].set(eps)
    else:
        xp = x2d
        epsp = eps.astype(jnp.float32)

    w1, b1, w2, b2, w3, b3, w4, b4 = packed_params

    def tile_spec(cols):
        # batch-tiled activation / output (double-buffered by the pipeline)
        return pl.BlockSpec((BT, cols), lambda i: (i, 0))

    def resident_spec(arr):
        # whole array as one block with a constant index -> stays VMEM-resident
        return pl.BlockSpec(arr.shape, lambda i: (0, 0))

    in_specs = [
        tile_spec(IN_DIM),                 # x  (f32, cast to bf16 in-kernel)
        tile_spec(CODE_SIZE),              # eps
        resident_spec(w1), resident_spec(b1),
        resident_spec(w2), resident_spec(b2),
        resident_spec(w3), resident_spec(b3),
        resident_spec(w4), resident_spec(b4),
    ]
    out_specs = (tile_spec(ML_PAD), tile_spec(OUT_PAD))
    out_shape = (
        jax.ShapeDtypeStruct((B_pad, ML_PAD), jnp.float32),    # [mu | logvar | 0...]
        jax.ShapeDtypeStruct((B_pad, OUT_PAD), jnp.bfloat16),  # padded mu_out
    )

    flops = 2 * B_pad * (IN_DIM * HID_PAD + HID_PAD * ML_PAD
                         + CODE_SIZE * HID_PAD + HID_PAD * OUT_PAD)
    weight_bytes = sum(int(a.size) * a.dtype.itemsize for a in packed_params)
    act_bytes = (B_pad * IN_DIM * 4 + B_pad * CODE_SIZE * 4
                 + B_pad * ML_PAD * 4 + B_pad * OUT_PAD * 2)
    cost = pl.CostEstimate(
        flops=flops,
        transcendentals=B_pad * (CODE_SIZE + OUT_PAD),
        bytes_accessed=int(weight_bytes + act_bytes),
    )

    mulv, out_p = pl.pallas_call(
        rvae_kernel,
        grid=(n_tiles,),
        in_specs=in_specs,
        out_specs=out_specs,
        out_shape=out_shape,
        compiler_params=pltpu.CompilerParams(
            dimension_semantics=("parallel",),   # batch tiles split across TCs (v7x)
            vmem_limit_bytes=32 << 20,
        ),
        cost_estimate=cost,
    )(xp, epsp, w1, b1, w2, b2, w3, b3, w4, b4)

    mu = mulv[:B, :CODE_SIZE]
    logvar = mulv[:B, CODE_SIZE:2 * CODE_SIZE]
    mu_out = out_p[:B, :IN_DIM]                  # bf16
    return mu, logvar, mu_out


# ---------------------------------------------------------------------------
# Smoke test
# ---------------------------------------------------------------------------
if __name__ == "__main__":
    key = jax.random.PRNGKey(0)
    k_params, k_x, k_eps = jax.random.split(key, 3)

    B = 8
    params = init_params(k_params)
    packed = pack_params(params)
    x = jax.random.normal(k_x, (B, 1, 28, 28), jnp.float32)       # NCHW input
    eps = jax.random.normal(k_eps, (B, CODE_SIZE), jnp.float32)   # reparam noise

    fwd = jax.jit(lambda xx, ee: rvae_forward(xx, ee, packed))
    mu, logvar, mu_out = fwd(x, eps)
    jax.block_until_ready((mu, logvar, mu_out))

    # pure-JAX fp32 reference (kernel uses bf16 MXU inputs / bf16 output store
    # -> loosened tolerance)
    x2d = x.reshape(B, IN_DIM)
    w1, b1, w21, b21, w22, b22, w3, b3, w4, b4 = params
    h1 = jnp.maximum(x2d @ w1 + b1, 0.0)
    mu_r = h1 @ w21 + b21
    lv_r = h1 @ w22 + b22
    z_r = mu_r + eps * jnp.exp(0.5 * lv_r)
    h3 = jnp.maximum(z_r @ w3 + b3, 0.0)
    out_r = jax.nn.sigmoid(h3 @ w4 + b4)

    assert mu.shape == (B, CODE_SIZE) and logvar.shape == (B, CODE_SIZE)
    assert mu_out.shape == (B, IN_DIM)
    assert jnp.allclose(mu, mu_r, atol=2e-2, rtol=2e-2)
    assert jnp.allclose(logvar, lv_r, atol=2e-2, rtol=2e-2)
    assert jnp.allclose(mu_out.astype(jnp.float32), out_r, atol=2e-2, rtol=2e-2)

    print("KERNEL_OK")
</pallas_src>

<mosaic_0001>
module attributes {stable_mosaic.version = 11 : i64} {
  func.func @rvae_kernel(%arg0: i32, %arg1: memref<16x784xf32, #tpu.memory_space<vmem>>, %arg2: memref<16x20xf32, #tpu.memory_space<vmem>>, %arg3: memref<784x512xbf16, #tpu.memory_space<vmem>>, %arg4: memref<1x512xf32, #tpu.memory_space<vmem>>, %arg5: memref<512x128xbf16, #tpu.memory_space<vmem>>, %arg6: memref<1x128xf32, #tpu.memory_space<vmem>>, %arg7: memref<20x512xbf16, #tpu.memory_space<vmem>>, %arg8: memref<1x512xf32, #tpu.memory_space<vmem>>, %arg9: memref<512x896xbf16, #tpu.memory_space<vmem>>, %arg10: memref<1x896xf32, #tpu.memory_space<vmem>>, %arg11: memref<16x128xf32, #tpu.memory_space<vmem>>, %arg12: memref<16x896xbf16, #tpu.memory_space<vmem>>) attributes {dimension_semantics = [#tpu.dimension_semantics<parallel>], iteration_bounds = array<i64: 1>, scalar_prefetch = 0 : i64, scratch_operands = 0 : i64, tpu.core_type = #tpu.core_type<tc>, window_params = [{transform_indices = @transform_0, window_bounds = array<i64: 16, 784>}, {transform_indices = @transform_1, window_bounds = array<i64: 16, 20>}, {pipeline_mode = #tpu.pipeline_mode<synchronous>, transform_indices = @transform_2, window_bounds = array<i64: 784, 512>}, {pipeline_mode = #tpu.pipeline_mode<synchronous>, transform_indices = @transform_3, window_bounds = array<i64: 1, 512>}, {pipeline_mode = #tpu.pipeline_mode<synchronous>, transform_indices = @transform_4, window_bounds = array<i64: 512, 128>}, {pipeline_mode = #tpu.pipeline_mode<synchronous>, transform_indices = @transform_5, window_bounds = array<i64: 1, 128>}, {pipeline_mode = #tpu.pipeline_mode<synchronous>, transform_indices = @transform_6, window_bounds = array<i64: 20, 512>}, {pipeline_mode = #tpu.pipeline_mode<synchronous>, transform_indices = @transform_7, window_bounds = array<i64: 1, 512>}, {pipeline_mode = #tpu.pipeline_mode<synchronous>, transform_indices = @transform_8, window_bounds = array<i64: 512, 896>}, {pipeline_mode = #tpu.pipeline_mode<synchronous>, transform_indices = @transform_9, window_bounds = array<i64: 1, 896>}, {transform_indices = @transform_10, window_bounds = array<i64: 16, 128>}, {transform_indices = @transform_11, window_bounds = array<i64: 16, 896>}]} {
    %c0 = arith.constant 0 : index
    %c0_0 = arith.constant 0 : index
    %0 = vector.load %arg1[%c0, %c0_0] : memref<16x784xf32, #tpu.memory_space<vmem>>, vector<16x784xf32>
    %1 = arith.truncf %0 : vector<16x784xf32> to vector<16x784xbf16>
    %c0_1 = arith.constant 0 : index
    %c0_2 = arith.constant 0 : index
    %2 = vector.load %arg3[%c0_1, %c0_2] : memref<784x512xbf16, #tpu.memory_space<vmem>>, vector<784x512xbf16>
    %cst = arith.constant dense<0.000000e+00> : vector<16x512xf32>
    %3 = tpu.matmul %1, %2, %cst {dimension_numbers = #tpu.dot_dimension_numbers<[1], [0], [0], [1], [0, 0, 1, 1], [], []>} : vector<16x784xbf16>, vector<784x512xbf16>, vector<16x512xf32> -> vector<16x512xf32>
    %c0_3 = arith.constant 0 : index
    %c0_4 = arith.constant 0 : index
    %4 = vector.load %arg4[%c0_3, %c0_4] : memref<1x512xf32, #tpu.memory_space<vmem>>, vector<1x512xf32>
    %5 = vector.broadcast %4 : vector<1x512xf32> to vector<16x512xf32>
    %6 = arith.addf %3, %5 : vector<16x512xf32>
    %cst_5 = arith.constant 0.000000e+00 : f32
    %7 = vector.broadcast %cst_5 : f32 to vector<16x512xf32>
    %8 = arith.maximumf %6, %7 : vector<16x512xf32>
    %9 = arith.truncf %8 : vector<16x512xf32> to vector<16x512xbf16>
    %c0_6 = arith.constant 0 : index
    %c0_7 = arith.constant 0 : index
    %10 = vector.load %arg5[%c0_6, %c0_7] : memref<512x128xbf16, #tpu.memory_space<vmem>>, vector<512x128xbf16>
    %cst_8 = arith.constant dense<0.000000e+00> : vector<16x128xf32>
    %11 = tpu.matmul %9, %10, %cst_8 {dimension_numbers = #tpu.dot_dimension_numbers<[1], [0], [0], [1], [0, 0, 1, 1], [], []>} : vector<16x512xbf16>, vector<512x128xbf16>, vector<16x128xf32> -> vector<16x128xf32>
    %c0_9 = arith.constant 0 : index
    %c0_10 = arith.constant 0 : index
    %12 = vector.load %arg6[%c0_9, %c0_10] : memref<1x128xf32, #tpu.memory_space<vmem>>, vector<1x128xf32>
    %13 = vector.broadcast %12 : vector<1x128xf32> to vector<16x128xf32>
    %14 = arith.addf %11, %13 : vector<16x128xf32>
    %15 = vector.extract_strided_slice %14 {offsets = [0, 0], sizes = [16, 20], strides = [1, 1]} : vector<16x128xf32> to vector<16x20xf32>
    %16 = vector.extract_strided_slice %14 {offsets = [0, 20], sizes = [16, 20], strides = [1, 1]} : vector<16x128xf32> to vector<16x20xf32>
    %cst_11 = arith.constant 5.000000e-01 : f32
    %17 = vector.broadcast %cst_11 : f32 to vector<16x20xf32>
    %18 = arith.mulf %17, %16 : vector<16x20xf32>
    %19 = math.exp %18 : vector<16x20xf32>
    %c0_12 = arith.constant 0 : index
    %c0_13 = arith.constant 0 : index
    %20 = vector.load %arg2[%c0_12, %c0_13] : memref<16x20xf32, #tpu.memory_space<vmem>>, vector<16x20xf32>
    %21 = arith.mulf %20, %19 : vector<16x20xf32>
    %22 = arith.addf %15, %21 : vector<16x20xf32>
    %23 = arith.truncf %22 : vector<16x20xf32> to vector<16x20xbf16>
    %c0_14 = arith.constant 0 : index
    %c0_15 = arith.constant 0 : index
    %24 = vector.load %arg7[%c0_14, %c0_15] : memref<20x512xbf16, #tpu.memory_space<vmem>>, vector<20x512xbf16>
    %cst_16 = arith.constant dense<0.000000e+00> : vector<16x512xf32>
    %25 = tpu.matmul %23, %24, %cst_16 {dimension_numbers = #tpu.dot_dimension_numbers<[1], [0], [0], [1], [0, 0, 1, 1], [], []>} : vector<16x20xbf16>, vector<20x512xbf16>, vector<16x512xf32> -> vector<16x512xf32>
    %c0_17 = arith.constant 0 : index
    %c0_18 = arith.constant 0 : index
    %26 = vector.load %arg8[%c0_17, %c0_18] : memref<1x512xf32, #tpu.memory_space<vmem>>, vector<1x512xf32>
    %27 = vector.broadcast %26 : vector<1x512xf32> to vector<16x512xf32>
    %28 = arith.addf %25, %27 : vector<16x512xf32>
    %cst_19 = arith.constant 0.000000e+00 : f32
    %29 = vector.broadcast %cst_19 : f32 to vector<16x512xf32>
    %30 = arith.maximumf %28, %29 : vector<16x512xf32>
    %31 = arith.truncf %30 : vector<16x512xf32> to vector<16x512xbf16>
    %c0_20 = arith.constant 0 : index
    %c0_21 = arith.constant 0 : index
    %32 = vector.load %arg9[%c0_20, %c0_21] : memref<512x896xbf16, #tpu.memory_space<vmem>>, vector<512x896xbf16>
    %cst_22 = arith.constant dense<0.000000e+00> : vector<16x896xf32>
    %33 = tpu.matmul %31, %32, %cst_22 {dimension_numbers = #tpu.dot_dimension_numbers<[1], [0], [0], [1], [0, 0, 1, 1], [], []>} : vector<16x512xbf16>, vector<512x896xbf16>, vector<16x896xf32> -> vector<16x896xf32>
    %c0_23 = arith.constant 0 : index
    %c0_24 = arith.constant 0 : index
    %34 = vector.load %arg10[%c0_23, %c0_24] : memref<1x896xf32, #tpu.memory_space<vmem>>, vector<1x896xf32>
    %35 = vector.broadcast %34 : vector<1x896xf32> to vector<16x896xf32>
    %36 = arith.addf %33, %35 : vector<16x896xf32>
    %c0_25 = arith.constant 0 : index
    %c0_26 = arith.constant 0 : index
    %37 = vector.load %arg11[%c0_25, %c0_26] : memref<16x128xf32, #tpu.memory_space<vmem>>, vector<16x128xf32>
    tpu.vector_store %arg11[%c0_25, %c0_26], %14 {strides = array<i32>} : memref<16x128xf32, #tpu.memory_space<vmem>>, vector<16x128xf32>,
    %38 = arith.negf %36 : vector<16x896xf32>
    %39 = math.exp %38 : vector<16x896xf32>
    %cst_27 = arith.constant 1.000000e+00 : f32
    %40 = vector.broadcast %cst_27 : f32 to vector<16x896xf32>
    %41 = arith.addf %40, %39 : vector<16x896xf32>
    %42 = arith.divf %40, %41 : vector<16x896xf32>
    %43 = arith.truncf %42 : vector<16x896xf32> to vector<16x896xbf16>
    %c0_28 = arith.constant 0 : index
    %c0_29 = arith.constant 0 : index
    %44 = vector.load %arg12[%c0_28, %c0_29] : memref<16x896xbf16, #tpu.memory_space<vmem>>, vector<16x896xbf16>
    tpu.vector_store %arg12[%c0_28, %c0_29], %43 {strides = array<i32>} : memref<16x896xbf16, #tpu.memory_space<vmem>>, vector<16x896xbf16>,
    return
  }
  func.func @transform_0(%arg0: i32) -> (i32, i32) {
    %c0_i32 = arith.constant 0 : i32
    %c0_i32_0 = arith.constant 0 : i32
    return %arg0, %c0_i32 : i32, i32
  }
  func.func @transform_1(%arg0: i32) -> (i32, i32) {
    %c0_i32 = arith.constant 0 : i32
    %c0_i32_0 = arith.constant 0 : i32
    return %arg0, %c0_i32 : i32, i32
  }
  func.func @transform_2(%arg0: i32) -> (i32, i32) {
    %c0_i32 = arith.constant 0 : i32
    %c0_i32_0 = arith.constant 0 : i32
    %c0_i32_1 = arith.constant 0 : i32
    return %c0_i32, %c0_i32_0 : i32, i32
  }
  func.func @transform_3(%arg0: i32) -> (i32, i32) {
    %c0_i32 = arith.constant 0 : i32
    %c0_i32_0 = arith.constant 0 : i32
    %c0_i32_1 = arith.constant 0 : i32
    return %c0_i32, %c0_i32_0 : i32, i32
  }
  func.func @transform_4(%arg0: i32) -> (i32, i32) {
    %c0_i32 = arith.constant 0 : i32
    %c0_i32_0 = arith.constant 0 : i32
    %c0_i32_1 = arith.constant 0 : i32
    return %c0_i32, %c0_i32_0 : i32, i32
  }
  func.func @transform_5(%arg0: i32) -> (i32, i32) {
    %c0_i32 = arith.constant 0 : i32
    %c0_i32_0 = arith.constant 0 : i32
    %c0_i32_1 = arith.constant 0 : i32
    return %c0_i32, %c0_i32_0 : i32, i32
  }
  func.func @transform_6(%arg0: i32) -> (i32, i32) {
    %c0_i32 = arith.constant 0 : i32
    %c0_i32_0 = arith.constant 0 : i32
    %c0_i32_1 = arith.constant 0 : i32
    return %c0_i32, %c0_i32_0 : i32, i32
  }
  func.func @transform_7(%arg0: i32) -> (i32, i32) {
    %c0_i32 = arith.constant 0 : i32
    %c0_i32_0 = arith.constant 0 : i32
    %c0_i32_1 = arith.constant 0 : i32
    return %c0_i32, %c0_i32_0 : i32, i32
  }
  func.func @transform_8(%arg0: i32) -> (i32, i32) {
    %c0_i32 = arith.constant 0 : i32
    %c0_i32_0 = arith.constant 0 : i32
    %c0_i32_1 = arith.constant 0 : i32
    return %c0_i32, %c0_i32_0 : i32, i32
  }
  func.func @transform_9(%arg0: i32) -> (i32, i32) {
    %c0_i32 = arith.constant 0 : i32
    %c0_i32_0 = arith.constant 0 : i32
    %c0_i32_1 = arith.constant 0 : i32
    return %c0_i32, %c0_i32_0 : i32, i32
  }
  func.func @transform_10(%arg0: i32) -> (i32, i32) {
    %c0_i32 = arith.constant 0 : i32
    %c0_i32_0 = arith.constant 0 : i32
    return %arg0, %c0_i32 : i32, i32
  }
  func.func @transform_11(%arg0: i32) -> (i32, i32) {
    %c0_i32 = arith.constant 0 : i32
    %c0_i32_0 = arith.constant 0 : i32
    return %arg0, %c0_i32 : i32, i32
  }
}

</mosaic_0001>

<bundles_post_ra>
// kernel: _lambda_.1
= control target key start
LH: loop header
LB: loop body
LE: loop exit
PB: predicated region body
PF: predicated region fallthrough
CT: control target
= control target key end

     0   :  { %17 = vsyncpa [#allocation3], 0  ;;  %s7192_s0 = inlined_call_operand.vmem [shape: f32[16,784], index: 0, kind: input, shape index: {}]   ;;  %s7193_s1 = inlined_call_operand.vmem [shape: f32[16,20], index: 1, kind: input, shape index: {}]   ;;  %s7194_s2 = inlined_call_operand.hbm [shape: bf16[784,512], index: 2, kind: input, shape index: {}]   ;;  %s7195_s3 = inlined_call_operand.vmem [shape: f32[1,512], index: 3, kind: input, shape index: {}]   ;;  %s7196_s4 = inlined_call_operand.vmem [shape: bf16[512,128], index: 4, kind: input, shape index: {}]   ;;  %s7197_s5 = inlined_call_operand.vmem [shape: f32[1,128], index: 5, kind: input, shape index: {}]   ;;  %s7198_s6 = inlined_call_operand.vmem [shape: bf16[20,512], index: 6, kind: input, shape index: {}]   ;;  %s7199_s7 = inlined_call_operand.vmem [shape: f32[1,512], index: 7, kind: input, shape index: {}]   ;;  %s7200_s8 = inlined_call_operand.hbm [shape: bf16[512,896], index: 8, kind: input, shape index: {}]   ;;  %s7201_s9 = inlined_call_operand.vmem [shape: f32[1,896], index: 9, kind: input, shape index: {}]   ;;  %s7202_s10 = inlined_call_operand.vmem [shape: f32[16,128], index: 10, kind: output, shape index: {0}]   ;;  %s7203_s11 = inlined_call_operand.vmem [shape: bf16[16,896], index: 11, kind: output, shape index: {1}]  }
   0x1   :  { %s27_s19 = sshll.u32 %s7194_s2, 4  ;;  %s28_s19 = int_to_ptr.hbm [resolvable:$true] %s27_s19 }
   0x2   :  { %18 = vsyncpa [#allocation5], 0  ;;  %s6685_s20 = smov [#allocation2]   ;;  %s50_s24 = sshll.u32 %s7200_s8, 4  ;;  %s51_s24 = int_to_ptr.hbm [resolvable:$true] %s50_s24 }
   0x3   :  { %s29_s21 = sshll.u32 %s6685_s20, 4  ;;  %s6686_s25 = smov 256   ;;  %s30_s21 = int_to_ptr.vmem [resolvable:$true] %s29_s21 }
   0x4   :  { %s6687_s26 = smov 16   ;;  %s6688_s27 = smov [#allocation4]  }
   0x5   :  { %35 = dma.hbm_to_vmem [thread:$0]  %s28_s19, 25088, %s30_s21, [#allocation3], %s6686_s25, %s6686_s25, %s6687_s26  }
   0x6   :  { %s52_s28 = sshll.u32 %s6688_s27, 4  ;;  %s6689_s29 = smov 448   ;;  %s53_s28 = int_to_ptr.vmem [resolvable:$true] %s52_s28 }
   0x7   :  { %s6690_s30 = smov 28  }
   0x8   :  { %58 = dma.hbm_to_vmem [thread:$0]  %s51_s24, 28672, %s53_s28, [#allocation5], %s6689_s29, %s6689_s29, %s6690_s30  }
   0x9   :  { %6681 = dma.done.wait [#allocation3], 25088  }
   0xa   :  { %6682 = vsyncadd [#allocation3], 4294942208 }
   0xb   :  { %6683 = dma.done.wait [#allocation5], 28672  }
   0xc   :  { %6684 = vsyncadd [#allocation5], 4294938624  ;;  %v4377_v0 = vld [vmem:[#allocation2 + $0xe0] sm:$0xf]  ;;  %v6139_v1 = vld [vmem:[#allocation2 + $0xec] sm:$0xf0] }
   0xd   :  { %v4505_v2 = vld [vmem:[#allocation2 + $0x1e0] sm:$0xf]  ;;  %v4378_v3 = vor.u32 %v6139_v1, %v4377_v0  ;;  %v6171_v4 = vld [vmem:[#allocation2 + $0x1ec] sm:$0xf0]  ;;  %vm1277_vm0 = vcmask 130048   ;;  %s6691_s17 = smov 108  }
   0xe   :  { %v4633_v5 = vld [vmem:[#allocation2 + $0x2e0] sm:$0xf]  ;;  %v6203_v6 = vld [vmem:[#allocation2 + $0x2ec] sm:$0xf0]  ;;  %v4506_v7 = vor.u32 %v6171_v4, %v4505_v2  ;;  %vm2072_vm1 = vcmask 1041408   ;;  %vm2068_vm2 = vcmask 162816  }
   0xf   :  { %v4634_v8 = vor.u32 %v6203_v6, %v4633_v5  ;;  %v4761_v9 = vld [vmem:[#allocation2 + $0x3e0] sm:$0xf]  ;;  %v6235_v10 = vld [vmem:[#allocation2 + $0x3ec] sm:$0xf0]  ;;  %1281 = vmatpush.bf16.msra.mxu0 %v4378_v3 }
  0x10   :  { %v4361_v11 = vld [vmem:[#allocation2 + $0xc0] sm:$0xf]  ;;  %v4762_v12 = vor.u32 %v6235_v10, %v4761_v9  ;;  %v6135_v13 = vld [vmem:[#allocation2 + $0xcc] sm:$0xf0]  ;;  %1295 = vmatpush.bf16.msra.mxu1 %v4506_v7 }
  0x11   :  { %v4489_v14 = vld [vmem:[#allocation2 + $0x1c0] sm:$0xf]  ;;  %v6167_v15 = vld [vmem:[#allocation2 + $0x1cc] sm:$0xf0]  ;;  %1309 = vmatpush.bf16.msra.mxu2 %v4634_v8  ;;  %v4362_v16 = vor.u32 %v6135_v13, %v4361_v11 }
  0x12   :  { %v4490_v17 = vor.u32 %v6167_v15, %v4489_v14  ;;  %v4617_v18 = vld [vmem:[#allocation2 + $0x2c0] sm:$0xf]  ;;  %v6199_v19 = vld [vmem:[#allocation2 + $0x2cc] sm:$0xf0]  ;;  %1323 = vmatpush.bf16.msra.mxu3 %v4762_v12 }
  0x13   :  { %v4745_v20 = vld [vmem:[#allocation2 + $0x3c0] sm:$0xf]  ;;  %v4618_v21 = vor.u32 %v6199_v19, %v4617_v18  ;;  %v6231_v22 = vld [vmem:[#allocation2 + $0x3cc] sm:$0xf0]  ;;  %1282 = vmatpush.bf16.msra.mxu0 %v4362_v16 }
  0x14   :  { %v4345_v23 = vld [vmem:[#allocation2 + $0xa0] sm:$0xf]  ;;  %v6131_v24 = vld [vmem:[#allocation2 + $0xac] sm:$0xf0]  ;;  %v4746_v25 = vor.u32 %v6231_v22, %v4745_v20  ;;  %1296 = vmatpush.bf16.msra.mxu1 %v4490_v17 }
  0x15   :  { %v4473_v26 = vld [vmem:[#allocation2 + $0x1a0] sm:$0xf]  ;;  %v6163_v27 = vld [vmem:[#allocation2 + $0x1ac] sm:$0xf0]  ;;  %v4346_v29 = vor.u32 %v6131_v24, %v4345_v23  ;;  %1310 = vmatpush.bf16.msra.mxu2 %v4618_v21 }
  0x16   :  { %v4601_v28 = vld [vmem:[#allocation2 + $0x2a0] sm:$0xf]  ;;  %v6195_v30 = vld [vmem:[#allocation2 + $0x2ac] sm:$0xf0]  ;;  %v4474_v33 = vor.u32 %v6163_v27, %v4473_v26  ;;  %1324 = vmatpush.bf16.msra.mxu3 %v4746_v25 }
  0x17   :  { %v4729_v31 = vld [vmem:[#allocation2 + $0x3a0] sm:$0xf]  ;;  %v6227_v32 = vld [vmem:[#allocation2 + $0x3ac] sm:$0xf0]  ;;  %v4602_v34 = vor.u32 %v6195_v30, %v4601_v28  ;;  %1283 = vmatpush.bf16.msra.mxu0 %v4346_v29 }
  0x18   :  { %v4329_v35 = vld [vmem:[#allocation2 + $0x80] sm:$0xf]  ;;  %v6127_v36 = vld [vmem:[#allocation2 + $0x8c] sm:$0xf0]  ;;  %v4730_v38 = vor.u32 %v6227_v32, %v4729_v31  ;;  %1297 = vmatpush.bf16.msra.mxu1 %v4474_v33  ;;  %v6137_v32 = vld [vmem:[#allocation2 + $0xe4] sm:$0xf] }
  0x19   :  { %v4457_v37 = vld [vmem:[#allocation2 + $0x180] sm:$0xf]  ;;  %v6159_v39 = vld [vmem:[#allocation2 + $0x18c] sm:$0xf0]  ;;  %v4330_v44 = vor.u32 %v6127_v36, %v4329_v35  ;;  %1311 = vmatpush.bf16.msra.mxu2 %v4602_v34  ;;  %v4379_v33 = vld [vmem:[#allocation2 + $0xf0] sm:$0xf0] }
  0x1a   :  { %v4585_v40 = vld [vmem:[#allocation2 + $0x280] sm:$0xf]  ;;  %v6191_v41 = vld [vmem:[#allocation2 + $0x28c] sm:$0xf0]  ;;  %v4458_v45 = vor.u32 %v6159_v39, %v4457_v37  ;;  %1325 = vmatpush.bf16.msra.mxu3 %v4730_v38  ;;  %v79_v36 = vld [vmem:[%s7192_s0 + $0x48] sm:$0xff] }
  0x1b   :  { %v4713_v42 = vld [vmem:[#allocation2 + $0x380] sm:$0xf]  ;;  %v6223_v43 = vld [vmem:[#allocation2 + $0x38c] sm:$0xf0]  ;;  %v4586_v46 = vor.u32 %v6191_v41, %v4585_v40  ;;  %1284 = vmatpush.bf16.msra.mxu0 %v4330_v44  ;;  %v6169_v41 = vld [vmem:[#allocation2 + $0x1e4] sm:$0xf] }
  0x1c   :  { %v4313_v47 = vld [vmem:[#allocation2 + $0x60] sm:$0xf]  ;;  %v6123_v48 = vld [vmem:[#allocation2 + $0x6c] sm:$0xf0]  ;;  %v4714_v50 = vor.u32 %v6223_v43, %v4713_v42  ;;  %1298 = vmatpush.bf16.msra.mxu1 %v4458_v45  ;;  %v77_v43 = vld [vmem:[%s7192_s0 + $0x38] sm:$0xff] }
  0x1d   :  { %v4441_v49 = vld [vmem:[#allocation2 + $0x160] sm:$0xf]  ;;  %v6155_v51 = vld [vmem:[#allocation2 + $0x16c] sm:$0xf0]  ;;  %v4314_v56 = vor.u32 %v6123_v48, %v4313_v47  ;;  %1312 = vmatpush.bf16.msra.mxu2 %v4586_v46  ;;  %v4507_v46 = vld [vmem:[#allocation2 + $0x1f0] sm:$0xf0] }
  0x1e   :  { %v4569_v52 = vld [vmem:[#allocation2 + $0x260] sm:$0xf]  ;;  %v6187_v53 = vld [vmem:[#allocation2 + $0x26c] sm:$0xf0]  ;;  %v4442_v57 = vor.u32 %v6155_v51, %v4441_v49  ;;  %1326 = vmatpush.bf16.msra.mxu3 %v4714_v50  ;;  %v73_v47 = vld [vmem:[%s7192_s0 + $0x18] sm:$0xff]  ;;  %v4382_v50 = vor.u32 %v6137_v32, %v4379_v33 }
  0x1f   :  { %v4697_v54 = vld [vmem:[#allocation2 + $0x360] sm:$0xf]  ;;  %v6219_v55 = vld [vmem:[#allocation2 + $0x36c] sm:$0xf0]  ;;  %v4570_v58 = vor.u32 %v6187_v53, %v4569_v52  ;;  %1285 = vmatpush.bf16.msra.mxu0 %v4314_v56 }
  0x20   :  { %v4297_v59 = vld [vmem:[#allocation2 + $0x40] sm:$0xf]  ;;  %v6119_v60 = vld [vmem:[#allocation2 + $0x4c] sm:$0xf0]  ;;  %v4698_v62 = vor.u32 %v6219_v55, %v4697_v54  ;;  %1299 = vmatpush.bf16.msra.mxu1 %v4442_v57  ;;  %v6133_v57 = vld [vmem:[#allocation2 + $0xc4] sm:$0xf] }
  0x21   :  { %v4425_v61 = vld [vmem:[#allocation2 + $0x140] sm:$0xf]  ;;  %v6151_v63 = vld [vmem:[#allocation2 + $0x14c] sm:$0xf0]  ;;  %v4298_v4 = vor.u32 %v6119_v60, %v4297_v59  ;;  %1313 = vmatpush.bf16.msra.mxu2 %v4570_v58  ;;  %v4363_v58 = vld [vmem:[#allocation2 + $0xd0] sm:$0xf0] }
  0x22   :  { %v4553_v0 = vld [vmem:[#allocation2 + $0x240] sm:$0xf]  ;;  %v6183_v1 = vld [vmem:[#allocation2 + $0x24c] sm:$0xf0]  ;;  %v4426_v6 = vor.u32 %v6151_v63, %v4425_v61  ;;  %1327 = vmatpush.bf16.msra.mxu3 %v4698_v62  ;;  %v71_v61 = vld [vmem:[%s7192_s0 + $0x8] sm:$0xff]  ;;  %v4510_v63 = vor.u32 %v6169_v41, %v4507_v46 }
  0x23   :  { %v4681_v2 = vld [vmem:[#allocation2 + $0x340] sm:$0xf]  ;;  %v6215_v3 = vld [vmem:[#allocation2 + $0x34c] sm:$0xf0]  ;;  %v4554_v7 = vor.u32 %v6183_v1, %v4553_v0  ;;  %1286 = vmatpush.bf16.msra.mxu0 %v4298_v4  ;;  %v6165_v1 = vld [vmem:[#allocation2 + $0x1c4] sm:$0xf]  ;;  %v4366_v4 = vor.u32 %v6133_v57, %v4363_v58 }
  0x24   :  { %v4281_v5 = vld [vmem:[#allocation2 + $0x20] sm:$0xf]  ;;  %v6115_v8 = vld [vmem:[#allocation2 + $0x2c] sm:$0xf0]  ;;  %v4682_v11 = vor.u32 %v6215_v3, %v4681_v2  ;;  %1300 = vmatpush.bf16.msra.mxu1 %v4426_v6  ;;  %v4491_v2 = vld [vmem:[#allocation2 + $0x1d0] sm:$0xf0] }
  0x25   :  { %v4409_v9 = vld [vmem:[#allocation2 + $0x120] sm:$0xf]  ;;  %v6147_v10 = vld [vmem:[#allocation2 + $0x12c] sm:$0xf0]  ;;  %v4282_v18 = vor.u32 %v6115_v8, %v4281_v5  ;;  %1314 = vmatpush.bf16.msra.mxu2 %v4554_v7  ;;  %v4443_v41 = vld [vmem:[#allocation2 + $0x170] sm:$0xf0] }
  0x26   :  { %v4537_v12 = vld [vmem:[#allocation2 + $0x220] sm:$0xf]  ;;  %v6179_v13 = vld [vmem:[#allocation2 + $0x22c] sm:$0xf0]  ;;  %v4410_v23 = vor.u32 %v6147_v10, %v4409_v9  ;;  %1328 = vmatpush.bf16.msra.mxu3 %v4682_v11  ;;  %v6129_v10 = vld [vmem:[#allocation2 + $0xa4] sm:$0xf] }
  0x27   :  { %v4665_v14 = vld [vmem:[#allocation2 + $0x320] sm:$0xf]  ;;  %v6211_v15 = vld [vmem:[#allocation2 + $0x32c] sm:$0xf0]  ;;  %v4538_v24 = vor.u32 %v6179_v13, %v4537_v12  ;;  %1287 = vmatpush.bf16.msra.mxu0 %v4282_v18  ;;  %v4347_v11 = vld [vmem:[#allocation2 + $0xb0] sm:$0xf0]  ;;  %v4494_v12 = vor.u32 %v6165_v1, %v4491_v2 }
  0x28   :  { %v4265_v16 = vld [vmem:[#allocation2] sm:$0xf]  ;;  %v6111_v17 = vld [vmem:[#allocation2 + $0xc] sm:$0xf0]  ;;  %v4666_v28 = vor.u32 %v6211_v15, %v4665_v14  ;;  %1301 = vmatpush.bf16.msra.mxu1 %v4410_v23  ;;  %v6161_v14 = vld [vmem:[#allocation2 + $0x1a4] sm:$0xf] }
  0x29   :  { %v4393_v19 = vld [vmem:[#allocation2 + $0x100] sm:$0xf]  ;;  %v6143_v20 = vld [vmem:[#allocation2 + $0x10c] sm:$0xf0]  ;;  %v4266_v35 = vor.u32 %v6111_v17, %v4265_v16  ;;  %1315 = vmatpush.bf16.msra.mxu2 %v4538_v24  ;;  %v4475_v15 = vld [vmem:[#allocation2 + $0x1b0] sm:$0xf0]  ;;  %v4350_v17 = vor.u32 %v6129_v10, %v4347_v11 }
  0x2a   :  { %v4521_v21 = vld [vmem:[#allocation2 + $0x200] sm:$0xf]  ;;  %v6175_v22 = vld [vmem:[#allocation2 + $0x20c] sm:$0xf0]  ;;  %v4394_v39 = vor.u32 %v6143_v20, %v4393_v19  ;;  %1329 = vmatpush.bf16.msra.mxu3 %v4666_v28  ;;  %v4331_v23 = vld [vmem:[#allocation2 + $0x90] sm:$0xf0]  ;;  %v4478_v24 = vor.u32 %v6161_v14, %v4475_v15 }
  0x2b   :  { %v4649_v25 = vld [vmem:[#allocation2 + $0x300] sm:$0xf]  ;;  %v6207_v26 = vld [vmem:[#allocation2 + $0x30c] sm:$0xf0]  ;;  %v4522_v40 = vor.u32 %v6175_v22, %v4521_v21  ;;  %1288 = vmatpush.bf16.msra.mxu0 %v4266_v35  ;;  %v6125_v22 = vld [vmem:[#allocation2 + $0x84] sm:$0xf] }
  0x2c   :  { %v4889_v27 = vld [vmem:[#allocation2 + $0x4e0] sm:$0xf]  ;;  %v6267_v29 = vld [vmem:[#allocation2 + $0x4ec] sm:$0xf0]  ;;  %v4650_v44 = vor.u32 %v6207_v26, %v4649_v25  ;;  %1302 = vmatpush.bf16.msra.mxu1 %v4394_v39  ;;  %v6157_v26 = vld [vmem:[#allocation2 + $0x184] sm:$0xf] }
  0x2d   :  { %v5017_v30 = vld [vmem:[#allocation2 + $0x5e0] sm:$0xf]  ;;  %v6299_v31 = vld [vmem:[#allocation2 + $0x5ec] sm:$0xf0]  ;;  %v4890_v45 = vor.u32 %v6267_v29, %v4889_v27  ;;  %1316 = vmatpush.bf16.msra.mxu2 %v4522_v40  ;;  %v4459_v27 = vld [vmem:[#allocation2 + $0x190] sm:$0xf0]  ;;  %v4334_v29 = vor.u32 %v6125_v22, %v4331_v23 }
  0x2e   :  { %v72_v34 = vld [vmem:[%s7192_s0 + $0x10] sm:$0xff]  ;;  %v5033_v37 = vld [vmem:[#allocation2 + $0x600] sm:$0xf]  ;;  %v5018_v49 = vor.u32 %v6299_v31, %v5017_v30  ;;  %1330 = vmatpush.bf16.msra.mxu3 %v4650_v44  ;;  %v6153_v40 = vld [vmem:[#allocation2 + $0x164] sm:$0xf] }
  0x2f   :  { %v6303_v38 = vld [vmem:[#allocation2 + $0x60c] sm:$0xf0]  ;;  %v70_v42 = vld [vmem:[%s7192_s0] sm:$0xff]  ;;  %v6776_v54 = vpack.c.bf16 %v79_v36, %v72_v34  ;;  %1337 = vmatpush.bf16.msrb.mxu0 %v4890_v45  ;;  %v4315_v35 = vld [vmem:[#allocation2 + $0x70] sm:$0xf0] }
  0x30   :  { %v80_v48 = vld [vmem:[%s7192_s0 + $0x50] sm:$0xff]  ;;  %v4873_v51 = vld [vmem:[#allocation2 + $0x4c0] sm:$0xf]  ;;  %v6778_v55 = vpack.c.bf16 %v77_v43, %v70_v42  ;;  %v5034_v59 = vor.u32 %v6303_v38, %v5033_v37  ;;  %1351 = vmatpush.bf16.msrb.mxu1 %v5018_v49  ;;  %v6121_v34 = vld [vmem:[#allocation2 + $0x64] sm:$0xf]  ;;  %v4462_v38 = vor.u32 %v6157_v26, %v4459_v27 }
  0x31   :  { %v6263_v52 = vld [vmem:[#allocation2 + $0x4cc] sm:$0xf0]  ;;  %v5001_v53 = vld [vmem:[#allocation2 + $0x5c0] sm:$0xf]  ;;  %v6780_v60 = vpack.c.bf16 %v80_v48, %v73_v47  ;;  %1317 = vmatmul.bf16.vlgmr.msra.gmra.mxu2 %v6776_v54  ;;  %v83_v37 = vld [vmem:[%s7192_s0 + $0x68] sm:$0xff]  ;;  %v4318_v43 = vor.u32 %v6121_v34, %v4315_v35 }
  0x32   :  { %v6295_v56 = vld [vmem:[#allocation2 + $0x5cc] sm:$0xf0]  ;;  %v78_v62 = vld [vmem:[%s7192_s0 + $0x40] sm:$0xff]  ;;  %v4874_v0 = vor.u32 %v6263_v52, %v4873_v51  ;;  %1379 = vmatpush.bf16.msrb.mxu3 %v4382_v50  ;;  %1289 = vmatmul.bf16.vlgmr.msra.gmra.mxu0 %v6778_v55  ;;  %v4299_v49 = vld [vmem:[#allocation2 + $0x50] sm:$0xf0]  ;;  %v4446_v51 = vor.u32 %v6153_v40, %v4443_v41 }
  0x33   :  { %v5002_v3 = vor.u32 %v6295_v56, %v5001_v53  ;;  %v4857_v5 = vld [vmem:[#allocation2 + $0x4a0] sm:$0xf]  ;;  %v6259_v6 = vld [vmem:[#allocation2 + $0x4ac] sm:$0xf0]  ;;  %v6790_v8 = vpack.c.bf16 %v78_v62, %v71_v61  ;;  %1372 = vmatpush.bf16.msrb.mxu2 %v5034_v59  ;;  %1331 = vmatmul.bf16.vlgmr.msra.gmra.mxu3 %v6780_v60  ;;  %v6117_v48 = vld [vmem:[#allocation2 + $0x44] sm:$0xf] }
  0x34   :  { %v4985_v7 = vld [vmem:[#allocation2 + $0x5a0] sm:$0xf]  ;;  %v6291_v9 = vld [vmem:[#allocation2 + $0x5ac] sm:$0xf0]  ;;  %1338 = vmatpush.bf16.msrb.mxu0 %v4874_v0  ;;  %v4858_v13 = vor.u32 %v6259_v6, %v4857_v5  ;;  %v6149_v53 = vld [vmem:[#allocation2 + $0x144] sm:$0xf]  ;;  %v4302_v58 = vor.u32 %v6117_v48, %v4299_v49 }
  0x35   :  { %1352 = vmatpush.bf16.msrb.mxu1 %v5002_v3  ;;  %v4986_v16 = vor.u32 %v6291_v9, %v4985_v7  ;;  %v4841_v18 = vld [vmem:[#allocation2 + $0x480] sm:$0xf]  ;;  %v6255_v19 = vld [vmem:[#allocation2 + $0x48c] sm:$0xf0]  ;;  %v4427_v56 = vld [vmem:[#allocation2 + $0x150] sm:$0xf0] }
  0x36   :  { %1380 = vmatpush.bf16.msrb.mxu3 %v4366_v4  ;;  %v4969_v20 = vld [vmem:[#allocation2 + $0x580] sm:$0xf]  ;;  %1303 = vmatmul.bf16.vlgmr.msra.gmra.mxu1 %v6790_v8  ;;  %v6287_v21 = vld [vmem:[#allocation2 + $0x58c] sm:$0xf0]  ;;  %v4842_v25 = vor.u32 %v6255_v19, %v4841_v18  ;;  %v6113_v0 = vld [vmem:[#allocation2 + $0x24] sm:$0xf]  ;;  %v4430_v4 = vor.u32 %v6149_v53, %v4427_v56 }
  0x37   :  { %1393 = vmatpush.bf16.msra.mxu2 %v4510_v63  ;;  %v4970_v28 = vor.u32 %v6287_v21, %v4969_v20  ;;  %v4825_v30 = vld [vmem:[#allocation2 + $0x460] sm:$0xf]  ;;  %v6251_v31 = vld [vmem:[#allocation2 + $0x46c] sm:$0xf0]  ;;  %v4283_v1 = vld [vmem:[#allocation2 + $0x30] sm:$0xf0] }
  0x38   :  { %1339 = vmatpush.bf16.msrb.mxu0 %v4858_v13  ;;  %v4953_v32 = vld [vmem:[#allocation2 + $0x560] sm:$0xf]  ;;  %v6283_v33 = vld [vmem:[#allocation2 + $0x56c] sm:$0xf0]  ;;  %v4826_v39 = vor.u32 %v6251_v31, %v4825_v30  ;;  %v6145_v2 = vld [vmem:[#allocation2 + $0x124] sm:$0xf]  ;;  %v4286_v11 = vor.u32 %v6113_v0, %v4283_v1 }
  0x39   :  { %1353 = vmatpush.bf16.msrb.mxu1 %v4986_v16  ;;  %v76_v36 = vld [vmem:[%s7192_s0 + $0x30] sm:$0xff]  ;;  %v4954_v42 = vor.u32 %v6283_v33, %v4953_v32  ;;  %v4809_v44 = vld [vmem:[#allocation2 + $0x440] sm:$0xf]  ;;  %v6109_v13 = vld [vmem:[#allocation2 + $0x4] sm:$0xf] }
  0x3a   :  { %1381 = vmatpush.bf16.msrb.mxu3 %v4350_v17  ;;  %v6247_v45 = vld [vmem:[#allocation2 + $0x44c] sm:$0xf0]  ;;  %v4937_v46 = vld [vmem:[#allocation2 + $0x540] sm:$0xf]  ;;  %v6800_v50 = vpack.c.bf16 %v83_v37, %v76_v36  ;;  %v4411_v3 = vld [vmem:[#allocation2 + $0x130] sm:$0xf0] }
  0x3b   :  { %1394 = vmatpush.bf16.msra.mxu2 %v4494_v12  ;;  %v6279_v47 = vld [vmem:[#allocation2 + $0x54c] sm:$0xf0]  ;;  %v4810_v52 = vor.u32 %v6247_v45, %v4809_v44  ;;  %v4793_v59 = vld [vmem:[#allocation2 + $0x420] sm:$0xf]  ;;  %v4267_v14 = vld [vmem:[#allocation2 + $0x10] sm:$0xf0]  ;;  %v4414_v21 = vor.u32 %v6145_v2, %v4411_v3 }
  0x3c   :  { %1340 = vmatpush.bf16.msrb.mxu0 %v4842_v25  ;;  %v4938_v57 = vor.u32 %v6279_v47, %v4937_v46  ;;  %v6243_v61 = vld [vmem:[#allocation2 + $0x42c] sm:$0xf0]  ;;  %v4921_v62 = vld [vmem:[#allocation2 + $0x520] sm:$0xf]  ;;  %v6201_v15 = vld [vmem:[#allocation2 + $0x2e4] sm:$0xf]  ;;  %v4270_v27 = vor.u32 %v6109_v13, %v4267_v14 }
  0x3d   :  { %1354 = vmatpush.bf16.msrb.mxu1 %v4970_v28  ;;  %v6275_v63 = vld [vmem:[#allocation2 + $0x52c] sm:$0xf0]  ;;  %v4794_v5 = vor.u32 %v6243_v61, %v4793_v59  ;;  %v4777_v6 = vld [vmem:[#allocation2 + $0x400] sm:$0xf]  ;;  %v4635_v16 = vld [vmem:[#allocation2 + $0x2f0] sm:$0xf0] }
  0x3e   :  { %1382 = vmatpush.bf16.msrb.mxu3 %v4334_v29  ;;  %v6239_v7 = vld [vmem:[#allocation2 + $0x40c] sm:$0xf0]  ;;  %v4905_v9 = vld [vmem:[#allocation2 + $0x500] sm:$0xf]  ;;  %v4922_v10 = vor.u32 %v6275_v63, %v4921_v62  ;;  %v6233_v17 = vld [vmem:[#allocation2 + $0x3e4] sm:$0xf]  ;;  %v4638_v31 = vor.u32 %v6201_v15, %v4635_v16 }
  0x3f   :  { %1395 = vmatpush.bf16.msra.mxu2 %v4478_v24  ;;  %v6271_v12 = vld [vmem:[#allocation2 + $0x50c] sm:$0xf0]  ;;  %v4763_v18 = vld [vmem:[#allocation2 + $0x3f0] sm:$0xf0]  ;;  %v6265_v19 = vld [vmem:[#allocation2 + $0x4e4] sm:$0xf]  ;;  %v4778_v22 = vor.u32 %v6239_v7, %v4777_v6 }
  0x40   :  { %1341 = vmatpush.bf16.msrb.mxu0 %v4826_v39  ;;  %v4891_v20 = vld [vmem:[#allocation2 + $0x4f0] sm:$0xf0]  ;;  %v74_v23 = vld [vmem:[%s7192_s0 + $0x20] sm:$0xff]  ;;  %v81_v24 = vld [vmem:[%s7192_s0 + $0x58] sm:$0xff]  ;;  %v4906_v26 = vor.u32 %v6271_v12, %v4905_v9  ;;  %v4766_v32 = vor.u32 %v6233_v17, %v4763_v18 }
  0x41   :  { %1355 = vmatpush.bf16.msrb.mxu1 %v4954_v42  ;;  %5047 = vmatmul.msk.bf16.vlgmr.msrb.gmra.mxu2 %vm1277_vm0, %v6800_v50  ;;  %v6141_v25 = vld [vmem:[#allocation2 + $0x104] sm:$0xf]  ;;  %v4395_v28 = vld [vmem:[#allocation2 + $0x110] sm:$0xf0]  ;;  %v75_v29 = vld [vmem:[%s7192_s0 + $0x28] sm:$0xff]  ;;  %v4894_v36 = vor.u32 %v6265_v19, %v4891_v20  ;;  %v6816_v37 = vpack.c.bf16 %v81_v24, %v74_v23 }
  0x42   :  { %1383 = vmatpush.bf16.msrb.mxu3 %v4318_v43  ;;  %v82_v30 = vld [vmem:[%s7192_s0 + $0x60] sm:$0xff]  ;;  %v5019_v34 = vld [vmem:[#allocation2 + $0x5f0] sm:$0xf0]  ;;  %v4398_v41 = vor.u32 %v6141_v25, %v4395_v28 }
  0x43   :  { %1396 = vmatpush.bf16.msra.mxu2 %v4462_v38  ;;  %v6297_v33 = vld [vmem:[#allocation2 + $0x5e4] sm:$0xf]  ;;  %v4619_v38 = vld [vmem:[#allocation2 + $0x2d0] sm:$0xf0]  ;;  %v6818_v42 = vpack.c.bf16 %v82_v30, %v75_v29 }
  0x44   :  { %1342 = vmatpush.bf16.msrb.mxu0 %v4810_v52  ;;  %v6197_v35 = vld [vmem:[#allocation2 + $0x2c4] sm:$0xf]  ;;  %v4747_v40 = vld [vmem:[#allocation2 + $0x3d0] sm:$0xf0]  ;;  %v5022_v45 = vor.u32 %v6297_v33, %v5019_v34 }
  0x45   :  { %1356 = vmatpush.bf16.msrb.mxu1 %v4938_v57  ;;  %v6229_v39 = vld [vmem:[#allocation2 + $0x3c4] sm:$0xf]  ;;  %v4875_v44 = vld [vmem:[#allocation2 + $0x4d0] sm:$0xf0]  ;;  %v4622_v46 = vor.u32 %v6197_v35, %v4619_v38 }
  0x46   :  { %1384 = vmatpush.bf16.msrb.mxu3 %v4302_v58  ;;  %v6261_v43 = vld [vmem:[#allocation2 + $0x4c4] sm:$0xf]  ;;  %v4750_v47 = vor.u32 %v6229_v39, %v4747_v40  ;;  %v5003_v49 = vld [vmem:[#allocation2 + $0x5d0] sm:$0xf0] }
  0x47   :  { %1397 = vmatpush.bf16.msra.mxu2 %v4446_v51  ;;  %v6293_v48 = vld [vmem:[#allocation2 + $0x5c4] sm:$0xf]  ;;  %v4878_v52 = vor.u32 %v6261_v43, %v4875_v44  ;;  %v4603_v53 = vld [vmem:[#allocation2 + $0x2b0] sm:$0xf0] }
  0x48   :  { %1343 = vmatpush.bf16.msrb.mxu0 %v4794_v5  ;;  %v6193_v51 = vld [vmem:[#allocation2 + $0x2a4] sm:$0xf]  ;;  %v4731_v57 = vld [vmem:[#allocation2 + $0x3b0] sm:$0xf0]  ;;  %v5006_v61 = vor.u32 %v6293_v48, %v5003_v49 }
  0x49   :  { %1357 = vmatpush.bf16.msrb.mxu1 %v4922_v10  ;;  %v6225_v56 = vld [vmem:[#allocation2 + $0x3a4] sm:$0xf]  ;;  %v4859_v59 = vld [vmem:[#allocation2 + $0x4b0] sm:$0xf0]  ;;  %v4606_v62 = vor.u32 %v6193_v51, %v4603_v53 }
  0x4a   :  { %1385 = vmatpush.bf16.msrb.mxu3 %v4286_v11  ;;  %v6257_v58 = vld [vmem:[#allocation2 + $0x4a4] sm:$0xf]  ;;  %v4734_v63 = vor.u32 %v6225_v56, %v4731_v57  ;;  %v4987_v1 = vld [vmem:[#allocation2 + $0x5b0] sm:$0xf0] }
  0x4b   :  { %1398 = vmatpush.bf16.msra.mxu2 %v4430_v4  ;;  %v6289_v0 = vld [vmem:[#allocation2 + $0x5a4] sm:$0xf]  ;;  %v4862_v3 = vor.u32 %v6257_v58, %v4859_v59  ;;  %v4587_v4 = vld [vmem:[#allocation2 + $0x290] sm:$0xf0] }
  0x4c   :  { %1344 = vmatpush.bf16.msrb.mxu0 %v4778_v22  ;;  %v6189_v2 = vld [vmem:[#allocation2 + $0x284] sm:$0xf]  ;;  %v4715_v6 = vld [vmem:[#allocation2 + $0x390] sm:$0xf0]  ;;  %v4990_v10 = vor.u32 %v6289_v0, %v4987_v1  ;;  %v4385_v0 = vld [vmem:[#allocation2 + $0xe8] sm:$0xf] }
  0x4d   :  { %1358 = vmatpush.bf16.msrb.mxu1 %v4906_v26  ;;  %v6221_v5 = vld [vmem:[#allocation2 + $0x384] sm:$0xf]  ;;  %v4843_v9 = vld [vmem:[#allocation2 + $0x490] sm:$0xf0]  ;;  %v4590_v11 = vor.u32 %v6189_v2, %v4587_v4  ;;  %v6140_v1 = vld [vmem:[#allocation2 + $0xf4] sm:$0xf0] }
  0x4e   :  { %1386 = vmatpush.bf16.msrb.mxu3 %v4270_v27  ;;  %v6253_v7 = vld [vmem:[#allocation2 + $0x484] sm:$0xf]  ;;  %v4718_v12 = vor.u32 %v6221_v5, %v4715_v6  ;;  %v4971_v14 = vld [vmem:[#allocation2 + $0x590] sm:$0xf0]  ;;  %v4513_v2 = vld [vmem:[#allocation2 + $0x1e8] sm:$0xf] }
  0x4f   :  { %1399 = vmatpush.bf16.msra.mxu2 %v4414_v21  ;;  %1345 = vmatmul.bf16.vlgmr.msrb.gmra.mxu0 %v6816_v37  ;;  %v6285_v13 = vld [vmem:[#allocation2 + $0x584] sm:$0xf]  ;;  %v4846_v16 = vor.u32 %v6253_v7, %v4843_v9  ;;  %v4571_v17 = vld [vmem:[#allocation2 + $0x270] sm:$0xf0]  ;;  %v6172_v4 = vld [vmem:[#allocation2 + $0x1f4] sm:$0xf0] }
  0x50   :  { %1407 = vmatpush.bf16.msra.mxu0 %v4638_v31  ;;  %1359 = vmatmul.bf16.vlgmr.msrb.gmra.mxu1 %v6818_v42  ;;  %v6185_v15 = vld [vmem:[#allocation2 + $0x264] sm:$0xf]  ;;  %v4699_v19 = vld [vmem:[#allocation2 + $0x370] sm:$0xf0]  ;;  %v4974_v22 = vor.u32 %v6285_v13, %v4971_v14  ;;  %v4386_v13 = vor.u32 %v6140_v1, %v4385_v0  ;;  %v4641_v14 = vld [vmem:[#allocation2 + $0x2e8] sm:$0xf] }
  0x51   :  { %1421 = vmatpush.bf16.msra.mxu1 %v4766_v32  ;;  %1387 = vmatmul.bf16.vlgmr.msrb.gmra.mxu3 %v6778_v55  ;;  %v6217_v18 = vld [vmem:[#allocation2 + $0x364] sm:$0xf]  ;;  %v4827_v21 = vld [vmem:[#allocation2 + $0x470] sm:$0xf0]  ;;  %v4574_v23 = vor.u32 %v6185_v15, %v4571_v17  ;;  %v6204_v15 = vld [vmem:[#allocation2 + $0x2f4] sm:$0xf0]  ;;  %v4514_v17 = vor.u32 %v6172_v4, %v4513_v2 }
  0x52   :  { %1435 = vmatpush.bf16.msra.mxu3 %v4894_v36  ;;  %v6249_v20 = vld [vmem:[#allocation2 + $0x464] sm:$0xf]  ;;  %v4702_v24 = vor.u32 %v6217_v18, %v4699_v19  ;;  %v4955_v26 = vld [vmem:[#allocation2 + $0x570] sm:$0xf0]  ;;  %v6236_v19 = vld [vmem:[#allocation2 + $0x3f4] sm:$0xf0] }
  0x53   :  { %1400 = vmatpush.bf16.msra.mxu2 %v4398_v41  ;;  %v6281_v25 = vld [vmem:[#allocation2 + $0x564] sm:$0xf]  ;;  %v4830_v28 = vor.u32 %v6249_v20, %v4827_v21  ;;  %v4555_v29 = vld [vmem:[#allocation2 + $0x250] sm:$0xf0]  ;;  %v4369_v20 = vld [vmem:[#allocation2 + $0xc8] sm:$0xf] }
  0x54   :  { %1408 = vmatpush.bf16.msra.mxu0 %v4622_v46  ;;  %v6181_v27 = vld [vmem:[#allocation2 + $0x244] sm:$0xf]  ;;  %v4683_v31 = vld [vmem:[#allocation2 + $0x350] sm:$0xf0]  ;;  %v4958_v34 = vor.u32 %v6281_v25, %v4955_v26  ;;  %v6136_v21 = vld [vmem:[#allocation2 + $0xd4] sm:$0xf0]  ;;  %v4642_v25 = vor.u32 %v6204_v15, %v4641_v14 }
  0x55   :  { %1422 = vmatpush.bf16.msra.mxu1 %v4750_v47  ;;  %v6213_v30 = vld [vmem:[#allocation2 + $0x344] sm:$0xf]  ;;  %v4811_v33 = vld [vmem:[#allocation2 + $0x450] sm:$0xf0]  ;;  %v4558_v35 = vor.u32 %v6181_v27, %v4555_v29  ;;  %v4370_v27 = vor.u32 %v6136_v21, %v4369_v20  ;;  %v6200_v29 = vld [vmem:[#allocation2 + $0x2d4] sm:$0xf0] }
  0x56   :  { %1436 = vmatpush.bf16.msra.mxu3 %v4878_v52  ;;  %1401 = vmatmul.bf16.vlgmr.msra.gmra.mxu2 %v6790_v8  ;;  %v6245_v32 = vld [vmem:[#allocation2 + $0x444] sm:$0xf]  ;;  %v4686_v36 = vor.u32 %v6213_v30, %v4683_v31  ;;  %v4939_v39 = vld [vmem:[#allocation2 + $0x550] sm:$0xf0]  ;;  %v4753_v30 = vld [vmem:[#allocation2 + $0x3c8] sm:$0xf] }
  0x57   :  { %1449 = vmatpush.bf16.msrb.mxu2 %v5022_v45  ;;  %v6277_v38 = vld [vmem:[#allocation2 + $0x544] sm:$0xf]  ;;  %v4814_v41 = vor.u32 %v6245_v32, %v4811_v33  ;;  %v4539_v43 = vld [vmem:[#allocation2 + $0x230] sm:$0xf0]  ;;  %v6232_v32 = vld [vmem:[#allocation2 + $0x3d4] sm:$0xf0] }
  0x58   :  { %1409 = vmatpush.bf16.msra.mxu0 %v4606_v62  ;;  %v6177_v40 = vld [vmem:[#allocation2 + $0x224] sm:$0xf]  ;;  %v4667_v45 = vld [vmem:[#allocation2 + $0x330] sm:$0xf0]  ;;  %v4942_v48 = vor.u32 %v6277_v38, %v4939_v39  ;;  %v4353_v33 = vld [vmem:[#allocation2 + $0xa8] sm:$0xf]  ;;  %v4754_v39 = vor.u32 %v6232_v32, %v4753_v30 }
  0x59   :  { %1423 = vmatpush.bf16.msra.mxu1 %v4734_v63  ;;  %v6209_v44 = vld [vmem:[#allocation2 + $0x324] sm:$0xf]  ;;  %v4795_v47 = vld [vmem:[#allocation2 + $0x430] sm:$0xf0]  ;;  %v4542_v52 = vor.u32 %v6177_v40, %v4539_v43  ;;  %v6196_v43 = vld [vmem:[#allocation2 + $0x2b4] sm:$0xf0] }
  0x5a   :  { %1437 = vmatpush.bf16.msra.mxu3 %v4862_v3  ;;  %v6241_v46 = vld [vmem:[#allocation2 + $0x424] sm:$0xf]  ;;  %v4923_v51 = vld [vmem:[#allocation2 + $0x530] sm:$0xf0]  ;;  %v4670_v53 = vor.u32 %v6209_v44, %v4667_v45  ;;  %v4737_v44 = vld [vmem:[#allocation2 + $0x3a8] sm:$0xf] }
  0x5b   :  { %1450 = vmatpush.bf16.msrb.mxu2 %v5006_v61  ;;  %v6273_v49 = vld [vmem:[#allocation2 + $0x524] sm:$0xf]  ;;  %v4523_v57 = vld [vmem:[#allocation2 + $0x210] sm:$0xf0]  ;;  %v4798_v59 = vor.u32 %v6241_v46, %v4795_v47  ;;  %v6228_v46 = vld [vmem:[#allocation2 + $0x3b4] sm:$0xf0] }
  0x5c   :  { %1410 = vmatpush.bf16.msra.mxu0 %v4590_v11  ;;  %v6173_v56 = vld [vmem:[#allocation2 + $0x204] sm:$0xf]  ;;  %v4651_v61 = vld [vmem:[#allocation2 + $0x310] sm:$0xf0]  ;;  %v4926_v3 = vor.u32 %v6273_v49, %v4923_v51  ;;  %v4337_v47 = vld [vmem:[#allocation2 + $0x88] sm:$0xf] }
  0x5d   :  { %1424 = vmatpush.bf16.msra.mxu1 %v4718_v12  ;;  %v6205_v58 = vld [vmem:[#allocation2 + $0x304] sm:$0xf]  ;;  %v4779_v63 = vld [vmem:[#allocation2 + $0x410] sm:$0xf0]  ;;  %v4526_v7 = vor.u32 %v6173_v56, %v4523_v57  ;;  %v4465_v49 = vld [vmem:[#allocation2 + $0x188] sm:$0xf]  ;;  %v4738_v56 = vor.u32 %v6228_v46, %v4737_v44 }
  0x5e   :  { %1438 = vmatpush.bf16.msra.mxu3 %v4846_v16  ;;  %v6237_v62 = vld [vmem:[#allocation2 + $0x404] sm:$0xf]  ;;  %v5035_v6 = vld [vmem:[#allocation2 + $0x610] sm:$0xf0]  ;;  %v4654_v9 = vor.u32 %v6205_v58, %v4651_v61  ;;  %v4769_v16 = vld [vmem:[#allocation2 + $0x3e8] sm:$0xf] }
  0x5f   :  { %1451 = vmatpush.bf16.msrb.mxu2 %v4990_v10  ;;  %v6301_v5 = vld [vmem:[#allocation2 + $0x604] sm:$0xf]  ;;  %v4907_v11 = vld [vmem:[#allocation2 + $0x510] sm:$0xf0]  ;;  %v4782_v12 = vor.u32 %v6237_v62, %v4779_v63  ;;  %v4770_v26 = vor.u32 %v6236_v19, %v4769_v16  ;;  %v6160_v51 = vld [vmem:[#allocation2 + $0x194] sm:$0xf0] }
  0x60   :  { %1411 = vmatpush.bf16.msra.mxu0 %v4574_v23  ;;  %v6269_v10 = vld [vmem:[#allocation2 + $0x504] sm:$0xf]  ;;  %v5038_v18 = vor.u32 %v6301_v5, %v5035_v6  ;;  %v4497_v23 = vld [vmem:[#allocation2 + $0x1c8] sm:$0xf]  ;;  %v6192_v58 = vld [vmem:[#allocation2 + $0x294] sm:$0xf0]  ;;  %v4466_v61 = vor.u32 %v6160_v51, %v4465_v49 }
  0x61   :  { %1425 = vmatpush.bf16.msra.mxu1 %v4702_v24  ;;  %v6168_v24 = vld [vmem:[#allocation2 + $0x1d4] sm:$0xf0]  ;;  %v4321_v63 = vld [vmem:[#allocation2 + $0x68] sm:$0xf] }
  0x62   :  { %1439 = vmatpush.bf16.msra.mxu3 %v4830_v28  ;;  %v4625_v28 = vld [vmem:[#allocation2 + $0x2c8] sm:$0xf]  ;;  %v4498_v31 = vor.u32 %v6168_v24, %v4497_v23  ;;  %v6224_v62 = vld [vmem:[#allocation2 + $0x394] sm:$0xf0] }
  0x63   :  { %1452 = vmatpush.bf16.msrb.mxu2 %v4974_v22  ;;  %v4910_v22 = vor.u32 %v6269_v10, %v4907_v11  ;;  %v4626_v38 = vor.u32 %v6200_v29, %v4625_v28  ;;  %v6124_v0 = vld [vmem:[#allocation2 + $0x74] sm:$0xf0]  ;;  %v4449_v1 = vld [vmem:[#allocation2 + $0x168] sm:$0xf] }
  0x64   :  { %1412 = vmatpush.bf16.msra.mxu0 %v4558_v35  ;;  %v4481_v35 = vld [vmem:[#allocation2 + $0x1a8] sm:$0xf]  ;;  %v6156_v2 = vld [vmem:[#allocation2 + $0x174] sm:$0xf0]  ;;  %v4322_v5 = vor.u32 %v6124_v0, %v4321_v63 }
  0x65   :  { %1426 = vmatpush.bf16.msra.mxu1 %v4686_v36  ;;  %v6164_v36 = vld [vmem:[#allocation2 + $0x1b4] sm:$0xf0]  ;;  %v4577_v6 = vld [vmem:[#allocation2 + $0x268] sm:$0xf]  ;;  %v4450_v10 = vor.u32 %v6156_v2, %v4449_v1 }
  0x66   :  { %1440 = vmatpush.bf16.msra.mxu3 %v4814_v41  ;;  %v4609_v41 = vld [vmem:[#allocation2 + $0x2a8] sm:$0xf]  ;;  %v4482_v45 = vor.u32 %v6164_v36, %v4481_v35  ;;  %v6220_v11 = vld [vmem:[#allocation2 + $0x374] sm:$0xf0] }
  0x67   :  { %1453 = vmatpush.bf16.msrb.mxu2 %v4958_v34  ;;  %v6132_v34 = vld [vmem:[#allocation2 + $0xb4] sm:$0xf0]  ;;  %v4433_v14 = vld [vmem:[#allocation2 + $0x148] sm:$0xf] }
  0x68   :  { %1413 = vmatpush.bf16.msra.mxu0 %v4542_v52  ;;  %v4354_v40 = vor.u32 %v6132_v34, %v4353_v33  ;;  %v4610_v52 = vor.u32 %v6196_v43, %v4609_v41  ;;  %v6152_v15 = vld [vmem:[#allocation2 + $0x154] sm:$0xf0]  ;;  %v4561_v19 = vld [vmem:[#allocation2 + $0x248] sm:$0xf] }
  0x69   :  { %1427 = vmatpush.bf16.msra.mxu1 %v4670_v53  ;;  %v4593_v53 = vld [vmem:[#allocation2 + $0x288] sm:$0xf]  ;;  %v6184_v20 = vld [vmem:[#allocation2 + $0x254] sm:$0xf0] }
  0x6a   :  { %1441 = vmatpush.bf16.msra.mxu3 %v4798_v59  ;;  %v4721_v59 = vld [vmem:[#allocation2 + $0x388] sm:$0xf]  ;;  %v6216_v23 = vld [vmem:[#allocation2 + $0x354] sm:$0xf0]  ;;  %v4562_v28 = vor.u32 %v6184_v20, %v4561_v19 }
  0x6b   :  { %1454 = vmatpush.bf16.msrb.mxu2 %v4942_v48  ;;  %v6128_v48 = vld [vmem:[#allocation2 + $0x94] sm:$0xf0]  ;;  %v4722_v4 = vor.u32 %v6224_v62, %v4721_v59  ;;  %v4689_v21 = vld [vmem:[#allocation2 + $0x348] sm:$0xf]  ;;  %v4387_v59 = vld [vmem:[#allocation2 + $0xf8] sm:$0xf0] }
  0x6c   :  { %1414 = vmatpush.bf16.msra.mxu0 %v4526_v7  ;;  %v4338_v57 = vor.u32 %v6128_v48, %v4337_v47  ;;  %v6188_v7 = vld [vmem:[#allocation2 + $0x274] sm:$0xf0]  ;;  %v4289_v24 = vld [vmem:[#allocation2 + $0x28] sm:$0xf]  ;;  %v4690_v30 = vor.u32 %v6216_v23, %v4689_v21  ;;  %v4499_v23 = vld [vmem:[#allocation2 + $0x1d8] sm:$0xf0] }
  0x6d   :  { %1428 = vmatpush.bf16.msra.mxu1 %v4654_v9  ;;  %v4705_v9 = vld [vmem:[#allocation2 + $0x368] sm:$0xf]  ;;  %v4578_v16 = vor.u32 %v6188_v7, %v4577_v6  ;;  %v6180_v32 = vld [vmem:[#allocation2 + $0x234] sm:$0xf0] }
  0x6e   :  { %1442 = vmatpush.bf16.msra.mxu3 %v4782_v12  ;;  %v4305_v12 = vld [vmem:[#allocation2 + $0x48] sm:$0xf]  ;;  %v6212_v34 = vld [vmem:[#allocation2 + $0x334] sm:$0xf0] }
  0x6f   :  { %1455 = vmatpush.bf16.msrb.mxu2 %v4926_v3  ;;  %1415 = vmatmul.bf16.vlgmr.msra.gmra.mxu0 %v6776_v54  ;;  %v4594_v3 = vor.u32 %v6192_v58, %v4593_v53  ;;  %v4545_v29 = vld [vmem:[#allocation2 + $0x228] sm:$0xf]  ;;  %v6268_v43 = vld [vmem:[#allocation2 + $0x4f4] sm:$0xf0]  ;;  %v6138_v58 = vld [vmem:[#allocation2 + $0xec] sm:$0xf] }
  0x70   :  { %1470 = vmatpush.bf16.msrb.mxu0 %v5038_v18  ;;  %1429 = vmatmul.bf16.vlgmr.msra.gmra.mxu1 %v6780_v60  ;;  %v4673_v33 = vld [vmem:[#allocation2 + $0x328] sm:$0xf]  ;;  %v4546_v44 = vor.u32 %v6180_v32, %v4545_v29  ;;  %v6300_v46 = vld [vmem:[#allocation2 + $0x5f4] sm:$0xf0]  ;;  %v4390_v6 = vor.u32 %v6138_v58, %v4387_v59 }
  0x71   :  { %1477 = vmatpush.bf16.msrb.mxu1 %v4386_v13  ;;  %1443 = vmatmul.bf16.vlgmr.msra.gmra.mxu3 %v6816_v37  ;;  %v6120_v13 = vld [vmem:[#allocation2 + $0x54] sm:$0xf0]  ;;  %v4273_v36 = vld [vmem:[#allocation2 + $0x8] sm:$0xf]  ;;  %v4674_v47 = vor.u32 %v6212_v34, %v4673_v33  ;;  %v6162_v34 = vld [vmem:[#allocation2 + $0x1ac] sm:$0xf] }
  0x72   :  { %1491 = vmatpush.bf16.msrb.mxu3 %v4514_v17  ;;  %v4706_v17 = vor.u32 %v6220_v11, %v4705_v9  ;;  %v4306_v18 = vor.u32 %v6120_v13, %v4305_v12  ;;  %v4897_v41 = vld [vmem:[#allocation2 + $0x4e8] sm:$0xf]  ;;  %v6176_v51 = vld [vmem:[#allocation2 + $0x214] sm:$0xf0]  ;;  %v6170_v9 = vld [vmem:[#allocation2 + $0x1ec] sm:$0xf] }
  0x73   :  { %1456 = vmatpush.bf16.msrb.mxu2 %v4910_v22  ;;  %v4434_v22 = vor.u32 %v6152_v15, %v4433_v14  ;;  %v4529_v49 = vld [vmem:[#allocation2 + $0x208] sm:$0xf]  ;;  %v6264_v63 = vld [vmem:[#allocation2 + $0x4d4] sm:$0xf0]  ;;  %v6134_v11 = vld [vmem:[#allocation2 + $0xcc] sm:$0xf] }
  0x74   :  { %1505 = vmatpush.bf16.msra.mxu0 %v4642_v25  ;;  %v6116_v25 = vld [vmem:[#allocation2 + $0x34] sm:$0xf0]  ;;  %v4881_v62 = vld [vmem:[#allocation2 + $0x4c8] sm:$0xf]  ;;  %v4530_v1 = vor.u32 %v6176_v51, %v4529_v49  ;;  %v4371_v14 = vld [vmem:[#allocation2 + $0xd8] sm:$0xf0] }
  0x75   :  { %1478 = vmatpush.bf16.msrb.mxu1 %v4370_v27  ;;  %v6148_v27 = vld [vmem:[#allocation2 + $0x134] sm:$0xf0]  ;;  %v5009_v0 = vld [vmem:[#allocation2 + $0x5c8] sm:$0xf]  ;;  %v4882_v7 = vor.u32 %v6264_v63, %v4881_v62  ;;  %v4374_v20 = vor.u32 %v6134_v11, %v4371_v14  ;;  %v4467_v49 = vld [vmem:[#allocation2 + $0x198] sm:$0xf0] }
  0x76   :  { %1492 = vmatpush.bf16.msrb.mxu3 %v4498_v31  ;;  %1457 = vmatmul.bf16.vlgmr.msrb.gmra.mxu2 %v6818_v42  ;;  %v4290_v31 = vor.u32 %v6116_v25, %v4289_v24  ;;  %v6296_v2 = vld [vmem:[#allocation2 + $0x5d4] sm:$0xf0]  ;;  %v4865_v15 = vld [vmem:[#allocation2 + $0x4a8] sm:$0xf]  ;;  %v6130_v24 = vld [vmem:[#allocation2 + $0xac] sm:$0xf] }
  0x77   :  { %1519 = vmatpush.bf16.msra.mxu2 %v4770_v26  ;;  %v4417_v26 = vld [vmem:[#allocation2 + $0x128] sm:$0xf]  ;;  %v5010_v12 = vor.u32 %v6296_v2, %v5009_v0  ;;  %v6122_v51 = vld [vmem:[#allocation2 + $0x6c] sm:$0xf]  ;;  %v6280_v59 = vld [vmem:[#allocation2 + $0x554] sm:$0xf0] }
  0x78   :  { %1506 = vmatpush.bf16.msra.mxu0 %v4626_v38  ;;  %v4418_v35 = vor.u32 %v6148_v27, %v4417_v26  ;;  %v6112_v38 = vld [vmem:[#allocation2 + $0x14] sm:$0xf0]  ;;  %v4355_v26 = vld [vmem:[#allocation2 + $0xb8] sm:$0xf0]  ;;  %v4849_v27 = vld [vmem:[#allocation2 + $0x488] sm:$0xf] }
  0x79   :  { %1479 = vmatpush.bf16.msrb.mxu1 %v4354_v40  ;;  %v6144_v40 = vld [vmem:[#allocation2 + $0x114] sm:$0xf0]  ;;  %v4274_v48 = vor.u32 %v6112_v38, %v4273_v36  ;;  %v4977_v29 = vld [vmem:[#allocation2 + $0x588] sm:$0xf]  ;;  %v4358_v32 = vor.u32 %v6130_v24, %v4355_v26  ;;  %v6126_v36 = vld [vmem:[#allocation2 + $0x8c] sm:$0xf] }
  0x7a   :  { %1493 = vmatpush.bf16.msrb.mxu3 %v4482_v45  ;;  %v5025_v45 = vld [vmem:[#allocation2 + $0x5e8] sm:$0xf]  ;;  %v6154_v0 = vld [vmem:[#allocation2 + $0x16c] sm:$0xf]  ;;  %v4435_v14 = vld [vmem:[#allocation2 + $0x158] sm:$0xf0] }
  0x7b   :  { %1520 = vmatpush.bf16.msra.mxu2 %v4754_v39  ;;  %v4401_v39 = vld [vmem:[#allocation2 + $0x108] sm:$0xf]  ;;  %v6118_v2 = vld [vmem:[#allocation2 + $0x4c] sm:$0xf]  ;;  %v4771_v26 = vld [vmem:[#allocation2 + $0x3f8] sm:$0xf0] }
  0x7c   :  { %1507 = vmatpush.bf16.msra.mxu0 %v4610_v52  ;;  %v4657_v52 = vld [vmem:[#allocation2 + $0x308] sm:$0xf]  ;;  %v4402_v53 = vor.u32 %v6144_v40, %v4401_v39  ;;  %v4339_v39 = vld [vmem:[#allocation2 + $0x98] sm:$0xf0]  ;;  %v6150_v11 = vld [vmem:[#allocation2 + $0x14c] sm:$0xf] }
  0x7d   :  { %1480 = vmatpush.bf16.msrb.mxu1 %v4338_v57  ;;  %v6208_v57 = vld [vmem:[#allocation2 + $0x314] sm:$0xf0]  ;;  %v4833_v40 = vld [vmem:[#allocation2 + $0x468] sm:$0xf]  ;;  %v4438_v24 = vor.u32 %v6150_v11, %v4435_v14  ;;  %v6222_v11 = vld [vmem:[#allocation2 + $0x38c] sm:$0xf] }
  0x7e   :  { %1494 = vmatpush.bf16.msrb.mxu3 %v4466_v61  ;;  %v5026_v61 = vor.u32 %v6300_v46, %v5025_v45  ;;  %v4342_v46 = vor.u32 %v6126_v36, %v4339_v39  ;;  %v4945_v58 = vld [vmem:[#allocation2 + $0x548] sm:$0xf]  ;;  %v6198_v39 = vld [vmem:[#allocation2 + $0x2cc] sm:$0xf] }
  0x7f   :  { %1521 = vmatpush.bf16.msra.mxu2 %v4738_v56  ;;  %5048 = vmatmul.msk.bf16.vlgmr.msrb.gmra.mxu0 %vm1277_vm0, %v6800_v50  ;;  %v4898_v56 = vor.u32 %v6268_v43, %v4897_v41  ;;  %v6252_v41 = vld [vmem:[#allocation2 + $0x474] sm:$0xf0]  ;;  %v4961_v43 = vld [vmem:[#allocation2 + $0x568] sm:$0xf] }
  0x80   :  { %1508 = vmatpush.bf16.msra.mxu0 %v4594_v3  ;;  %v5041_v3 = vld [vmem:[#allocation2 + $0x608] sm:$0xf] }
  0x81   :  { %1481 = vmatpush.bf16.msrb.mxu1 %v4322_v5  ;;  %v4658_v5 = vor.u32 %v6208_v57, %v4657_v52  ;;  %v6248_v57 = vld [vmem:[#allocation2 + $0x454] sm:$0xf0] }
  0x82   :  { %1495 = vmatpush.bf16.msrb.mxu3 %v4450_v10  ;;  %v4515_v10 = vld [vmem:[#allocation2 + $0x1f8] sm:$0xf0] }
  0x83   :  { %1522 = vmatpush.bf16.msra.mxu2 %v4722_v4  ;;  %v6304_v4 = vld [vmem:[#allocation2 + $0x614] sm:$0xf0]  ;;  %v4518_v19 = vor.u32 %v6170_v9, %v4515_v10 }
  0x84   :  { %1509 = vmatpush.bf16.msra.mxu0 %v4578_v16  ;;  %v5042_v13 = vor.u32 %v6304_v4, %v5041_v3  ;;  %v6260_v16 = vld [vmem:[#allocation2 + $0x4b4] sm:$0xf0]  ;;  %v4946_v3 = vor.u32 %v6280_v59, %v4945_v58  ;;  %v4307_v4 = vld [vmem:[#allocation2 + $0x58] sm:$0xf0]  ;;  %v6194_v58 = vld [vmem:[#allocation2 + $0x2ac] sm:$0xf] }
  0x85   :  { %1482 = vmatpush.bf16.msrb.mxu1 %v4306_v18  ;;  %v6292_v18 = vld [vmem:[#allocation2 + $0x5b4] sm:$0xf0]  ;;  %v4866_v21 = vor.u32 %v6260_v16, %v4865_v15  ;;  %v6114_v15 = vld [vmem:[#allocation2 + $0x2c] sm:$0xf]  ;;  %v4291_v16 = vld [vmem:[#allocation2 + $0x38] sm:$0xf0] }
  0x86   :  { %1496 = vmatpush.bf16.msrb.mxu3 %v4434_v22  ;;  %v6166_v22 = vld [vmem:[#allocation2 + $0x1cc] sm:$0xf]  ;;  %v6276_v9 = vld [vmem:[#allocation2 + $0x534] sm:$0xf0]  ;;  %v4611_v59 = vld [vmem:[#allocation2 + $0x2b8] sm:$0xf0] }
  0x87   :  { %1523 = vmatpush.bf16.msra.mxu2 %v4706_v17  ;;  %v4993_v17 = vld [vmem:[#allocation2 + $0x5a8] sm:$0xf] }
  0x88   :  { %1510 = vmatpush.bf16.msra.mxu0 %v4562_v28  ;;  %v4994_v25 = vor.u32 %v6292_v18, %v4993_v17  ;;  %v6256_v28 = vld [vmem:[#allocation2 + $0x494] sm:$0xf0]  ;;  %v4785_v18 = vld [vmem:[#allocation2 + $0x408] sm:$0xf] }
  0x89   :  { %1483 = vmatpush.bf16.msrb.mxu1 %v4290_v31  ;;  %v4502_v31 = vor.u32 %v6166_v22, %v4499_v23  ;;  %v4850_v33 = vor.u32 %v6256_v28, %v4849_v27  ;;  %v6202_v22 = vld [vmem:[#allocation2 + $0x2ec] sm:$0xf]  ;;  %v4643_v23 = vld [vmem:[#allocation2 + $0x2f8] sm:$0xf0]  ;;  %v4294_v27 = vor.u32 %v6114_v15, %v4291_v16 }
  0x8a   :  { %1497 = vmatpush.bf16.msrb.mxu3 %v4418_v35  ;;  %v4483_v35 = vld [vmem:[#allocation2 + $0x1b8] sm:$0xf0]  ;;  %v6290_v16 = vld [vmem:[#allocation2 + $0x5ac] sm:$0xf] }
  0x8b   :  { %1524 = vmatpush.bf16.msra.mxu2 %v4690_v30  ;;  %v6288_v30 = vld [vmem:[#allocation2 + $0x594] sm:$0xf0]  ;;  %v4486_v45 = vor.u32 %v6162_v34, %v4483_v35  ;;  %v4275_v34 = vld [vmem:[#allocation2 + $0x18] sm:$0xf0]  ;;  %v6266_v35 = vld [vmem:[#allocation2 + $0x4ec] sm:$0xf] }
  0x8c   :  { %1511 = vmatpush.bf16.msra.mxu0 %v4546_v44  ;;  %v4978_v38 = vor.u32 %v6288_v30, %v4977_v29  ;;  %v6284_v44 = vld [vmem:[#allocation2 + $0x574] sm:$0xf0]  ;;  %v6146_v29 = vld [vmem:[#allocation2 + $0x12c] sm:$0xf]  ;;  %v4419_v30 = vld [vmem:[#allocation2 + $0x138] sm:$0xf0] }
  0x8d   :  { %1484 = vmatpush.bf16.msrb.mxu1 %v4274_v48  ;;  %v6158_v48 = vld [vmem:[#allocation2 + $0x18c] sm:$0xf]  ;;  %v4962_v52 = vor.u32 %v6284_v44, %v4961_v43  ;;  %v4755_v44 = vld [vmem:[#allocation2 + $0x3d8] sm:$0xf0] }
  0x8e   :  { %1498 = vmatpush.bf16.msrb.mxu3 %v4402_v53  ;;  %v4323_v53 = vld [vmem:[#allocation2 + $0x78] sm:$0xf0]  ;;  %v6230_v43 = vld [vmem:[#allocation2 + $0x3cc] sm:$0xf] }
  0x8f   :  { %1525 = vmatpush.bf16.msra.mxu2 %v4674_v47  ;;  %v4834_v47 = vor.u32 %v6252_v41, %v4833_v40  ;;  %v4326_v62 = vor.u32 %v6122_v51, %v4323_v53  ;;  %v4627_v40 = vld [vmem:[#allocation2 + $0x2d8] sm:$0xf0]  ;;  %v4422_v41 = vor.u32 %v6146_v29, %v4419_v30  ;;  %v6298_v51 = vld [vmem:[#allocation2 + $0x5ec] sm:$0xf] }
  0x90   :  { %1512 = vmatpush.bf16.msra.mxu0 %v4530_v1  ;;  %1485 = vmatmul.bf16.vlgmr.msrb.gmra.mxu1 %v6778_v55  ;;  %v4451_v1 = vld [vmem:[#allocation2 + $0x178] sm:$0xf0]  ;;  %v6262_v53 = vld [vmem:[#allocation2 + $0x4cc] sm:$0xf] }
  0x91   :  { %1533 = vmatpush.bf16.msra.mxu1 %v4898_v56  ;;  %1499 = vmatmul.bf16.vlgmr.msrb.gmra.mxu3 %v6790_v8  ;;  %v4817_v56 = vld [vmem:[#allocation2 + $0x448] sm:$0xf]  ;;  %v4454_v10 = vor.u32 %v6154_v0, %v4451_v1  ;;  %v6250_v29 = vld [vmem:[#allocation2 + $0x46c] sm:$0xf] }
  0x92   :  { %1547 = vmatpush.bf16.msra.mxu3 %v5026_v61  ;;  %v4470_v61 = vor.u32 %v6158_v48, %v4467_v49  ;;  %v4818_v63 = vor.u32 %v6248_v57, %v4817_v56  ;;  %v4630_v49 = vor.u32 %v6198_v39, %v4627_v40  ;;  %v4758_v56 = vor.u32 %v6230_v43, %v4755_v44  ;;  %v4883_v57 = vld [vmem:[#allocation2 + $0x4d8] sm:$0xf0]  ;;  %v6282_v39 = vld [vmem:[#allocation2 + $0x56c] sm:$0xf] }
  0x93   :  { %1526 = vmatpush.bf16.msra.mxu2 %v4658_v5  ;;  %1513 = vmatmul.bf16.vlgmr.msra.gmra.mxu0 %v6776_v54  ;;  %v4801_v5 = vld [vmem:[#allocation2 + $0x428] sm:$0xf]  ;;  %v4886_v1 = vor.u32 %v6262_v53, %v4883_v57  ;;  %v4963_v40 = vld [vmem:[#allocation2 + $0x578] sm:$0xf0] }
  0x94   :  { %1568 = vmatpush.bf16.msrb.mxu0 %v5042_v13  ;;  %v4819_v44 = vld [vmem:[#allocation2 + $0x458] sm:$0xf0] }
  0x95   :  { %1534 = vmatpush.bf16.msra.mxu1 %v4882_v7  ;;  %v4929_v7 = vld [vmem:[#allocation2 + $0x528] sm:$0xf]  ;;  %v4947_v57 = vld [vmem:[#allocation2 + $0x558] sm:$0xf0] }
  0x96   :  { %1548 = vmatpush.bf16.msra.mxu3 %v5010_v12  ;;  %1527 = vmatmul.bf16.vlgmr.msra.gmra.mxu2 %v6780_v60  ;;  %v4310_v12 = vor.u32 %v6118_v2, %v4307_v4  ;;  %v4930_v17 = vor.u32 %v6276_v9, %v4929_v7  ;;  %v4614_v2 = vor.u32 %v6194_v58, %v4611_v59  ;;  %v5011_v4 = vld [vmem:[#allocation2 + $0x5d8] sm:$0xf0]  ;;  %v6190_v9 = vld [vmem:[#allocation2 + $0x28c] sm:$0xf] }
  0x97   :  { %1575 = vmatpush.bf16.msrb.mxu2 %v4390_v6  ;;  %v6244_v6 = vld [vmem:[#allocation2 + $0x434] sm:$0xf0]  ;;  %v4867_v7 = vld [vmem:[#allocation2 + $0x4b8] sm:$0xf0]  ;;  %v6242_v58 = vld [vmem:[#allocation2 + $0x42c] sm:$0xf] }
  0x98   :  { %1589 = vmatpush.bf16.msra.mxu0 %v4518_v19  ;;  %v4802_v13 = vor.u32 %v6244_v6, %v4801_v5  ;;  %v6240_v19 = vld [vmem:[#allocation2 + $0x414] sm:$0xf0]  ;;  %v6258_v5 = vld [vmem:[#allocation2 + $0x4ac] sm:$0xf]  ;;  %v4803_v59 = vld [vmem:[#allocation2 + $0x438] sm:$0xf0] }
  0x99   :  { %1535 = vmatpush.bf16.msra.mxu1 %v4866_v21  ;;  %v6272_v21 = vld [vmem:[#allocation2 + $0x514] sm:$0xf0]  ;;  %v4786_v28 = vor.u32 %v6240_v19, %v4785_v18  ;;  %v4870_v14 = vor.u32 %v6258_v5, %v4867_v7  ;;  %v6254_v18 = vld [vmem:[#allocation2 + $0x48c] sm:$0xf]  ;;  %v5043_v5 = vld [vmem:[#allocation2 + $0x618] sm:$0xf0] }
  0x9a   :  { %1549 = vmatpush.bf16.msra.mxu3 %v4994_v25  ;;  %v6234_v25 = vld [vmem:[#allocation2 + $0x3ec] sm:$0xf] }
  0x9b   :  { %1576 = vmatpush.bf16.msrb.mxu2 %v4374_v20  ;;  %v4913_v20 = vld [vmem:[#allocation2 + $0x508] sm:$0xf]  ;;  %v4774_v36 = vor.u32 %v6234_v25, %v4771_v26 }
  0x9c   :  { %1590 = vmatpush.bf16.msra.mxu0 %v4502_v31  ;;  %v4914_v31 = vor.u32 %v6272_v21, %v4913_v20  ;;  %v4851_v20 = vld [vmem:[#allocation2 + $0x498] sm:$0xf0]  ;;  %v6186_v21 = vld [vmem:[#allocation2 + $0x26c] sm:$0xf] }
  0x9d   :  { %1536 = vmatpush.bf16.msra.mxu1 %v4850_v33  ;;  %v6110_v33 = vld [vmem:[#allocation2 + $0xc] sm:$0xf]  ;;  %v4854_v25 = vor.u32 %v6254_v18, %v4851_v20  ;;  %v6312_v18 = vld [vmem:[%s7196_s4 + $0x38] sm:$0xff] }
  0x9e   :  { %1550 = vmatpush.bf16.msra.mxu3 %v4978_v38  ;;  %v4899_v38 = vld [vmem:[#allocation2 + $0x4f8] sm:$0xf0] }
  0x9f   :  { %1577 = vmatpush.bf16.msrb.mxu2 %v4358_v32  ;;  %v4646_v32 = vor.u32 %v6202_v22, %v4643_v23  ;;  %v4902_v48 = vor.u32 %v6266_v35, %v4899_v38  ;;  %v4579_v22 = vld [vmem:[#allocation2 + $0x278] sm:$0xf0]  ;;  %v6218_v23 = vld [vmem:[#allocation2 + $0x36c] sm:$0xf] }
  0xa0   :  { %1591 = vmatpush.bf16.msra.mxu0 %v4486_v45  ;;  %v4278_v45 = vor.u32 %v6110_v33, %v4275_v34  ;;  %v4582_v26 = vor.u32 %v6186_v21, %v4579_v22  ;;  %v4563_v33 = vld [vmem:[#allocation2 + $0x258] sm:$0xf0]  ;;  %v6214_v34 = vld [vmem:[#allocation2 + $0x34c] sm:$0xf] }
  0xa1   :  { %1537 = vmatpush.bf16.msra.mxu1 %v4834_v47  ;;  %v4403_v47 = vld [vmem:[#allocation2 + $0x118] sm:$0xf0]  ;;  %v6270_v21 = vld [vmem:[#allocation2 + $0x50c] sm:$0xf] }
  0xa2   :  { %1551 = vmatpush.bf16.msra.mxu3 %v4962_v52  ;;  %v5027_v52 = vld [vmem:[#allocation2 + $0x5f8] sm:$0xf0] }
  0xa3   :  { %1578 = vmatpush.bf16.msrb.mxu2 %v4342_v46  ;;  %5049 = vmatmul.msk.bf16.vlgmr.msrb.gmra.mxu0 %vm1277_vm0, %v6800_v50  ;;  %v6142_v46 = vld [vmem:[#allocation2 + $0x10c] sm:$0xf]  ;;  %v5030_v0 = vor.u32 %v6298_v51, %v5027_v52  ;;  %v4691_v35 = vld [vmem:[#allocation2 + $0x358] sm:$0xf0]  ;;  %v6843_v52 = vld [vmem:[%s7195_s3] sm:$0xf] }
  0xa4   :  { %1592 = vmatpush.bf16.msra.mxu0 %v4470_v61  ;;  %v4406_v61 = vor.u32 %v6142_v46, %v4403_v47  ;;  %v4694_v43 = vor.u32 %v6214_v34, %v4691_v35  ;;  %v4547_v46 = vld [vmem:[#allocation2 + $0x238] sm:$0xf0]  ;;  %v6210_v47 = vld [vmem:[#allocation2 + $0x32c] sm:$0xf] }
  0xa5   :  { %1538 = vmatpush.bf16.msra.mxu1 %v4818_v63  ;;  %v4739_v63 = vld [vmem:[#allocation2 + $0x3b8] sm:$0xf0]  ;;  %v6278_v51 = vld [vmem:[#allocation2 + $0x54c] sm:$0xf] }
  0xa6   :  { %1552 = vmatpush.bf16.msra.mxu3 %v4946_v3  ;;  %v6294_v3 = vld [vmem:[#allocation2 + $0x5cc] sm:$0xf]  ;;  %v4950_v7 = vor.u32 %v6278_v51, %v4947_v57  ;;  %v4915_v22 = vld [vmem:[#allocation2 + $0x518] sm:$0xf0] }
  0xa7   :  { %1579 = vmatpush.bf16.msrb.mxu2 %v4326_v62  ;;  %v6226_v62 = vld [vmem:[#allocation2 + $0x3ac] sm:$0xf] }
  0xa8   :  { %1593 = vmatpush.bf16.msra.mxu0 %v4454_v10  ;;  %v4742_v6 = vor.u32 %v6226_v62, %v4739_v63  ;;  %v4595_v10 = vld [vmem:[#allocation2 + $0x298] sm:$0xf0]  ;;  %v6174_v63 = vld [vmem:[#allocation2 + $0x20c] sm:$0xf] }
  0xa9   :  { %1539 = vmatpush.bf16.msra.mxu1 %v4802_v13  ;;  %v5014_v13 = vor.u32 %v6294_v3, %v5011_v4  ;;  %v4598_v15 = vor.u32 %v6190_v9, %v4595_v10  ;;  %v4659_v3 = vld [vmem:[#allocation2 + $0x318] sm:$0xf0]  ;;  %v6302_v4 = vld [vmem:[#allocation2 + $0x60c] sm:$0xf]  ;;  %v4806_v9 = vor.u32 %v6242_v58, %v4803_v59 }
  0xaa   :  { %1553 = vmatpush.bf16.msra.mxu3 %v4930_v17  ;;  %v4995_v17 = vld [vmem:[#allocation2 + $0x5b8] sm:$0xf0] }
  0xab   :  { %1580 = vmatpush.bf16.msrb.mxu2 %v4310_v12  ;;  %v4723_v12 = vld [vmem:[#allocation2 + $0x398] sm:$0xf0] }
  0xac   :  { %1594 = vmatpush.bf16.msra.mxu0 %v4438_v24  ;;  %v4726_v19 = vor.u32 %v6222_v11, %v4723_v12  ;;  %v4707_v24 = vld [vmem:[#allocation2 + $0x378] sm:$0xf0]  ;;  %v6274_v11 = vld [vmem:[#allocation2 + $0x52c] sm:$0xf] }
  0xad   :  { %1540 = vmatpush.bf16.msra.mxu1 %v4786_v28  ;;  %v4979_v28 = vld [vmem:[#allocation2 + $0x598] sm:$0xf0]  ;;  %v4710_v30 = vor.u32 %v6218_v23, %v4707_v24  ;;  %v6311_v24 = vld [vmem:[%s7196_s4 + $0x30] sm:$0xff] }
  0xae   :  { %1554 = vmatpush.bf16.msra.mxu3 %v4914_v31  ;;  %v4835_v31 = vld [vmem:[#allocation2 + $0x478] sm:$0xf0] }
  0xaf   :  { %1581 = vmatpush.bf16.msrb.mxu2 %v4294_v27  ;;  %v6286_v27 = vld [vmem:[#allocation2 + $0x58c] sm:$0xf]  ;;  %v4931_v12 = vld [vmem:[#allocation2 + $0x538] sm:$0xf0] }
  0xb0   :  { %1595 = vmatpush.bf16.msra.mxu0 %v4422_v41  ;;  %1541 = vmatmul.bf16.vlgmr.msra.gmra.mxu1 %v6816_v37  ;;  %v6246_v41 = vld [vmem:[#allocation2 + $0x44c] sm:$0xf] }
  0xb1   :  { %1603 = vmatpush.bf16.msrb.mxu1 %v4646_v32  ;;  %1555 = vmatmul.bf16.vlgmr.msra.gmra.mxu3 %v6818_v42  ;;  %v6182_v32 = vld [vmem:[#allocation2 + $0x24c] sm:$0xf]  ;;  %v4822_v53 = vor.u32 %v6246_v41, %v4819_v44  ;;  %v6307_v44 = vld [vmem:[%s7196_s4 + $0x10] sm:$0xff] }
  0xb2   :  { %1617 = vmatpush.bf16.msrb.mxu3 %v4774_v36  ;;  %v4838_v36 = vor.u32 %v6250_v29, %v4835_v31  ;;  %v4566_v38 = vor.u32 %v6182_v32, %v4563_v33  ;;  %v6310_v31 = vld [vmem:[%s7196_s4 + $0x28] sm:$0xff] }
  0xb3   :  { %1582 = vmatpush.bf16.msrb.mxu2 %v4278_v45  ;;  %v6178_v45 = vld [vmem:[#allocation2 + $0x22c] sm:$0xf] }
  0xb4   :  { %1596 = vmatpush.bf16.msra.mxu0 %v4406_v61  ;;  %v1290_v61 = vpop.f32.mrf.mxu0  ;;  %v6318_v41 = vld [vmem:[%s7196_s4 + $0x68] sm:$0xff] }
  0xb5   :  { %1604 = vmatpush.bf16.msrb.mxu1 %v4630_v49  ;;  %v4966_v49 = vor.u32 %v6282_v39, %v4963_v40 }
  0xb6   :  { %1618 = vmatpush.bf16.msrb.mxu3 %v4758_v56  ;;  %1583 = vmatmul.bf16.vlgmr.msrb.gmra.mxu2 %v6778_v55  ;;  %v4998_v55 = vor.u32 %v6290_v16, %v4995_v17  ;;  %v4550_v56 = vor.u32 %v6178_v45, %v4547_v46  ;;  %v4787_v16 = vld [vmem:[#allocation2 + $0x418] sm:$0xf0]  ;;  %v5046_v17 = vor.u32 %v6302_v4, %v5043_v5  ;;  %v290_v4 = vperm.slane %v6843_v52, 1  ;;  %v6313_v5 = vld [vmem:[%s7196_s4 + $0x40] sm:$0xff] }
  0xb7   :  { %1631 = vmatpush.bf16.msra.mxu2 %v4902_v48  ;;  %1597 = vmatmul.bf16.vlgmr.msra.gmra.mxu0 %v6790_v8  ;;  %v4982_v8 = vor.u32 %v6286_v27, %v4979_v28  ;;  %v4675_v48 = vld [vmem:[#allocation2 + $0x338] sm:$0xf0]  ;;  %v1332_v28 = vpop.f32.mrf.mxu3 }
  0xb8   :  { %1645 = vmatpush.bf16.msrb.mxu0 %v5030_v0  ;;  %v4678_v62 = vor.u32 %v6210_v47, %v4675_v48  ;;  %v4531_v0 = vld [vmem:[#allocation2 + $0x218] sm:$0xf0] }
  0xb9   :  { %1605 = vmatpush.bf16.msrb.mxu1 %v4614_v2  ;;  %v1304_v2 = vpop.f32.mrf.mxu1  ;;  %v4534_v10 = vor.u32 %v6174_v63, %v4531_v0  ;;  %v6315_v0 = vld [vmem:[%s7196_s4 + $0x50] sm:$0xff] }
  0xba   :  { %1619 = vmatpush.bf16.msrb.mxu3 %v4742_v6  ;;  %v1318_v6 = vpop.f32.mrf.mxu2 }
  0xbb   :  { %1632 = vmatpush.bf16.msra.mxu2 %v4886_v1  ;;  %v6206_v1 = vld [vmem:[#allocation2 + $0x30c] sm:$0xf] }
  0xbc   :  { %1646 = vmatpush.bf16.msrb.mxu0 %v5014_v13  ;;  %v289_v13 = vperm.slane %v6843_v52, 0 }
  0xbd   :  { %1606 = vmatpush.bf16.msrb.mxu1 %v4598_v15  ;;  %v6238_v15 = vld [vmem:[#allocation2 + $0x40c] sm:$0xf] }
  0xbe   :  { %1620 = vmatpush.bf16.msrb.mxu3 %v4726_v19  ;;  %v4934_v19 = vor.u32 %v6274_v11, %v4931_v12  ;;  %v4790_v20 = vor.u32 %v6238_v15, %v4787_v16  ;;  %v1291_v23 = vadd.f32 %v1290_v61, %v289_v13  ;;  %v6305_v61 = vld [vmem:[%s7196_s4] sm:$0xff] }
  0xbf   :  { %1633 = vmatpush.bf16.msra.mxu2 %v4870_v14  ;;  %v4662_v14 = vor.u32 %v6206_v1, %v4659_v3  ;;  %v1334_v39 = vpop.f32.mrf.mxu3  ;;  %v6314_v3 = vld [vmem:[%s7196_s4 + $0x48] sm:$0xff] }
  0xc0   :  { %1647 = vmatpush.bf16.msrb.mxu0 %v4998_v55  ;;  %v1292_v55 = vpop.f32.mrf.mxu0  ;;  %v1305_v27 = vadd.f32 %v1304_v2, %v1291_v23 }
  0xc1   :  { %1607 = vmatpush.bf16.msrb.mxu1 %v4582_v26  ;;  %v1306_v26 = vpop.f32.mrf.mxu1 }
  0xc2   :  { %1621 = vmatpush.bf16.msrb.mxu3 %v4710_v30  ;;  %v1320_v29 = vpop.f32.mrf.mxu2  ;;  %v1293_v30 = vadd.f32 %v1292_v55, %v289_v13  ;;  %v1319_v32 = vadd.f32 %v1318_v6, %v1305_v27 }
  0xc3   :  { %1634 = vmatpush.bf16.msra.mxu2 %v4854_v25  ;;  %v4918_v25 = vor.u32 %v6270_v21, %v4915_v22 }
  0xc4   :  { %1648 = vmatpush.bf16.msrb.mxu0 %v4982_v8  ;;  %v1307_v33 = vadd.f32 %v1306_v26, %v1293_v30  ;;  %v1333_v8 = vadd.f32 %v1332_v28, %v1319_v32  ;;  %v6327_v28 = vld [vmem:[%s7196_s4 + $0xb0] sm:$0xff] }
  0xc5   :  { %1608 = vmatpush.bf16.msrb.mxu1 %v4566_v38 }
  0xc6   :  { %1622 = vmatpush.bf16.msrb.mxu3 %v4694_v43  ;;  %v1321_v38 = vadd.f32 %v1320_v29, %v1307_v33  ;;  %v6326_v33 = vld [vmem:[%s7196_s4 + $0xa8] sm:$0xff] }
  0xc7   :  { %1635 = vmatpush.bf16.msra.mxu2 %v4838_v36 }
  0xc8   :  { %1649 = vmatpush.bf16.msrb.mxu0 %v4966_v49  ;;  %v1335_v43 = vadd.f32 %v1334_v39, %v1321_v38  ;;  %v6317_v49 = vld [vmem:[%s7196_s4 + $0x60] sm:$0xff]  ;;  %v6322_v39 = vld [vmem:[%s7196_s4 + $0x88] sm:$0xff] }
  0xc9   :  { %1609 = vmatpush.bf16.msrb.mxu1 %v4550_v56 }
  0xca   :  { %1623 = vmatpush.bf16.msrb.mxu3 %v4678_v62  ;;  %v1374_v36 = vpop.f32.mrf.mxu2 }
  0xcb   :  { %1636 = vmatpush.bf16.msra.mxu2 %v4822_v53  ;;  %v6306_v53 = vld [vmem:[%s7196_s4 + $0x8] sm:$0xff] }
  0xcc   :  { %1650 = vmatpush.bf16.msrb.mxu0 %v4950_v7  ;;  %v1346_v34 = vpop.f32.mrf.mxu0 }
  0xcd   :  { %1610 = vmatpush.bf16.msrb.mxu1 %v4534_v10  ;;  %v1360_v35 = vpop.f32.mrf.mxu1  ;;  %v1347_v40 = vadd.f32 %v1346_v34, %v1333_v8  ;;  %v6324_v8 = vld [vmem:[%s7196_s4 + $0x98] sm:$0xff] }
  0xce   :  { %1624 = vmatpush.bf16.msrb.mxu3 %v4662_v14 }
  0xcf   :  { %1637 = vmatpush.bf16.msra.mxu2 %v4806_v9  ;;  %v1361_v45 = vadd.f32 %v1360_v35, %v1347_v40  ;;  %v6325_v35 = vld [vmem:[%s7196_s4 + $0xa0] sm:$0xff] }
  0xd0   :  { %1651 = vmatpush.bf16.msrb.mxu0 %v4934_v19  ;;  %1611 = vmatmul.bf16.vlgmr.msrb.gmra.mxu1 %v6776_v54  ;;  %v6320_v54 = vld [vmem:[%s7196_s4 + $0x78] sm:$0xff]  ;;  %v6321_v40 = vld [vmem:[%s7196_s4 + $0x80] sm:$0xff] }
  0xd1   :  { %1666 = vmatpush.bf16.msra.mxu1 %v5046_v17  ;;  %1625 = vmatmul.bf16.vlgmr.msrb.gmra.mxu3 %v6780_v60  ;;  %v6309_v60 = vld [vmem:[%s7196_s4 + $0x20] sm:$0xff]  ;;  %v1375_v56 = vadd.f32 %v1374_v36, %v1361_v45  ;;  %v6323_v36 = vld [vmem:[%s7196_s4 + $0x90] sm:$0xff] }
  0xd2   :  { %1945 = vmatpush.bf16.msra.mxu3 %v6312_v18  ;;  %v1376_v57 = vpop.f32.mrf.mxu2 }
  0xd3   :  { %1638 = vmatpush.bf16.msra.mxu2 %v4790_v20  ;;  %v1673_v62 = vmax.f32 %v1375_v56, 0.0 }
  0xd4   :  { %1652 = vmatpush.bf16.msrb.mxu0 %v4918_v25  ;;  %v1348_v46 = vpop.f32.mrf.mxu0  ;;  %v1388_v63 = vpop.f32.mrf.mxu3  ;;  %v6328_v25 = vld [vmem:[%s7196_s4 + $0xb8] sm:$0xff] }
  0xd5   :  { %1959 = vmatpush.bf16.msrb.mxu1 %v6320_v54  ;;  %v1349_v47 = vadd.f32 %v1348_v46, %v1335_v43  ;;  %v1362_v48 = vpop.f32.mrf.mxu1  ;;  %v1389_v7 = vadd.f32 %v1388_v63, %v290_v4  ;;  %v291_v43 = vperm.slane %v6843_v52, 2 }
  0xd6   :  { %1946 = vmatpush.bf16.msra.mxu3 %v6311_v24  ;;  %1639 = vmatmul.bf16.vlgmr.msra.gmra.mxu2 %v6816_v37  ;;  %v6319_v37 = vld [vmem:[%s7196_s4 + $0x70] sm:$0xff] }
  0xd7   :  { %1653 = vmatmul.bf16.vlgmr.msrb.gmra.mxu0 %v6818_v42  ;;  %v6308_v42 = vld [vmem:[%s7196_s4 + $0x18] sm:$0xff]  ;;  %v1363_v51 = vadd.f32 %v1362_v48, %v1349_v47  ;;  %1973 = vmatpush.bf16.msrb.mxu2 %v6328_v25  ;;  %v6335_v48 = vld [vmem:[%s7196_s4 + $0xf0] sm:$0xff] }
  0xd8   :  { %v6336_v47 = vld [vmem:[%s7196_s4 + $0xf8] sm:$0xff] }
  0xd9   :  { %1960 = vmatpush.bf16.msrb.mxu1 %v6319_v37  ;;  %v1377_v58 = vadd.f32 %v1376_v57, %v1363_v51  ;;  %1987 = vmatpush.bf16.msra.mxu0 %v6336_v47 }
  0xda   :  { %1947 = vmatpush.bf16.msra.mxu3 %v6310_v31  ;;  %v1402_v2 = vpop.f32.mrf.mxu2 }
  0xdb   :  { %v1677_v59 = vmax.f32 %v1377_v58, 0.0  ;;  %v1403_v11 = vadd.f32 %v1402_v2, %v1389_v7  ;;  %1974 = vmatpush.bf16.msrb.mxu2 %v6327_v28 }
  0xdc   :  { %v1390_v6 = vpop.f32.mrf.mxu3 }
  0xdd   :  { %1961 = vmatpush.bf16.msrb.mxu1 %v6318_v41  ;;  %v1681_v1 = vpack.c.bf16 %v1677_v59, %v1673_v62  ;;  %v1391_v12 = vadd.f32 %v1390_v6, %v290_v4  ;;  %1988 = vmatpush.bf16.msra.mxu0 %v6335_v48 }
  0xde   :  { %1948 = vmatpush.bf16.msra.mxu3 %v6309_v60 }
  0xdf   :  { %1975 = vmatpush.bf16.msrb.mxu2 %v6326_v33 }
  0xe0   :  { %5050 = vmatmul.msk.bf16.vlgmr.msra.gmra.mxu1 %vm1277_vm0, %v6800_v50  ;;  %v6316_v50 = vld [vmem:[%s7196_s4 + $0x58] sm:$0xff] }
  0xe1   :  { %1962 = vmatpush.bf16.msrb.mxu1 %v6317_v49 }
  0xe2   :  { %1949 = vmatpush.bf16.msra.mxu3 %v6308_v42  ;;  %v1404_v10 = vpop.f32.mrf.mxu2 }
  0xe3   :  { %v1405_v15 = vadd.f32 %v1404_v10, %v1391_v12  ;;  %1976 = vmatpush.bf16.msrb.mxu2 %v6325_v35 }
  0xe5   :  { %1963 = vmatpush.bf16.msrb.mxu1 %v6316_v50 }
  0xe6   :  { %1950 = vmatpush.bf16.msra.mxu3 %v6307_v44 }
  0xe7   :  { %1977 = vmatpush.bf16.msrb.mxu2 %v6324_v8 }
  0xe9   :  { %1964 = vmatpush.bf16.msrb.mxu1 %v6315_v0 }
  0xea   :  { %1951 = vmatpush.bf16.msra.mxu3 %v6306_v53 }
  0xeb   :  { %1978 = vmatpush.bf16.msrb.mxu2 %v6323_v36 }
  0xec   :  { %v1416_v9 = vpop.f32.mrf.mxu0 }
  0xed   :  { %1965 = vmatpush.bf16.msrb.mxu1 %v6314_v3  ;;  %v1430_v13 = vpop.f32.mrf.mxu1  ;;  %v1417_v14 = vadd.f32 %v1416_v9, %v1403_v11  ;;  %v6332_v9 = vld [vmem:[%s7196_s4 + $0xd8] sm:$0xff] }
  0xee   :  { %1952 = vmatpush.bf16.msra.mxu3 %v6305_v61  ;;  %v6334_v61 = vld [vmem:[%s7196_s4 + $0xe8] sm:$0xff] }
  0xef   :  { %v1431_v19 = vadd.f32 %v1430_v13, %v1417_v14  ;;  %1979 = vmatpush.bf16.msrb.mxu2 %v6322_v39  ;;  %1989 = vmatpush.bf16.msra.mxu0 %v6334_v61  ;;  %v6331_v14 = vld [vmem:[%s7196_s4 + $0xd0] sm:$0xff] }
  0xf1   :  { %1953 = vmatmul.bf16.vlgmr.msra.gmra.mxu3 %v1681_v1  ;;  %1966 = vmatpush.bf16.msrb.mxu1 %v6313_v5  ;;  %v6333_v1 = vld [vmem:[%s7196_s4 + $0xe0] sm:$0xff] }
  0xf3   :  { %1980 = vmatpush.bf16.msrb.mxu2 %v6321_v40  ;;  %1990 = vmatpush.bf16.msra.mxu0 %v6333_v1 }
  0xf4   :  { %v1444_v16 = vpop.f32.mrf.mxu3  ;;  %v1418_v17 = vpop.f32.mrf.mxu0 }
  0xf5   :  { %v1419_v20 = vadd.f32 %v1418_v17, %v1405_v15  ;;  %v1432_v21 = vpop.f32.mrf.mxu1  ;;  %v1445_v22 = vadd.f32 %v1444_v16, %v1431_v19 }
  0xf7   :  { %v1433_v23 = vadd.f32 %v1432_v21, %v1419_v20  ;;  %1991 = vmatpush.bf16.msra.mxu0 %v6332_v9 }
  0xf9   :  { %v1458_v18 = vpop.f32.mrf.mxu2 }
  0xfa   :  { %v1459_v26 = vadd.f32 %v1458_v18, %v1445_v22  ;;  %v6330_v18 = vld [vmem:[%s7196_s4 + $0xc8] sm:$0xff]  ;;  %v6329_v22 = vld [vmem:[%s7196_s4 + $0xc0] sm:$0xff] }
  0xfb   :  { %1992 = vmatpush.bf16.msra.mxu0 %v6331_v14 }
  0xfc   :  { %v1446_v24 = vpop.f32.mrf.mxu3  ;;  %v1472_v55 = vpop.f32.mrf.mxu0 }
  0xfd   :  { %v1447_v27 = vadd.f32 %v1446_v24, %v1433_v23  ;;  %v1473_v30 = vadd.f32 %v1472_v55, %v1459_v26  ;;  %v292_v23 = vperm.slane %v6843_v52, 3 }
  0xff   :  { %v1674_v60 = vmax.f32 %v1473_v30, 0.0  ;;  %1993 = vmatpush.bf16.msra.mxu0 %v6330_v18 }
 0x101   :  { %v1460_v29 = vpop.f32.mrf.mxu2 }
 0x102   :  { %v1461_v31 = vadd.f32 %v1460_v29, %v1447_v27 }
 0x103   :  { %1994 = vmatpush.bf16.msra.mxu0 %v6329_v22 }
 0x104   :  { %v1474_v54 = vpop.f32.mrf.mxu0 }
 0x105   :  { %v1475_v32 = vadd.f32 %v1474_v54, %v1461_v31 }
 0x107   :  { %v1678_v34 = vmax.f32 %v1475_v32, 0.0 }
 0x109   :  { %v1682_v37 = vpack.c.bf16 %v1678_v34, %v1674_v60 }
 0x10b   :  { %1967 = vmatmul.bf16.vlgmr.msrb.gmra.mxu1 %v1682_v37 }
 0x10d   :  { %v1486_v38 = vpop.f32.mrf.mxu1 }
 0x10e   :  { %v1487_v46 = vadd.f32 %v1486_v38, %v291_v43 }
 0x110   :  { %v1514_v42 = vpop.f32.mrf.mxu0 }
 0x114   :  { %v1500_v41 = vpop.f32.mrf.mxu3 }
 0x115   :  { %v1488_v44 = vpop.f32.mrf.mxu1  ;;  %v1501_v53 = vadd.f32 %v1500_v41, %v1487_v46 }
 0x116   :  { %v1489_v56 = vadd.f32 %v1488_v44, %v291_v43 }
 0x117   :  { %v1515_v50 = vadd.f32 %v1514_v42, %v1501_v53 }
 0x118   :  { %v1516_v45 = vpop.f32.mrf.mxu0 }
 0x119   :  { %v1528_v49 = vpop.f32.mrf.mxu2 }
 0x11a   :  { %v1529_v63 = vadd.f32 %v1528_v49, %v1515_v50  ;;  %v6572_v49 = vld [vmem:[%s7197_s5] ss:$0 sm:$0xff] }
 0x11c   :  { %v1502_v51 = vpop.f32.mrf.mxu3 }
 0x11d   :  { %v1503_v59 = vadd.f32 %v1502_v51, %v1489_v56 }
 0x11f   :  { %v1517_v0 = vadd.f32 %v1516_v45, %v1503_v59 }
 0x120   :  { %v1570_v58 = vpop.f32.mrf.mxu0 }
 0x121   :  { %v1530_v2 = vpop.f32.mrf.mxu2 }
 0x122   :  { %v1531_v6 = vadd.f32 %v1530_v2, %v1517_v0 }
 0x128   :  { %v1572_v5 = vpop.f32.mrf.mxu0 }
 0x12d   :  { %v1542_v57 = vpop.f32.mrf.mxu1 }
 0x12e   :  { %v1543_v3 = vadd.f32 %v1542_v57, %v1529_v63 }
 0x134   :  { %v1556_v62 = vpop.f32.mrf.mxu3  ;;  %v1598_v20 = vpop.f32.mrf.mxu0 }
 0x135   :  { %v1544_v4 = vpop.f32.mrf.mxu1  ;;  %v1557_v7 = vadd.f32 %v1556_v62, %v1543_v3 }
 0x136   :  { %v1545_v10 = vadd.f32 %v1544_v4, %v1531_v6 }
 0x137   :  { %v1571_v12 = vadd.f32 %v1570_v58, %v1557_v7 }
 0x139   :  { %v1675_v16 = vmax.f32 %v1571_v12, 0.0  ;;  %v1584_v19 = vpop.f32.mrf.mxu2  ;;  %v2026_v12 = vld [vmem:[%s7198_s6 + $0x20] sm:$0x33] }
 0x13a   :  { %v1585_v26 = vadd.f32 %v1584_v19, %v292_v23  ;;  %v2052_v14 = vunpack.c.l.b16 %v2026_v12 }
 0x13c   :  { %v1558_v11 = vpop.f32.mrf.mxu3  ;;  %v1600_v25 = vpop.f32.mrf.mxu0  ;;  %v1599_v27 = vadd.f32 %v1598_v20, %v1585_v26  ;;  %v5183_v26 = vld [vmem:[%s7198_s6 + $0x10] sm:$0xf0] }
 0x13d   :  { %v1559_v13 = vadd.f32 %v1558_v11, %v1545_v10 }
 0x13f   :  { %v1573_v15 = vadd.f32 %v1572_v5, %v1559_v13  ;;  %v2027_v13 = vld [vmem:[%s7198_s6 + $0x28] sm:$0x33] }
 0x141   :  { %v1679_v17 = vmax.f32 %v1573_v15, 0.0  ;;  %v1586_v55 = vpop.f32.mrf.mxu2  ;;  %v2053_v15 = vunpack.c.h.b16 %v2026_v12  ;;  %v6372_v12 = vld [vmem:[#allocation4 + $0xf8] sm:$0xf0] }
 0x142   :  { %v1587_v29 = vadd.f32 %v1586_v55, %v292_v23  ;;  %v5181_v23 = vld [vmem:[%s7198_s6] sm:$0xf]  ;;  %v6337_v55 = vld [vmem:[%s7198_s6 + $0x4] sm:$0xf] }
 0x143   :  { %v1683_v21 = vpack.c.bf16 %v1679_v17, %v1675_v16  ;;  %v2054_v16 = vunpack.c.l.b16 %v2027_v13  ;;  %v2060_v17 = vpack.c.b16 %v2052_v14, %v2052_v14  ;;  %v2061_v18 = vpack.c.b16 %v2053_v15, %v2053_v15  ;;  %v6484_v15 = vld [vmem:[#allocation4 + $0x478] sm:$0xf0] }
 0x144   :  { %v1601_v32 = vadd.f32 %v1600_v25, %v1587_v29  ;;  %v5186_v29 = vor.u32 %v6337_v55, %v5183_v26  ;;  %v5285_v55 = vld [vmem:[#allocation4 + $0xa8] sm:$0xf] }
 0x145   :  { %1981 = vmatmul.bf16.vlgmr.msrb.gmra.mxu2 %v1683_v21  ;;  %v2062_v19 = vpack.c.b16 %v2054_v16, %v2054_v16  ;;  %v2074_v20 = vsel %vm2072_vm1, %v2060_v17, 0  ;;  %v2077_v21 = vsel %vm2072_vm1, %v2061_v18, 0  ;;  %v6069_v16 = vld [vmem:[#allocation4 + $0x6c8] sm:$0xf]  ;;  %v6561_v17 = vld [vmem:[#allocation4 + $0x6e0] sm:$0xf0] }
 0x146   :  { %2091 = vmatpush.bf16.msrb.mxu3 %v2074_v20  ;;  %2105 = vmatpush.bf16.msra.mxu1 %v2077_v21  ;;  %v5509_v20 = vld [vmem:[#allocation4 + $0x268] sm:$0xf]  ;;  %v6421_v21 = vld [vmem:[#allocation4 + $0x280] sm:$0xf0] }
 0x147   :  { %v2080_v22 = vsel %vm2072_vm1, %v2062_v19, 0  ;;  %v5733_v26 = vld [vmem:[#allocation4 + $0x428] sm:$0xf] }
 0x148   :  { %2119 = vmatpush.bf16.msra.mxu2 %v2080_v22 }
 0x14a   :  { %2106 = vmatpush.bf16.msra.mxu1 %v5186_v29  ;;  %v6477_v29 = vld [vmem:[#allocation4 + $0x440] sm:$0xf0] }
 0x14d   :  { %v1612_v24 = vpop.f32.mrf.mxu1 }
 0x14e   :  { %v1613_v54 = vadd.f32 %v1612_v24, %v1599_v27  ;;  %v6339_v24 = vld [vmem:[%s7198_s6 + $0xc] sm:$0xf0]  ;;  %v5189_v27 = vld [vmem:[%s7198_s6 + $0x8] sm:$0xf] }
 0x14f   :  { %v5182_v25 = vor.u32 %v6339_v24, %v5181_v23 }
 0x151   :  { %2092 = vmatpush.bf16.msrb.mxu3 %v5182_v25  ;;  %v6365_v25 = vld [vmem:[#allocation4 + $0xc0] sm:$0xf0] }
 0x154   :  { %v1626_v28 = vpop.f32.mrf.mxu3  ;;  %v1654_v33 = vpop.f32.mrf.mxu0 }
 0x155   :  { %v1614_v30 = vpop.f32.mrf.mxu1  ;;  %v1627_v60 = vadd.f32 %v1626_v28, %v1613_v54  ;;  %v6340_v28 = vld [vmem:[%s7198_s6 + $0x14] sm:$0xf0] }
 0x156   :  { %v1615_v34 = vadd.f32 %v1614_v30, %v1601_v32  ;;  %v5190_v30 = vor.u32 %v6340_v28, %v5189_v27  ;;  %v6338_v32 = vld [vmem:[%s7198_s6 + $0xc] sm:$0xf]  ;;  %v6070_v27 = vor.u32 %v6561_v17, %v6069_v16  ;;  %v5510_v28 = vor.u32 %v6421_v21, %v5509_v20  ;;  %v5371_v20 = vld [vmem:[#allocation4 + $0x16c] sm:$0xf0]  ;;  %v6495_v21 = vld [vmem:[#allocation4 + $0x4d4] sm:$0xf] }
 0x158   :  { %2120 = vmatpush.bf16.msra.mxu2 %v5190_v30  ;;  %v6041_v30 = vld [vmem:[#allocation4 + $0x690] sm:$0xf] }
 0x159   :  { %v1640_v31 = vpop.f32.mrf.mxu2 }
 0x15a   :  { %v1641_v36 = vadd.f32 %v1640_v31, %v1627_v60  ;;  %v2055_v31 = vunpack.c.h.b16 %v2027_v13  ;;  %v5761_v13 = vld [vmem:[#allocation4 + $0x460] sm:$0xf] }
 0x15b   :  { %v5762_v24 = vor.u32 %v6484_v15, %v5761_v13  ;;  %v5595_v13 = vld [vmem:[#allocation4 + $0x32c] sm:$0xf0] }
 0x15c   :  { %v1628_v35 = vpop.f32.mrf.mxu3  ;;  %v1655_v42 = vadd.f32 %v1654_v33, %v1641_v36  ;;  %v1656_v39 = vpop.f32.mrf.mxu0  ;;  %v2063_v54 = vpack.c.b16 %v2055_v31, %v2055_v31  ;;  %v5191_v33 = vld [vmem:[%s7198_s6 + $0x18] sm:$0xf0]  ;;  %v6414_v31 = vld [vmem:[#allocation4 + $0x248] sm:$0xf0] }
 0x15d   :  { %v1629_v37 = vadd.f32 %v1628_v35, %v1615_v34  ;;  %v1668_v8 = vpop.f32.mrf.mxu1  ;;  %v5194_v34 = vor.u32 %v6338_v32, %v5191_v33  ;;  %v5621_v35 = vld [vmem:[#allocation4 + $0x348] sm:$0xf]  ;;  %v5734_v32 = vor.u32 %v6477_v29, %v5733_v26  ;;  %v5257_v33 = vld [vmem:[#allocation4 + $0x70] sm:$0xf]  ;;  %v6432_v26 = vld [vmem:[#allocation4 + $0x2dc] sm:$0xf] }
 0x15e   :  { %v1669_v40 = vadd.f32 %v1668_v8, %v1655_v42  ;;  %v2083_v60 = vsel %vm2072_vm1, %v2063_v54, 0  ;;  %v5593_v8 = vld [vmem:[#allocation4 + $0x310] sm:$0xf]  ;;  %v5397_v42 = vld [vmem:[#allocation4 + $0x188] sm:$0xf]  ;;  %v5286_v54 = vor.u32 %v6365_v25, %v5285_v55 }
 0x15f   :  { %2133 = vmatpush.bf16.msra.mxu3 %v2083_v60  ;;  %v6358_v60 = vld [vmem:[#allocation4 + $0x88] sm:$0xf0]  ;;  %v5929_v55 = vld [vmem:[#allocation4 + $0x5b0] sm:$0xf] }
 0x160   :  { %v1676_v45 = vmax.f32 %v1669_v40, 0.0  ;;  %v6526_v25 = vld [vmem:[#allocation4 + $0x5c8] sm:$0xf0] }
 0x161   :  { %v1642_v38 = vpop.f32.mrf.mxu2 }
 0x162   :  { %v1643_v52 = vadd.f32 %v1642_v38, %v1629_v37  ;;  %v6449_v37 = vld [vmem:[#allocation4 + $0x360] sm:$0xf0] }
 0x163   :  { %2134 = vmatpush.bf16.msra.mxu3 %v5194_v34  ;;  %v5622_v38 = vor.u32 %v6449_v37, %v5621_v35  ;;  %v5705_v34 = vld [vmem:[#allocation4 + $0x3f0] sm:$0xf] }
 0x164   :  { %v1657_v41 = vadd.f32 %v1656_v39, %v1643_v52  ;;  %v6442_v52 = vld [vmem:[#allocation4 + $0x328] sm:$0xf0]  ;;  %v6393_v39 = vld [vmem:[#allocation4 + $0x1a0] sm:$0xf0] }
 0x165   :  { %v1670_v43 = vpop.f32.mrf.mxu1  ;;  %v5398_v40 = vor.u32 %v6393_v39, %v5397_v42  ;;  %3591 = vmatpush.bf16.msrb.mxu1 %v5622_v38  ;;  %v6547_v38 = vld [vmem:[#allocation4 + $0x670] sm:$0xf0]  ;;  %v5258_v39 = vor.u32 %v6358_v60, %v5257_v33  ;;  %v6488_v33 = vld [vmem:[#allocation4 + $0x49c] sm:$0xf] }
 0x166   :  { %v1671_v44 = vadd.f32 %v1670_v43, %v1657_v41  ;;  %v5845_v41 = vld [vmem:[#allocation4 + $0x508] sm:$0xf]  ;;  %v6505_v43 = vld [vmem:[#allocation4 + $0x520] sm:$0xf0]  ;;  %v6407_v42 = vld [vmem:[#allocation4 + $0x210] sm:$0xf0] }
 0x167   :  { %3577 = vmatpush.bf16.msrb.mxu0 %v5398_v40 }
 0x168   :  { %v1680_v46 = vmax.f32 %v1671_v44, 0.0  ;;  %v5594_v44 = vor.u32 %v6442_v52, %v5593_v8  ;;  %v6470_v8 = vld [vmem:[#allocation4 + $0x408] sm:$0xf0]  ;;  %v5453_v52 = vld [vmem:[#allocation4 + $0x1f8] sm:$0xf] }
 0x169   :  { %v5706_v40 = vor.u32 %v6470_v8, %v5705_v34  ;;  %v5791_v34 = vld [vmem:[#allocation4 + $0x4b4] sm:$0xf0]  ;;  %v5511_v8 = vld [vmem:[#allocation4 + $0x284] sm:$0xf0] }
 0x16a   :  { %v1684_v47 = vpack.c.bf16 %v1680_v46, %v1676_v45  ;;  %v5846_v45 = vor.u32 %v6505_v43, %v5845_v41  ;;  %v5565_v46 = vld [vmem:[#allocation4 + $0x2d8] sm:$0xf]  ;;  %3592 = vmatpush.bf16.msrb.mxu1 %v5594_v44  ;;  %v6351_v43 = vld [vmem:[#allocation4 + $0x50] sm:$0xf0] }
 0x16b   :  { %v5229_v41 = vld [vmem:[#allocation4 + $0x38] sm:$0xf] }
 0x16c   :  { %1995 = vmatmul.bf16.vlgmr.msra.gmra.mxu0 %v1684_v47  ;;  %v5369_v47 = vld [vmem:[#allocation4 + $0x150] sm:$0xf]  ;;  %3605 = vmatpush.bf16.msrb.mxu2 %v5846_v45  ;;  %v5677_v44 = vld [vmem:[#allocation4 + $0x3b8] sm:$0xf] }
 0x174   :  { %v1954_v48 = vpop.f32.mrf.mxu3 }
 0x175   :  { %v1955_v56 = vadd.f32 %v6572_v49, %v1954_v48  ;;  %v6386_v48 = vld [vmem:[#allocation4 + $0x168] sm:$0xf0] }
 0x17c   :  { %v1956_v50 = vpop.f32.mrf.mxu3 }
 0x17d   :  { %v1957_v63 = vadd.f32 %v6572_v49, %v1956_v50  ;;  %v6435_v49 = vld [vmem:[#allocation4 + $0x2f0] sm:$0xf0]  ;;  %v5341_v50 = vld [vmem:[#allocation4 + $0x118] sm:$0xf] }
 0x188   :  { %v1968_v51 = vpop.f32.mrf.mxu1 }
 0x189   :  { %v1969_v57 = vadd.f32 %v1968_v51, %v1955_v56  ;;  %v5370_v51 = vor.u32 %v6386_v48, %v5369_v47  ;;  %v6498_v56 = vld [vmem:[#allocation4 + $0x4e8] sm:$0xf0]  ;;  %v6463_v47 = vld [vmem:[#allocation4 + $0x3d0] sm:$0xf0]  ;;  %v5985_v48 = vld [vmem:[#allocation4 + $0x620] sm:$0xf] }
 0x18b   :  { %3578 = vmatpush.bf16.msrb.mxu0 %v5370_v51  ;;  %v5425_v51 = vld [vmem:[#allocation4 + $0x1c0] sm:$0xf] }
 0x190   :  { %v1970_v62 = vpop.f32.mrf.mxu1 }
 0x191   :  { %v1971_v2 = vadd.f32 %v1970_v62, %v1957_v63  ;;  %v5789_v62 = vld [vmem:[#allocation4 + $0x498] sm:$0xf]  ;;  %v6491_v63 = vld [vmem:[#allocation4 + $0x4b0] sm:$0xf0] }
 0x1c8   :  { %v1982_v53 = vpop.f32.mrf.mxu2 }
 0x1c9   :  { %v1983_v58 = vadd.f32 %v1982_v53, %v1969_v57  ;;  %v5817_v53 = vld [vmem:[#allocation4 + $0x4d0] sm:$0xf]  ;;  %v2007_v57 = vld [vmem:[%s7193_s1] sm:$0xff] }
 0x1d0   :  { %v1984_v1 = vpop.f32.mrf.mxu2 }
 0x1d1   :  { %v1985_v4 = vadd.f32 %v1984_v1, %v1971_v2  ;;  %v5566_v1 = vor.u32 %v6435_v49, %v5565_v46  ;;  %v5454_v46 = vor.u32 %v6407_v42, %v5453_v52  ;;  %v6540_v49 = vld [vmem:[#allocation4 + $0x638] sm:$0xf0]  ;;  %v6519_v52 = vld [vmem:[#allocation4 + $0x590] sm:$0xf0] }
 0x1d3   :  { %3593 = vmatpush.bf16.msrb.mxu1 %v5566_v1  ;;  %v5986_v1 = vor.u32 %v6540_v49, %v5985_v48  ;;  %v5873_v49 = vld [vmem:[#allocation4 + $0x540] sm:$0xf] }
 0x1e9   :  { %v1996_v59 = vpop.f32.mrf.mxu0 }
 0x1ea   :  { %v6954_v61 = vadd.f32 %v1996_v59, %v1983_v58  ;;  %v5818_v58 = vor.u32 %v6498_v56, %v5817_v53  ;;  %v6379_v59 = vld [vmem:[#allocation4 + $0x130] sm:$0xf0]  ;;  %v6400_v53 = vld [vmem:[#allocation4 + $0x1d8] sm:$0xf0]  ;;  %v6446_v56 = vld [vmem:[#allocation4 + $0x34c] sm:$0xf] }
 0x1ec   :  { %v2001_v0 = vmul.f32 0.5, %v6954_v61  ;;  %3969 = vst [vmem:[%s7202_s10] sm:$0xff] %v6954_v61  ;;  %3606 = vmatpush.bf16.msrb.mxu2 %v5818_v58  ;;  %v5230_v58 = vor.u32 %v6351_v43, %v5229_v41  ;;  %v6481_v41 = vld [vmem:[#allocation4 + $0x464] sm:$0xf] }
 0x1ee   :  { %v2003_v3 = vmul.f32 1.442695, %v2001_v0  ;;  %v2008_v0 = vld [vmem:[%s7193_s1 + $0x8] sm:$0xff] }
 0x1f0   :  { %6573 = vpow2.f32 %v2003_v3  ;;  %v5537_v3 = vld [vmem:[#allocation4 + $0x2a0] sm:$0xf] }
 0x1f1   :  { %v1998_v5 = vpop.f32.mrf.mxu0 }
 0x1f2   :  { %v6961_v6 = vadd.f32 %v1998_v5, %v1985_v4  ;;  %v6428_v4 = vld [vmem:[#allocation4 + $0x2b8] sm:$0xf0]  ;;  %v5342_v5 = vor.u32 %v6379_v59, %v5341_v50  ;;  %v5201_v50 = vld [vmem:[#allocation4] sm:$0xf]  ;;  %v5678_v59 = vor.u32 %v6463_v47, %v5677_v44  ;;  %v5483_v47 = vld [vmem:[#allocation4 + $0x24c] sm:$0xf0] }
 0x1f3   :  { %v5538_v14 = vor.u32 %v6428_v4, %v5537_v3  ;;  %v6390_v3 = vld [vmem:[#allocation4 + $0x18c] sm:$0xf]  ;;  %v5399_v4 = vld [vmem:[#allocation4 + $0x1a4] sm:$0xf0]  ;;  %v5763_v44 = vld [vmem:[#allocation4 + $0x47c] sm:$0xf0] }
 0x1f4   :  { %v2002_v7 = vmul.f32 0.5, %v6961_v6  ;;  %3970 = vst [vmem:[%s7202_s10 + $0x8] sm:$0xff] %v6961_v6  ;;  %3579 = vmatpush.bf16.msrb.mxu0 %v5342_v5  ;;  %v6502_v5 = vld [vmem:[#allocation4 + $0x50c] sm:$0xf]  ;;  %v5402_v16 = vor.u32 %v6390_v3, %v5399_v4 }
 0x1f5   :  { %3594 = vmatpush.bf16.msrb.mxu1 %v5538_v14 }
 0x1f6   :  { %v6574_v9 = vpop.eup %6573  ;;  %v2005_v10 = vmul.f32 1.442695, %v2002_v7 }
 0x1f7   :  { %2011 = vrot.lane.b32.xlu0 %v6574_v9, %s6691_s17  ;;  %v5790_v9 = vor.u32 %v6491_v63, %v5789_v62  ;;  %v6344_v62 = vld [vmem:[#allocation4 + $0x18] sm:$0xf0]  ;;  %v5649_v63 = vld [vmem:[#allocation4 + $0x380] sm:$0xf] }
 0x1f8   :  { %6575 = vpow2.f32 %v2005_v10  ;;  %v5202_v14 = vor.u32 %v6344_v62, %v5201_v50  ;;  %v6474_v50 = vld [vmem:[#allocation4 + $0x42c] sm:$0xf] }
 0x1f9   :  { %3607 = vmatpush.bf16.msrb.mxu2 %v5790_v9  ;;  %3595 = vmatpush.bf16.msrb.mxu1 %v5510_v28  ;;  %v5847_v9 = vld [vmem:[#allocation4 + $0x524] sm:$0xf0]  ;;  %v6558_v62 = vld [vmem:[#allocation4 + $0x6cc] sm:$0xf] }
 0x1fa   :  { %v5850_v17 = vor.u32 %v6502_v5, %v5847_v9  ;;  %v6355_v5 = vld [vmem:[#allocation4 + $0x74] sm:$0xf] }
 0x1fb   :  { %v6467_v9 = vld [vmem:[#allocation4 + $0x3f4] sm:$0xf] }
 0x1fd   :  { %3608 = vmatpush.bf16.msrb.mxu2 %v5762_v24  ;;  %v5819_v24 = vld [vmem:[#allocation4 + $0x4ec] sm:$0xf0] }
 0x1fe   :  { %v6576_v11 = vpop.eup %6575  ;;  %v5822_v29 = vor.u32 %v6495_v21, %v5819_v24  ;;  %v6460_v21 = vld [vmem:[#allocation4 + $0x3bc] sm:$0xf]  ;;  %v5679_v24 = vld [vmem:[#allocation4 + $0x3d4] sm:$0xf0] }
 0x1ff   :  { %2013 = vrot.lane.b32.xlu0 %v6576_v11, %s6691_s17  ;;  %v5313_v11 = vld [vmem:[#allocation4 + $0xe0] sm:$0xf] }
 0x200   :  { %v5314_v22 = vor.u32 %v6372_v12, %v5313_v11  ;;  %v6533_v11 = vld [vmem:[#allocation4 + $0x600] sm:$0xf0]  ;;  %v6439_v12 = vld [vmem:[#allocation4 + $0x314] sm:$0xf] }
 0x201   :  { %3609 = vmatpush.bf16.msrb.mxu2 %v5734_v32  ;;  %v5343_v32 = vld [vmem:[#allocation4 + $0x134] sm:$0xf0] }
 0x202   :  { %3580 = vmatpush.bf16.msrb.mxu0 %v5314_v22  ;;  %v5598_v22 = vor.u32 %v6439_v12, %v5595_v13  ;;  %v6551_v12 = vld [vmem:[#allocation4 + $0x694] sm:$0xf]  ;;  %v6043_v13 = vld [vmem:[#allocation4 + $0x6ac] sm:$0xf0] }
 0x205   :  { %3610 = vmatpush.bf16.msrb.mxu2 %v5706_v40  ;;  %v5315_v40 = vld [vmem:[#allocation4 + $0xfc] sm:$0xf0] }
 0x206   :  { %3581 = vmatpush.bf16.msrb.mxu0 %v5286_v54  ;;  %v6376_v54 = vld [vmem:[#allocation4 + $0x11c] sm:$0xf] }
 0x207   :  { %v5346_v60 = vor.u32 %v6376_v54, %v5343_v32 }
 0x209   :  { %3611 = vmatpush.bf16.msrb.mxu2 %v5678_v59  ;;  %v5735_v59 = vld [vmem:[#allocation4 + $0x444] sm:$0xf0] }
 0x20a   :  { %3582 = vmatpush.bf16.msrb.mxu0 %v5258_v39  ;;  %v6369_v39 = vld [vmem:[#allocation4 + $0xe4] sm:$0xf] }
 0x20b   :  { %v5318_v43 = vor.u32 %v6369_v39, %v5315_v40 }
 0x20e   :  { %3583 = vmatpush.bf16.msrb.mxu0 %v5230_v58 }
 0x212   :  { %3584 = vmatpush.bf16.msrb.mxu0 %v5202_v14 }
 0x216   :  { %3633 = vmatpush.bf16.msra.mxu0 %v5402_v16  ;;  %v6397_v16 = vld [vmem:[#allocation4 + $0x1c4] sm:$0xf] }
 0x269   :  { %v2012_v36 = vpop.permute.xlu0 %2011 }
 0x26a   :  { %v2017_v2 = vmul.f32 %v2012_v36, %v2007_v57  ;;  %v6013_v36 = vld [vmem:[#allocation4 + $0x658] sm:$0xf]  ;;  %v5623_v57 = vld [vmem:[#allocation4 + $0x364] sm:$0xf0] }
 0x26b   :  { %v6014_v45 = vor.u32 %v6547_v38, %v6013_v36  ;;  %v5901_v38 = vld [vmem:[#allocation4 + $0x578] sm:$0xf] }
 0x26c   :  { %v2019_v18 = vadd.f32 %v2017_v2, %v6954_v61  ;;  %v6554_v61 = vld [vmem:[#allocation4 + $0x6a8] sm:$0xf0]  ;;  %v5426_v2 = vor.u32 %v6400_v53, %v5425_v51  ;;  %v5902_v42 = vor.u32 %v6519_v52, %v5901_v38  ;;  %v6512_v51 = vld [vmem:[#allocation4 + $0x558] sm:$0xf0]  ;;  %v5903_v38 = vld [vmem:[#allocation4 + $0x594] sm:$0xf0] }
 0x26d   :  { %v6042_v35 = vor.u32 %v6554_v61, %v6041_v30  ;;  %v5930_v30 = vor.u32 %v6526_v25, %v5929_v55  ;;  %v5874_v53 = vor.u32 %v6512_v51, %v5873_v49  ;;  %v6544_v55 = vld [vmem:[#allocation4 + $0x65c] sm:$0xf]  ;;  %v6015_v25 = vld [vmem:[#allocation4 + $0x674] sm:$0xf0]  ;;  %v7023_v52 = vld [vmem:[%s7199_s7] sm:$0xf] }
 0x26e   :  { %v2031_v40 = vperm.slane %v7023_v52, 1  ;;  %v2030_v49 = vperm.slane %v7023_v52, 0 }
 0x271   :  { %v2014_v7 = vpop.permute.xlu0 %2013 }
 0x272   :  { %v2018_v10 = vmul.f32 %v2014_v7, %v2008_v0  ;;  %v6456_v0 = vld [vmem:[#allocation4 + $0x398] sm:$0xf0]  ;;  %v5626_v7 = vor.u32 %v6446_v56, %v5623_v57  ;;  %v6362_v56 = vld [vmem:[#allocation4 + $0xac] sm:$0xf]  ;;  %v5287_v57 = vld [vmem:[#allocation4 + $0xc4] sm:$0xf0] }
 0x273   :  { %v5650_v15 = vor.u32 %v6456_v0, %v5649_v63  ;;  %v5290_v58 = vor.u32 %v6362_v56, %v5287_v57  ;;  %v5738_v63 = vor.u32 %v6474_v50, %v5735_v59  ;;  %v6071_v0 = vld [vmem:[#allocation4 + $0x6e4] sm:$0xf0]  ;;  %v6450_v56 = vld [vmem:[#allocation4 + $0x368] sm:$0xf0]  ;;  %v2032_v57 = vperm.slane %v7023_v52, 2 }
 0x274   :  { %v2020_v19 = vadd.f32 %v2018_v10, %v6961_v6  ;;  %v5481_v6 = vld [vmem:[#allocation4 + $0x230] sm:$0xf]  ;;  %v5957_v10 = vld [vmem:[#allocation4 + $0x5e8] sm:$0xf]  ;;  %v6074_v3 = vor.u32 %v6558_v62, %v6071_v0  ;;  %v5601_v0 = vld [vmem:[#allocation4 + $0x318] sm:$0xf] }
 0x275   :  { %v5482_v37 = vor.u32 %v6414_v31, %v5481_v6  ;;  %3612 = vmatpush.bf16.msrb.mxu2 %v5650_v15  ;;  %v6425_v6 = vld [vmem:[#allocation4 + $0x2a4] sm:$0xf]  ;;  %v5539_v31 = vld [vmem:[#allocation4 + $0x2bc] sm:$0xf0]  ;;  %v6046_v15 = vor.u32 %v6551_v12, %v6043_v13  ;;  %v5853_v12 = vld [vmem:[#allocation4 + $0x510] sm:$0xf] }
 0x276   :  { %v7010_v23 = vpack.c.bf16 %v2020_v19, %v2019_v18  ;;  %v5958_v18 = vor.u32 %v6533_v11, %v5957_v10  ;;  %v6383_v19 = vld [vmem:[#allocation4 + $0x154] sm:$0xf]  ;;  %v5707_v11 = vld [vmem:[#allocation4 + $0x40c] sm:$0xf0]  ;;  %v6506_v13 = vld [vmem:[#allocation4 + $0x528] sm:$0xf0] }
 0x277   :  { %3596 = vmatpush.bf16.msrb.mxu1 %v5482_v37  ;;  %v5374_v28 = vor.u32 %v6383_v19, %v5371_v20  ;;  %v6418_v37 = vld [vmem:[#allocation4 + $0x26c] sm:$0xf]  ;;  %v5710_v14 = vor.u32 %v6467_v9, %v5707_v11  ;;  %v6348_v19 = vld [vmem:[#allocation4 + $0x3c] sm:$0xf]  ;;  %v5231_v20 = vld [vmem:[#allocation4 + $0x54] sm:$0xf0] }
 0x278   :  { %5195 = vmatmul.msk.bf16.vlgmr.msrb.gmra.mxu3 %vm2068_vm2, %v7010_v23  ;;  %5196 = vmatmul.msk.bf16.vlgmr.msra.gmra.mxu1 %vm2068_vm2, %v7010_v23  ;;  %v5514_v36 = vor.u32 %v6418_v37, %v5511_v8  ;;  %v5931_v37 = vld [vmem:[#allocation4 + $0x5cc] sm:$0xf0]  ;;  %v6394_v9 = vld [vmem:[#allocation4 + $0x1a8] sm:$0xf0] }
 0x279   :  { %5197 = vmatmul.msk.bf16.vlgmr.msra.gmra.mxu2 %vm2068_vm2, %v7010_v23  ;;  %3619 = vmatpush.bf16.msrb.mxu3 %v6070_v27  ;;  %v5567_v27 = vld [vmem:[#allocation4 + $0x2f4] sm:$0xf0] }
 0x27a   :  { %3661 = vmatpush.bf16.msra.mxu2 %v5850_v17  ;;  %v5570_v61 = vor.u32 %v6432_v26, %v5567_v27  ;;  %3634 = vmatpush.bf16.msra.mxu0 %v5374_v28  ;;  %v5427_v17 = vld [vmem:[#allocation4 + $0x1dc] sm:$0xf0]  ;;  %v5682_v26 = vor.u32 %v6460_v21, %v5679_v24  ;;  %v6018_v27 = vor.u32 %v6544_v55, %v6015_v25  ;;  %v6341_v28 = vld [vmem:[#allocation4 + $0x4] sm:$0xf]  ;;  %v5377_v24 = vld [vmem:[#allocation4 + $0x158] sm:$0xf] }
 0x27b   :  { %3597 = vmatpush.bf16.msrb.mxu1 %v5454_v46  ;;  %v6411_v46 = vld [vmem:[#allocation4 + $0x234] sm:$0xf] }
 0x27c   :  { %v5486_v48 = vor.u32 %v6411_v46, %v5483_v47  ;;  %v6387_v55 = vld [vmem:[#allocation4 + $0x170] sm:$0xf0] }
 0x27d   :  { %3620 = vmatpush.bf16.msrb.mxu3 %v6042_v35  ;;  %v5794_v35 = vor.u32 %v6488_v33, %v5791_v34  ;;  %v6530_v33 = vld [vmem:[#allocation4 + $0x5ec] sm:$0xf] }
 0x27e   :  { %3662 = vmatpush.bf16.msra.mxu2 %v5822_v29  ;;  %3635 = vmatpush.bf16.msra.mxu0 %v5346_v60  ;;  %v5203_v29 = vld [vmem:[#allocation4 + $0x1c] sm:$0xf0]  ;;  %v5959_v60 = vld [vmem:[#allocation4 + $0x604] sm:$0xf0] }
 0x27f   :  { %3598 = vmatpush.bf16.msrb.mxu1 %v5426_v2  ;;  %v5455_v2 = vld [vmem:[#allocation4 + $0x214] sm:$0xf0]  ;;  %v5962_v34 = vor.u32 %v6530_v33, %v5959_v60  ;;  %v5797_v33 = vld [vmem:[#allocation4 + $0x4a0] sm:$0xf]  ;;  %v6492_v60 = vld [vmem:[#allocation4 + $0x4b8] sm:$0xf0] }
 0x281   :  { %3621 = vmatpush.bf16.msrb.mxu3 %v6014_v45  ;;  %v5766_v45 = vor.u32 %v6481_v41, %v5763_v44  ;;  %v6509_v41 = vld [vmem:[#allocation4 + $0x544] sm:$0xf] }
 0x282   :  { %3663 = vmatpush.bf16.msra.mxu2 %v5794_v35  ;;  %3636 = vmatpush.bf16.msra.mxu0 %v5318_v43  ;;  %v6523_v35 = vld [vmem:[#allocation4 + $0x5b4] sm:$0xf]  ;;  %v5875_v43 = vld [vmem:[#allocation4 + $0x55c] sm:$0xf0] }
 0x283   :  { %3647 = vmatpush.bf16.msra.mxu1 %v5626_v7  ;;  %v5259_v7 = vld [vmem:[#allocation4 + $0x8c] sm:$0xf0]  ;;  %v5934_v8 = vor.u32 %v6523_v35, %v5931_v37  ;;  %v5878_v44 = vor.u32 %v6509_v41, %v5875_v43  ;;  %v6422_v37 = vld [vmem:[#allocation4 + $0x288] sm:$0xf0]  ;;  %v6485_v41 = vld [vmem:[#allocation4 + $0x480] sm:$0xf0] }
 0x284   :  { %v5262_v10 = vor.u32 %v6355_v5, %v5259_v7  ;;  %v5405_v7 = vld [vmem:[#allocation4 + $0x190] sm:$0xf] }
 0x285   :  { %3622 = vmatpush.bf16.msrb.mxu3 %v5986_v1  ;;  %v6404_v1 = vld [vmem:[#allocation4 + $0x1fc] sm:$0xf]  ;;  %v5517_v35 = vld [vmem:[#allocation4 + $0x270] sm:$0xf] }
 0x286   :  { %3664 = vmatpush.bf16.msra.mxu2 %v5766_v45  ;;  %3637 = vmatpush.bf16.msra.mxu0 %v5290_v58  ;;  %v5458_v4 = vor.u32 %v6404_v1, %v5455_v2  ;;  %v6443_v1 = vld [vmem:[#allocation4 + $0x330] sm:$0xf0] }
 0x287   :  { %3648 = vmatpush.bf16.msra.mxu1 %v5598_v22  ;;  %v5234_v22 = vor.u32 %v6348_v19, %v5231_v20  ;;  %v5602_v11 = vor.u32 %v6443_v1, %v5601_v0  ;;  %v5406_v20 = vor.u32 %v6394_v9, %v5405_v7  ;;  %v5461_v0 = vld [vmem:[#allocation4 + $0x200] sm:$0xf]  ;;  %v6408_v1 = vld [vmem:[#allocation4 + $0x218] sm:$0xf0]  ;;  %v5265_v7 = vld [vmem:[#allocation4 + $0x78] sm:$0xf] }
 0x288   :  { %5198 = vmatmul.msk.bf16.vlgmr.msra.gmra.mxu3 %vm2068_vm2, %v7010_v23  ;;  %v5542_v23 = vor.u32 %v6425_v6, %v5539_v31  ;;  %v5651_v6 = vld [vmem:[#allocation4 + $0x39c] sm:$0xf0]  ;;  %v6537_v31 = vld [vmem:[#allocation4 + $0x624] sm:$0xf]  ;;  %v6359_v9 = vld [vmem:[#allocation4 + $0x90] sm:$0xf0] }
 0x289   :  { %3623 = vmatpush.bf16.msrb.mxu3 %v5958_v18  ;;  %v5430_v18 = vor.u32 %v6397_v16, %v5427_v17  ;;  %v5573_v16 = vld [vmem:[#allocation4 + $0x2e0] sm:$0xf]  ;;  %v6436_v17 = vld [vmem:[#allocation4 + $0x2f8] sm:$0xf0] }
 0x28a   :  { %3665 = vmatpush.bf16.msra.mxu2 %v5738_v63  ;;  %3638 = vmatpush.bf16.msra.mxu0 %v5262_v10 }
 0x28b   :  { %3649 = vmatpush.bf16.msra.mxu1 %v5570_v61  ;;  %v5206_v61 = vor.u32 %v6341_v28, %v5203_v29  ;;  %v6499_v28 = vld [vmem:[#allocation4 + $0x4f0] sm:$0xf0]  ;;  %v5545_v29 = vld [vmem:[#allocation4 + $0x2a8] sm:$0xf] }
 0x28d   :  { %3624 = vmatpush.bf16.msrb.mxu3 %v5930_v30  ;;  %v6453_v30 = vld [vmem:[#allocation4 + $0x384] sm:$0xf] }
 0x28e   :  { %3666 = vmatpush.bf16.msra.mxu2 %v5710_v14  ;;  %3639 = vmatpush.bf16.msra.mxu0 %v5234_v22  ;;  %v5654_v54 = vor.u32 %v6453_v30, %v5651_v6  ;;  %v5854_v22 = vor.u32 %v6506_v13, %v5853_v12  ;;  %v6429_v30 = vld [vmem:[#allocation4 + $0x2c0] sm:$0xf0]  ;;  %v5378_v6 = vor.u32 %v6387_v55, %v5377_v24  ;;  %v6471_v12 = vld [vmem:[#allocation4 + $0x410] sm:$0xf0]  ;;  %v6049_v13 = vld [vmem:[#allocation4 + $0x698] sm:$0xf] }
 0x28f   :  { %3650 = vmatpush.bf16.msra.mxu1 %v5542_v23  ;;  %v5987_v23 = vld [vmem:[#allocation4 + $0x63c] sm:$0xf0]  ;;  %v6352_v55 = vld [vmem:[#allocation4 + $0x58] sm:$0xf0] }
 0x290   :  { %v5990_v32 = vor.u32 %v6537_v31, %v5987_v23  ;;  %v5349_v23 = vld [vmem:[#allocation4 + $0x120] sm:$0xf] }
 0x291   :  { %3625 = vmatpush.bf16.msrb.mxu3 %v5902_v42  ;;  %v5237_v24 = vld [vmem:[#allocation4 + $0x40] sm:$0xf] }
 0x292   :  { %3667 = vmatpush.bf16.msra.mxu2 %v5682_v26  ;;  %3640 = vmatpush.bf16.msra.mxu0 %v5206_v61  ;;  %v5574_v26 = vor.u32 %v6436_v17, %v5573_v16  ;;  %v6401_v16 = vld [vmem:[#allocation4 + $0x1e0] sm:$0xf0]  ;;  %v5266_v17 = vor.u32 %v6359_v9, %v5265_v7  ;;  %v5351_v9 = vld [vmem:[#allocation4 + $0x13c] sm:$0xf0] }
 0x293   :  { %3651 = vmatpush.bf16.msra.mxu1 %v5514_v36  ;;  %v6516_v36 = vld [vmem:[#allocation4 + $0x57c] sm:$0xf] }
 0x294   :  { %v5906_v39 = vor.u32 %v6516_v36, %v5903_v38  ;;  %v5798_v36 = vor.u32 %v6492_v60, %v5797_v33  ;;  %v5321_v38 = vld [vmem:[#allocation4 + $0xe8] sm:$0xf]  ;;  %v6345_v60 = vld [vmem:[#allocation4 + $0x20] sm:$0xf0] }
 0x295   :  { %3626 = vmatpush.bf16.msrb.mxu3 %v5874_v53  ;;  %v5629_v53 = vld [vmem:[#allocation4 + $0x350] sm:$0xf] }
 0x296   :  { %3668 = vmatpush.bf16.msra.mxu2 %v5654_v54  ;;  %v5630_v59 = vor.u32 %v6450_v56, %v5629_v53  ;;  %v6380_v54 = vld [vmem:[#allocation4 + $0x138] sm:$0xf0]  ;;  %v5741_v53 = vld [vmem:[#allocation4 + $0x430] sm:$0xf] }
 0x297   :  { %3652 = vmatpush.bf16.msra.mxu1 %v5486_v48 }
 0x299   :  { %3675 = vmatpush.bf16.msra.mxu3 %v6074_v3 }
 0x29b   :  { %3653 = vmatpush.bf16.msra.mxu1 %v5458_v4 }
 0x29d   :  { %3676 = vmatpush.bf16.msra.mxu3 %v6046_v15 }
 0x29f   :  { %3654 = vmatpush.bf16.msra.mxu1 %v5430_v18 }
 0x2a1   :  { %3677 = vmatpush.bf16.msra.mxu3 %v6018_v27  ;;  %v5825_v27 = vld [vmem:[#allocation4 + $0x4d8] sm:$0xf] }
 0x2a2   :  { %v5826_v31 = vor.u32 %v6499_v28, %v5825_v27  ;;  %v6464_v28 = vld [vmem:[#allocation4 + $0x3d8] sm:$0xf0] }
 0x2a5   :  { %3678 = vmatpush.bf16.msra.mxu3 %v5990_v32  ;;  %v5546_v32 = vor.u32 %v6429_v30, %v5545_v29  ;;  %v6021_v29 = vld [vmem:[#allocation4 + $0x660] sm:$0xf]  ;;  %v6548_v30 = vld [vmem:[#allocation4 + $0x678] sm:$0xf0] }
 0x2a6   :  { %v6022_v33 = vor.u32 %v6548_v30, %v6021_v29  ;;  %v5881_v29 = vld [vmem:[#allocation4 + $0x548] sm:$0xf] }
 0x2a9   :  { %3679 = vmatpush.bf16.msra.mxu3 %v5962_v34  ;;  %v2033_v34 = vperm.slane %v7023_v52, 3 }
 0x2ad   :  { %3680 = vmatpush.bf16.msra.mxu3 %v5934_v8  ;;  %v5350_v8 = vor.u32 %v6380_v54, %v5349_v23  ;;  %v5603_v23 = vld [vmem:[#allocation4 + $0x334] sm:$0xf0]  ;;  %v5209_v54 = vld [vmem:[#allocation4 + $0x8] sm:$0xf] }
 0x2b1   :  { %3681 = vmatpush.bf16.msra.mxu3 %v5906_v39  ;;  %v5518_v39 = vor.u32 %v6422_v37, %v5517_v35  ;;  %v6457_v35 = vld [vmem:[#allocation4 + $0x3a0] sm:$0xf0]  ;;  %v5993_v37 = vld [vmem:[#allocation4 + $0x628] sm:$0xf] }
 0x2b5   :  { %3682 = vmatpush.bf16.msra.mxu3 %v5878_v44  ;;  %v5489_v44 = vld [vmem:[#allocation4 + $0x238] sm:$0xf] }
 0x2f5   :  { %v2108_v42 = vpop.f32.mrf.mxu1 }
 0x2f6   :  { %v2109_v46 = vadd.f32 %v2108_v42, %v2031_v40  ;;  %v6373_v42 = vld [vmem:[#allocation4 + $0x100] sm:$0xf0] }
 0x2f8   :  { %v2142_v58 = vmax.f32 %v2109_v46, 0.0 }
 0x2fb   :  { %v2094_v45 = vpop.f32.mrf.mxu3 }
 0x2fc   :  { %v2122_v47 = vpop.f32.mrf.mxu2  ;;  %v2095_v62 = vadd.f32 %v2094_v45, %v2030_v49  ;;  %v6415_v45 = vld [vmem:[#allocation4 + $0x250] sm:$0xf0] }
 0x2fd   :  { %v2110_v48 = vpop.f32.mrf.mxu1  ;;  %v2123_v2 = vadd.f32 %v2122_v47, %v2032_v57  ;;  %v5322_v47 = vor.u32 %v6373_v42, %v5321_v38  ;;  %v5490_v56 = vor.u32 %v6415_v45, %v5489_v44  ;;  %v5407_v42 = vld [vmem:[#allocation4 + $0x1ac] sm:$0xf0]  ;;  %v5575_v44 = vld [vmem:[#allocation4 + $0x2fc] sm:$0xf0] }
 0x2fe   :  { %v2111_v51 = vadd.f32 %v2110_v48, %v2031_v40  ;;  %v2141_v14 = vmax.f32 %v2095_v62, 0.0  ;;  %v5769_v40 = vld [vmem:[#allocation4 + $0x468] sm:$0xf] }
 0x2ff   :  { %v2143_v18 = vmax.f32 %v2123_v2, 0.0  ;;  %v5770_v48 = vor.u32 %v6485_v41, %v5769_v40  ;;  %v5855_v40 = vld [vmem:[#allocation4 + $0x52c] sm:$0xf0]  ;;  %v5210_v41 = vor.u32 %v6345_v60, %v5209_v54  ;;  %v6559_v60 = vld [vmem:[#allocation4 + $0x6d4] sm:$0xf] }
 0x300   :  { %v2146_v50 = vmax.f32 %v2111_v51, 0.0  ;;  %v6366_v51 = vld [vmem:[#allocation4 + $0xc8] sm:$0xf0] }
 0x302   :  { %v7028_v63 = vpack.c.bf16 %v2146_v50, %v2142_v58  ;;  %v6077_v58 = vld [vmem:[#allocation4 + $0x6d0] sm:$0xf]  ;;  %v6562_v50 = vld [vmem:[#allocation4 + $0x6e8] sm:$0xf0] }
 0x303   :  { %v2096_v3 = vpop.f32.mrf.mxu3 }
 0x304   :  { %v2097_v4 = vadd.f32 %v2096_v3, %v2030_v49  ;;  %v2124_v5 = vpop.f32.mrf.mxu2  ;;  %3599 = vmatmul.bf16.vlgmr.msrb.gmra.mxu1 %v7028_v63  ;;  %v5293_v49 = vld [vmem:[#allocation4 + $0xb0] sm:$0xf] }
 0x305   :  { %v2125_v10 = vadd.f32 %v2124_v5, %v2032_v57  ;;  %3703 = vmatpush.bf16.msrb.mxu1 %v5630_v59  ;;  %v6478_v57 = vld [vmem:[#allocation4 + $0x448] sm:$0xf0]  ;;  %v5294_v2 = vor.u32 %v6366_v51, %v5293_v49  ;;  %v6078_v5 = vor.u32 %v6562_v50, %v6077_v58  ;;  %v6384_v51 = vld [vmem:[#allocation4 + $0x15c] sm:$0xf]  ;;  %v5827_v58 = vld [vmem:[#allocation4 + $0x4f4] sm:$0xf0] }
 0x306   :  { %v2145_v15 = vmax.f32 %v2097_v4, 0.0  ;;  %v5742_v4 = vor.u32 %v6478_v57, %v5741_v53  ;;  %v6534_v49 = vld [vmem:[#allocation4 + $0x608] sm:$0xf0]  ;;  %v6496_v57 = vld [vmem:[#allocation4 + $0x4dc] sm:$0xf] }
 0x307   :  { %v2147_v19 = vmax.f32 %v2125_v10, 0.0  ;;  %v5713_v10 = vld [vmem:[#allocation4 + $0x3f8] sm:$0xf]  ;;  %v6426_v50 = vld [vmem:[#allocation4 + $0x2ac] sm:$0xf] }
 0x308   :  { %v7031_v21 = vpack.c.bf16 %v2145_v15, %v2141_v14  ;;  %v6555_v14 = vld [vmem:[#allocation4 + $0x6b0] sm:$0xf0]  ;;  %v5433_v15 = vld [vmem:[#allocation4 + $0x1c8] sm:$0xf] }
 0x309   :  { %v7033_v25 = vpack.c.bf16 %v2147_v19, %v2143_v18  ;;  %3704 = vmatpush.bf16.msrb.mxu1 %v5602_v11  ;;  %v5462_v11 = vor.u32 %v6408_v1, %v5461_v0  ;;  %v6447_v18 = vld [vmem:[#allocation4 + $0x354] sm:$0xf]  ;;  %v5631_v19 = vld [vmem:[#allocation4 + $0x36c] sm:$0xf0]  ;;  %v5434_v27 = vor.u32 %v6401_v16, %v5433_v15  ;;  %v5830_v1 = vor.u32 %v6496_v57, %v5827_v58 }
 0x30a   :  { %3585 = vmatmul.bf16.vlgmr.msrb.gmra.mxu0 %v7031_v21 }
 0x30b   :  { %3613 = vmatmul.bf16.vlgmr.msrb.gmra.mxu2 %v7033_v25  ;;  %3689 = vmatpush.bf16.msrb.mxu0 %v5406_v20  ;;  %v2136_v61 = vpop.f32.mrf.mxu3  ;;  %v5714_v20 = vor.u32 %v6471_v12, %v5713_v10  ;;  %v6489_v10 = vld [vmem:[#allocation4 + $0x4a4] sm:$0xf]  ;;  %v6419_v12 = vld [vmem:[#allocation4 + $0x274] sm:$0xf] }
 0x30c   :  { %3717 = vmatpush.bf16.msrb.mxu2 %v5854_v22  ;;  %v2137_v43 = vadd.f32 %v2136_v61, %v2033_v34  ;;  %v6050_v22 = vor.u32 %v6555_v14, %v6049_v13  ;;  %v5634_v61 = vor.u32 %v6447_v18, %v5631_v19  ;;  %v5519_v13 = vld [vmem:[#allocation4 + $0x28c] sm:$0xf0]  ;;  %v6520_v18 = vld [vmem:[#allocation4 + $0x598] sm:$0xf0]  ;;  %v6370_v19 = vld [vmem:[#allocation4 + $0xec] sm:$0xf] }
 0x30d   :  { %3705 = vmatpush.bf16.msrb.mxu1 %v5574_v26  ;;  %v5685_v26 = vld [vmem:[#allocation4 + $0x3c0] sm:$0xf] }
 0x30e   :  { %v2144_v59 = vmax.f32 %v2137_v43, 0.0  ;;  %v6433_v43 = vld [vmem:[#allocation4 + $0x2e4] sm:$0xf] }
 0x30f   :  { %3690 = vmatpush.bf16.msrb.mxu0 %v5378_v6  ;;  %v5238_v6 = vor.u32 %v6352_v55, %v5237_v24  ;;  %v5578_v53 = vor.u32 %v6433_v43, %v5575_v44  ;;  %v6482_v24 = vld [vmem:[#allocation4 + $0x46c] sm:$0xf]  ;;  %v5771_v55 = vld [vmem:[#allocation4 + $0x484] sm:$0xf0]  ;;  %v6468_v43 = vld [vmem:[#allocation4 + $0x3fc] sm:$0xf] }
 0x310   :  { %3718 = vmatpush.bf16.msrb.mxu2 %v5826_v31  ;;  %v6440_v31 = vld [vmem:[#allocation4 + $0x31c] sm:$0xf]  ;;  %v5715_v44 = vld [vmem:[#allocation4 + $0x414] sm:$0xf0] }
 0x311   :  { %3706 = vmatpush.bf16.msrb.mxu1 %v5546_v32  ;;  %v5686_v32 = vor.u32 %v6464_v28, %v5685_v26  ;;  %v5606_v38 = vor.u32 %v6440_v31, %v5603_v23  ;;  %v6412_v26 = vld [vmem:[#allocation4 + $0x23c] sm:$0xf]  ;;  %v6363_v31 = vld [vmem:[#allocation4 + $0xb4] sm:$0xf]  ;;  %v5295_v23 = vld [vmem:[#allocation4 + $0xcc] sm:$0xf0] }
 0x313   :  { %3691 = vmatpush.bf16.msrb.mxu0 %v5350_v8  ;;  %v2138_v46 = vpop.f32.mrf.mxu3  ;;  %v6541_v8 = vld [vmem:[#allocation4 + $0x640] sm:$0xf0] }
 0x314   :  { %3719 = vmatpush.bf16.msrb.mxu2 %v5798_v36  ;;  %v2139_v52 = vadd.f32 %v2138_v46, %v2033_v34  ;;  %3655 = vmatmul.bf16.vlgmr.msra.gmra.mxu1 %v7028_v63  ;;  %v5657_v34 = vld [vmem:[#allocation4 + $0x388] sm:$0xf]  ;;  %v6391_v36 = vld [vmem:[#allocation4 + $0x194] sm:$0xf]  ;;  %v5994_v46 = vor.u32 %v6541_v8, %v5993_v37  ;;  %v5463_v37 = vld [vmem:[#allocation4 + $0x21c] sm:$0xf0] }
 0x315   :  { %3707 = vmatpush.bf16.msrb.mxu1 %v5518_v39  ;;  %v6503_v39 = vld [vmem:[#allocation4 + $0x514] sm:$0xf]  ;;  %v5658_v45 = vor.u32 %v6457_v35, %v5657_v34  ;;  %v6079_v34 = vld [vmem:[#allocation4 + $0x6ec] sm:$0xf0]  ;;  %v6405_v35 = vld [vmem:[#allocation4 + $0x204] sm:$0xf] }
 0x316   :  { %v2148_v62 = vmax.f32 %v2139_v52, 0.0  ;;  %v5858_v52 = vor.u32 %v6503_v39, %v5855_v40  ;;  %v5267_v39 = vld [vmem:[#allocation4 + $0x94] sm:$0xf0]  ;;  %v6082_v40 = vor.u32 %v6559_v60, %v6079_v34  ;;  %v5553_v60 = vld [vmem:[#allocation4 + $0x2b0] sm:$0xf] }
 0x317   :  { %3692 = vmatpush.bf16.msrb.mxu0 %v5322_v47  ;;  %v5410_v47 = vor.u32 %v6391_v36, %v5407_v42  ;;  %v5298_v36 = vor.u32 %v6363_v31, %v5295_v23  ;;  %v6356_v42 = vld [vmem:[#allocation4 + $0x7c] sm:$0xf]  ;;  %v5385_v23 = vld [vmem:[#allocation4 + $0x160] sm:$0xf]  ;;  %v6430_v34 = vld [vmem:[#allocation4 + $0x2c8] sm:$0xf0] }
 0x318   :  { %v7039_v3 = vpack.c.bf16 %v2148_v62, %v2144_v59  ;;  %3720 = vmatpush.bf16.msrb.mxu2 %v5770_v48  ;;  %v5965_v48 = vld [vmem:[#allocation4 + $0x5f0] sm:$0xf]  ;;  %v5547_v59 = vld [vmem:[#allocation4 + $0x2c4] sm:$0xf0] }
 0x319   :  { %3708 = vmatpush.bf16.msrb.mxu1 %v5490_v56  ;;  %v5379_v56 = vld [vmem:[#allocation4 + $0x174] sm:$0xf0]  ;;  %v5966_v62 = vor.u32 %v6534_v49, %v5965_v48  ;;  %v5550_v7 = vor.u32 %v6426_v50, %v5547_v59  ;;  %v6451_v49 = vld [vmem:[#allocation4 + $0x370] sm:$0xf0]  ;;  %v5239_v50 = vld [vmem:[#allocation4 + $0x5c] sm:$0xf0] }
 0x31a   :  { %3627 = vmatmul.bf16.vlgmr.msrb.gmra.mxu3 %v7039_v3  ;;  %3641 = vmatmul.bf16.vlgmr.msra.gmra.mxu0 %v7031_v21  ;;  %v5382_v0 = vor.u32 %v6384_v51, %v5379_v56  ;;  %v5637_v48 = vld [vmem:[#allocation4 + $0x358] sm:$0xf]  ;;  %v5270_v51 = vor.u32 %v6356_v42, %v5267_v39  ;;  %v6349_v56 = vld [vmem:[#allocation4 + $0x44] sm:$0xf]  ;;  %v5554_v42 = vor.u32 %v6430_v34, %v5553_v60  ;;  %v5357_v39 = vld [vmem:[#allocation4 + $0x128] sm:$0xf] }
 0x31b   :  { %3669 = vmatmul.bf16.vlgmr.msra.gmra.mxu2 %v7033_v25  ;;  %3693 = vmatpush.bf16.msrb.mxu0 %v5294_v2  ;;  %v5937_v2 = vld [vmem:[#allocation4 + $0x5b8] sm:$0xf]  ;;  %v6461_v59 = vld [vmem:[#allocation4 + $0x3c4] sm:$0xf]  ;;  %v5693_v60 = vld [vmem:[#allocation4 + $0x3c8] sm:$0xf] }
 0x31c   :  { %3721 = vmatpush.bf16.msrb.mxu2 %v5742_v4  ;;  %3731 = vmatpush.bf16.msrb.mxu3 %v6078_v5  ;;  %v6527_v4 = vld [vmem:[#allocation4 + $0x5d0] sm:$0xf0]  ;;  %v6377_v5 = vld [vmem:[#allocation4 + $0x124] sm:$0xf] }
 0x31d   :  { %3709 = vmatpush.bf16.msrb.mxu1 %v5462_v11  ;;  %v5799_v11 = vld [vmem:[#allocation4 + $0x4bc] sm:$0xf0]  ;;  %v5938_v14 = vor.u32 %v6527_v4, %v5937_v2  ;;  %v5354_v15 = vor.u32 %v6377_v5, %v5351_v9  ;;  %v6444_v5 = vld [vmem:[#allocation4 + $0x338] sm:$0xf0] }
 0x31e   :  { %v5802_v16 = vor.u32 %v6489_v10, %v5799_v11  ;;  %v6023_v2 = vld [vmem:[#allocation4 + $0x67c] sm:$0xf0]  ;;  %v6342_v10 = vld [vmem:[#allocation4 + $0xc] sm:$0xf]  ;;  %v5211_v11 = vld [vmem:[#allocation4 + $0x24] sm:$0xf0] }
 0x31f   :  { %3694 = vmatpush.bf16.msrb.mxu0 %v5266_v17  ;;  %v5909_v17 = vld [vmem:[#allocation4 + $0x580] sm:$0xf] }
 0x320   :  { %3722 = vmatpush.bf16.msrb.mxu2 %v5714_v20  ;;  %3732 = vmatpush.bf16.msrb.mxu3 %v6050_v22  ;;  %v5522_v20 = vor.u32 %v6419_v12, %v5519_v13  ;;  %v5323_v22 = vld [vmem:[#allocation4 + $0x104] sm:$0xf0]  ;;  %v5910_v28 = vor.u32 %v6520_v18, %v5909_v17  ;;  %v5609_v4 = vld [vmem:[#allocation4 + $0x320] sm:$0xf]  ;;  %v6454_v12 = vld [vmem:[#allocation4 + $0x38c] sm:$0xf] }
 0x321   :  { %3710 = vmatpush.bf16.msrb.mxu1 %v5434_v27  ;;  %v5491_v27 = vld [vmem:[#allocation4 + $0x254] sm:$0xf0]  ;;  %v5326_v30 = vor.u32 %v6370_v19, %v5323_v22  ;;  %v5610_v17 = vor.u32 %v6444_v5, %v5609_v4  ;;  %v6395_v19 = vld [vmem:[#allocation4 + $0x1b0] sm:$0xf0] }
 0x322   :  { %v5494_v54 = vor.u32 %v6412_v26, %v5491_v27  ;;  %v5413_v18 = vld [vmem:[#allocation4 + $0x198] sm:$0xf]  ;;  %v6507_v22 = vld [vmem:[#allocation4 + $0x530] sm:$0xf0]  ;;  %v5214_v26 = vor.u32 %v6342_v10, %v5211_v11 }
 0x323   :  { %3695 = vmatpush.bf16.msrb.mxu0 %v5238_v6  ;;  %v6513_v6 = vld [vmem:[#allocation4 + $0x560] sm:$0xf0]  ;;  %v5749_v10 = vld [vmem:[#allocation4 + $0x438] sm:$0xf]  ;;  %v6479_v11 = vld [vmem:[#allocation4 + $0x450] sm:$0xf0] }
 0x324   :  { %3723 = vmatpush.bf16.msrb.mxu2 %v5686_v32  ;;  %3733 = vmatpush.bf16.msrb.mxu3 %v6022_v33  ;;  %v6475_v32 = vld [vmem:[#allocation4 + $0x434] sm:$0xf]  ;;  %v5743_v33 = vld [vmem:[#allocation4 + $0x44c] sm:$0xf0]  ;;  %v5882_v8 = vor.u32 %v6513_v6, %v5881_v29  ;;  %v5414_v29 = vor.u32 %v6395_v19, %v5413_v18  ;;  %v5750_v18 = vor.u32 %v6479_v11, %v5749_v10  ;;  %v6497_v10 = vld [vmem:[#allocation4 + $0x4e4] sm:$0xf] }
 0x325   :  { %3759 = vmatpush.bf16.msra.mxu1 %v5634_v61  ;;  %v5774_v61 = vor.u32 %v6482_v24, %v5771_v55  ;;  %v5581_v24 = vld [vmem:[#allocation4 + $0x2e8] sm:$0xf]  ;;  %v6437_v55 = vld [vmem:[#allocation4 + $0x300] sm:$0xf0]  ;;  %v5835_v11 = vld [vmem:[#allocation4 + $0x4fc] sm:$0xf0] }
 0x326   :  { %3711 = vmatmul.bf16.vlgmr.msrb.gmra.mxu1 %v7028_v63  ;;  %v5582_v31 = vor.u32 %v6437_v55, %v5581_v24  ;;  %v5721_v24 = vld [vmem:[#allocation4 + $0x400] sm:$0xf] }
 0x327   :  { %3696 = vmatpush.bf16.msrb.mxu0 %v5210_v41  ;;  %v5466_v41 = vor.u32 %v6405_v35, %v5463_v37 }
 0x328   :  { %3724 = vmatpush.bf16.msrb.mxu2 %v5658_v45  ;;  %3734 = vmatpush.bf16.msrb.mxu3 %v5994_v46  ;;  %v6552_v45 = vld [vmem:[#allocation4 + $0x69c] sm:$0xf]  ;;  %v6051_v46 = vld [vmem:[#allocation4 + $0x6b4] sm:$0xf0] }
 0x329   :  { %3760 = vmatpush.bf16.msra.mxu1 %v5606_v38  ;;  %v5746_v38 = vor.u32 %v6475_v32, %v5743_v33  ;;  %v6054_v57 = vor.u32 %v6552_v45, %v6051_v46  ;;  %v5833_v32 = vld [vmem:[#allocation4 + $0x4e0] sm:$0xf]  ;;  %v6500_v33 = vld [vmem:[#allocation4 + $0x4f8] sm:$0xf0]  ;;  %v6423_v45 = vld [vmem:[#allocation4 + $0x290] sm:$0xf0] }
 0x32a   :  { %3683 = vmatmul.bf16.vlgmr.msra.gmra.mxu3 %v7039_v3  ;;  %3697 = vmatmul.bf16.vlgmr.msrb.gmra.mxu0 %v7031_v21 }
 0x32b   :  { %3745 = vmatpush.bf16.msra.mxu0 %v5410_v47  ;;  %3725 = vmatmul.bf16.vlgmr.msrb.gmra.mxu2 %v7033_v25  ;;  %v6398_v47 = vld [vmem:[#allocation4 + $0x1cc] sm:$0xf] }
 0x32c   :  { %3773 = vmatpush.bf16.msra.mxu2 %v5858_v52  ;;  %3735 = vmatpush.bf16.msrb.mxu3 %v5966_v62  ;;  %v5435_v52 = vld [vmem:[#allocation4 + $0x1e4] sm:$0xf0]  ;;  %v5687_v62 = vld [vmem:[#allocation4 + $0x3dc] sm:$0xf0] }
 0x32d   :  { %3761 = vmatpush.bf16.msra.mxu1 %v5578_v53  ;;  %v5718_v53 = vor.u32 %v6468_v43, %v5715_v44  ;;  %v5438_v58 = vor.u32 %v6398_v47, %v5435_v52  ;;  %v5690_v9 = vor.u32 %v6461_v59, %v5687_v62  ;;  %v6493_v43 = vld [vmem:[#allocation4 + $0x4c0] sm:$0xf0]  ;;  %v5525_v44 = vld [vmem:[#allocation4 + $0x278] sm:$0xf]  ;;  %v6416_v59 = vld [vmem:[#allocation4 + $0x258] sm:$0xf0] }
 0x32e   :  { %v6517_v52 = vld [vmem:[#allocation4 + $0x584] sm:$0xf] }
 0x32f   :  { %3746 = vmatpush.bf16.msra.mxu0 %v5382_v0  ;;  %v5638_v0 = vor.u32 %v6451_v49, %v5637_v48  ;;  %v5911_v48 = vld [vmem:[#allocation4 + $0x59c] sm:$0xf0] }
 0x330   :  { %3774 = vmatpush.bf16.msra.mxu2 %v5830_v1  ;;  %3736 = vmatpush.bf16.msrb.mxu3 %v5938_v14  ;;  %v6545_v1 = vld [vmem:[#allocation4 + $0x664] sm:$0xf]  ;;  %v5659_v14 = vld [vmem:[#allocation4 + $0x3a4] sm:$0xf0]  ;;  %v5914_v62 = vor.u32 %v6517_v52, %v5911_v48  ;;  %v6542_v52 = vld [vmem:[#allocation4 + $0x648] sm:$0xf0] }
 0x331   :  { %3762 = vmatpush.bf16.msra.mxu1 %v5550_v7  ;;  %v5242_v7 = vor.u32 %v6349_v56, %v5239_v50  ;;  %v6026_v13 = vor.u32 %v6545_v1, %v6023_v2  ;;  %v5662_v27 = vor.u32 %v6454_v12, %v5659_v14  ;;  %v6374_v56 = vld [vmem:[#allocation4 + $0x108] sm:$0xf0]  ;;  %v5497_v50 = vld [vmem:[#allocation4 + $0x240] sm:$0xf]  ;;  %v5883_v2 = vld [vmem:[#allocation4 + $0x564] sm:$0xf0] }
 0x332   :  { %v6510_v1 = vld [vmem:[#allocation4 + $0x54c] sm:$0xf]  ;;  %v5498_v5 = vor.u32 %v6416_v59, %v5497_v50  ;;  %v6085_v12 = vld [vmem:[#allocation4 + $0x6d8] sm:$0xf]  ;;  %v5469_v14 = vld [vmem:[#allocation4 + $0x208] sm:$0xf] }
 0x333   :  { %3747 = vmatpush.bf16.msra.mxu0 %v5354_v15  ;;  %v6538_v15 = vld [vmem:[#allocation4 + $0x62c] sm:$0xf]  ;;  %v6392_v48 = vld [vmem:[#allocation4 + $0x19c] sm:$0xf]  ;;  %v5583_v50 = vld [vmem:[#allocation4 + $0x304] sm:$0xf0] }
 0x334   :  { %3775 = vmatpush.bf16.msra.mxu2 %v5802_v16  ;;  %3737 = vmatpush.bf16.msrb.mxu3 %v5910_v28  ;;  %v5995_v16 = vld [vmem:[#allocation4 + $0x644] sm:$0xf0] }
 0x335   :  { %3763 = vmatpush.bf16.msra.mxu1 %v5522_v20  ;;  %v5861_v20 = vld [vmem:[#allocation4 + $0x518] sm:$0xf]  ;;  %v5998_v28 = vor.u32 %v6538_v15, %v5995_v16  ;;  %v6409_v15 = vld [vmem:[#allocation4 + $0x220] sm:$0xf0]  ;;  %v5886_v16 = vor.u32 %v6510_v1, %v5883_v2 }
 0x336   :  { %v5862_v6 = vor.u32 %v6507_v22, %v5861_v20  ;;  %v5273_v20 = vld [vmem:[#allocation4 + $0x80] sm:$0xf]  ;;  %v6360_v22 = vld [vmem:[#allocation4 + $0x98] sm:$0xf0]  ;;  %v5470_v55 = vor.u32 %v6409_v15, %v5469_v14  ;;  %v5973_v2 = vld [vmem:[#allocation4 + $0x5f8] sm:$0xf] }
 0x337   :  { %3748 = vmatpush.bf16.msra.mxu0 %v5326_v30  ;;  %v6531_v30 = vld [vmem:[#allocation4 + $0x5f4] sm:$0xf] }
 0x338   :  { %3776 = vmatpush.bf16.msra.mxu2 %v5774_v61  ;;  %3738 = vmatpush.bf16.msrb.mxu3 %v5882_v8  ;;  %v5967_v61 = vld [vmem:[#allocation4 + $0x60c] sm:$0xf0]  ;;  %v6524_v8 = vld [vmem:[#allocation4 + $0x5bc] sm:$0xf] }
 0x339   :  { %3764 = vmatpush.bf16.msra.mxu1 %v5494_v54  ;;  %v6388_v54 = vld [vmem:[#allocation4 + $0x178] sm:$0xf0]  ;;  %v5970_v35 = vor.u32 %v6531_v30, %v5967_v61  ;;  %v6402_v30 = vld [vmem:[#allocation4 + $0x1e8] sm:$0xf0]  ;;  %v5274_v61 = vor.u32 %v6360_v22, %v5273_v20  ;;  %v5359_v22 = vld [vmem:[#allocation4 + $0x144] sm:$0xf0] }
 0x33a   :  { %v5386_v37 = vor.u32 %v6388_v54, %v5385_v23 }
 0x33b   :  { %3749 = vmatpush.bf16.msra.mxu0 %v5298_v36  ;;  %3739 = vmatmul.bf16.vlgmr.msrb.gmra.mxu3 %v7039_v3  ;;  %v5939_v36 = vld [vmem:[#allocation4 + $0x5d4] sm:$0xf0] }
 0x33c   :  { %3777 = vmatpush.bf16.msra.mxu2 %v5746_v38  ;;  %3787 = vmatpush.bf16.msra.mxu3 %v6082_v40  ;;  %v5834_v38 = vor.u32 %v6500_v33, %v5833_v32  ;;  %v6381_v40 = vld [vmem:[#allocation4 + $0x140] sm:$0xf0]  ;;  %v5942_v46 = vor.u32 %v6524_v8, %v5939_v36  ;;  %v5245_v32 = vld [vmem:[#allocation4 + $0x48] sm:$0xf] }
 0x33d   :  { %3765 = vmatpush.bf16.msra.mxu1 %v5466_v41  ;;  %v5805_v41 = vld [vmem:[#allocation4 + $0x4a8] sm:$0xf]  ;;  %v5358_v47 = vor.u32 %v6381_v40, %v5357_v39  ;;  %v6353_v33 = vld [vmem:[#allocation4 + $0x60] sm:$0xf0]  ;;  %v5611_v39 = vld [vmem:[#allocation4 + $0x33c] sm:$0xf0] }
 0x33e   :  { %v5806_v49 = vor.u32 %v6493_v43, %v5805_v41  ;;  %v6549_v8 = vld [vmem:[#allocation4 + $0x680] sm:$0xf0]  ;;  %v5217_v40 = vld [vmem:[#allocation4 + $0x10] sm:$0xf] }
 0x33f   :  { %3750 = vmatpush.bf16.msra.mxu0 %v5270_v51  ;;  %v5526_v51 = vor.u32 %v6423_v45, %v5525_v44  ;;  %v6346_v44 = vld [vmem:[#allocation4 + $0x28] sm:$0xf0]  ;;  %v5665_v45 = vld [vmem:[#allocation4 + $0x390] sm:$0xf] }
 0x340   :  { %3778 = vmatpush.bf16.msra.mxu2 %v5718_v53  ;;  %3788 = vmatpush.bf16.msra.mxu3 %v6054_v57  ;;  %v5329_v53 = vld [vmem:[#allocation4 + $0xf0] sm:$0xf] }
 0x341   :  { %3766 = vmatpush.bf16.msra.mxu1 %v5438_v58  ;;  %v5777_v57 = vld [vmem:[#allocation4 + $0x470] sm:$0xf]  ;;  %v6486_v58 = vld [vmem:[#allocation4 + $0x488] sm:$0xf0] }
 0x342   :  { %v5778_v4 = vor.u32 %v6486_v58, %v5777_v57  ;;  %v5218_v57 = vor.u32 %v6346_v44, %v5217_v40  ;;  %v6434_v58 = vld [vmem:[#allocation4 + $0x2ec] sm:$0xf]  ;;  %v6560_v44 = vld [vmem:[#allocation4 + $0x6dc] sm:$0xf] }
 0x343   :  { %3751 = vmatpush.bf16.msra.mxu0 %v5242_v7  ;;  %v5301_v7 = vld [vmem:[#allocation4 + $0xb8] sm:$0xf] }
 0x344   :  { %3779 = vmatpush.bf16.msra.mxu2 %v5690_v9  ;;  %3789 = vmatpush.bf16.msra.mxu3 %v6026_v13  ;;  %v6367_v9 = vld [vmem:[#allocation4 + $0xd0] sm:$0xf0] }
 0x345   :  { %3815 = vmatpush.bf16.msrb.mxu1 %v5638_v0  ;;  %v5330_v0 = vor.u32 %v6374_v56, %v5329_v53  ;;  %v6563_v13 = vld [vmem:[#allocation4 + $0x6f0] sm:$0xf0]  ;;  %v6504_v53 = vld [vmem:[#allocation4 + $0x51c] sm:$0xf]  ;;  %v5863_v56 = vld [vmem:[#allocation4 + $0x534] sm:$0xf0] }
 0x346   :  { %3767 = vmatmul.bf16.vlgmr.msra.gmra.mxu1 %v7028_v63  ;;  %v6086_v19 = vor.u32 %v6563_v13, %v6085_v12  ;;  %v5866_v1 = vor.u32 %v6504_v53, %v5863_v56  ;;  %v6427_v12 = vld [vmem:[#allocation4 + $0x2b4] sm:$0xf]  ;;  %v5555_v13 = vld [vmem:[#allocation4 + $0x2cc] sm:$0xf0]  ;;  %v5275_v53 = vld [vmem:[#allocation4 + $0x9c] sm:$0xf0] }
 0x347   :  { %3752 = vmatpush.bf16.msra.mxu0 %v5214_v26  ;;  %v6472_v26 = vld [vmem:[#allocation4 + $0x418] sm:$0xf0]  ;;  %v5558_v20 = vor.u32 %v6427_v12, %v5555_v13  ;;  %v5247_v12 = vld [vmem:[#allocation4 + $0x64] sm:$0xf0]  ;;  %v6462_v13 = vld [vmem:[#allocation4 + $0x3cc] sm:$0xf] }
 0x348   :  { %3780 = vmatpush.bf16.msra.mxu2 %v5662_v27  ;;  %3790 = vmatpush.bf16.msra.mxu3 %v5998_v28  ;;  %v6057_v27 = vld [vmem:[#allocation4 + $0x6a0] sm:$0xf]  ;;  %v6556_v28 = vld [vmem:[#allocation4 + $0x6b8] sm:$0xf0]  ;;  %v5722_v23 = vor.u32 %v6472_v26, %v5721_v24  ;;  %v6490_v24 = vld [vmem:[#allocation4 + $0x4ac] sm:$0xf] }
 0x349   :  { %3816 = vmatpush.bf16.msrb.mxu1 %v5610_v17  ;;  %v5302_v17 = vor.u32 %v6367_v9, %v5301_v7  ;;  %v6058_v54 = vor.u32 %v6556_v28, %v6057_v27  ;;  %v5586_v7 = vor.u32 %v6434_v58, %v5583_v50  ;;  %v5387_v9 = vld [vmem:[#allocation4 + $0x17c] sm:$0xf0]  ;;  %v6420_v26 = vld [vmem:[#allocation4 + $0x27c] sm:$0xf]  ;;  %v5527_v27 = vld [vmem:[#allocation4 + $0x294] sm:$0xf0] }
 0x34a   :  { %3753 = vmatmul.bf16.vlgmr.msra.gmra.mxu0 %v7031_v21  ;;  %v6469_v58 = vld [vmem:[#allocation4 + $0x404] sm:$0xf]  ;;  %v5723_v50 = vld [vmem:[#allocation4 + $0x41c] sm:$0xf0] }
 0x34b   :  { %3801 = vmatpush.bf16.msrb.mxu0 %v5414_v29  ;;  %3781 = vmatmul.bf16.vlgmr.msra.gmra.mxu2 %v7033_v25  ;;  %v5441_v29 = vld [vmem:[#allocation4 + $0x1d0] sm:$0xf] }
 0x34c   :  { %3829 = vmatpush.bf16.msrb.mxu2 %v5862_v6  ;;  %3791 = vmatpush.bf16.msra.mxu3 %v5970_v35  ;;  %v6448_v6 = vld [vmem:[#allocation4 + $0x35c] sm:$0xf]  ;;  %v5442_v34 = vor.u32 %v6402_v30, %v5441_v29  ;;  %v6465_v35 = vld [vmem:[#allocation4 + $0x3e0] sm:$0xf0] }
 0x34d   :  { %3817 = vmatpush.bf16.msrb.mxu1 %v5582_v31  ;;  %v5639_v31 = vld [vmem:[#allocation4 + $0x374] sm:$0xf0]  ;;  %v5694_v41 = vor.u32 %v6465_v35, %v5693_v60  ;;  %v6413_v60 = vld [vmem:[#allocation4 + $0x244] sm:$0xf] }
 0x34e   :  { %v5642_v36 = vor.u32 %v6448_v6, %v5639_v31  ;;  %v6521_v6 = vld [vmem:[#allocation4 + $0x5a0] sm:$0xf0]  ;;  %v6371_v31 = vld [vmem:[#allocation4 + $0xf4] sm:$0xf] }
 0x34f   :  { %3802 = vmatpush.bf16.msrb.mxu0 %v5386_v37  ;;  %v6029_v37 = vld [vmem:[#allocation4 + $0x668] sm:$0xf] }
 0x350   :  { %3830 = vmatpush.bf16.msrb.mxu2 %v5834_v38  ;;  %3792 = vmatpush.bf16.msra.mxu3 %v5942_v46  ;;  %v5246_v38 = vor.u32 %v6353_v33, %v5245_v32  ;;  %v6030_v43 = vor.u32 %v6549_v8, %v6029_v37  ;;  %v6458_v46 = vld [vmem:[#allocation4 + $0x3a8] sm:$0xf0]  ;;  %v6483_v32 = vld [vmem:[#allocation4 + $0x474] sm:$0xf]  ;;  %v5779_v33 = vld [vmem:[#allocation4 + $0x48c] sm:$0xf0] }
 0x351   :  { %3818 = vmatpush.bf16.msrb.mxu1 %v5554_v42  ;;  %v6441_v42 = vld [vmem:[#allocation4 + $0x324] sm:$0xf]  ;;  %v5666_v59 = vor.u32 %v6458_v46, %v5665_v45  ;;  %v5889_v37 = vld [vmem:[#allocation4 + $0x550] sm:$0xf]  ;;  %v6087_v45 = vld [vmem:[#allocation4 + $0x6f4] sm:$0xf0] }
 0x352   :  { %v6406_v46 = vld [vmem:[#allocation4 + $0x20c] sm:$0xf]  ;;  %v6090_v56 = vor.u32 %v6560_v44, %v6087_v45  ;;  %v5561_v44 = vld [vmem:[#allocation4 + $0x2b8] sm:$0xf]  ;;  %v6431_v45 = vld [vmem:[#allocation4 + $0x2d0] sm:$0xf0] }
 0x353   :  { %3803 = vmatpush.bf16.msrb.mxu0 %v5358_v47  ;;  %v6001_v47 = vld [vmem:[#allocation4 + $0x630] sm:$0xf] }
 0x354   :  { %3831 = vmatpush.bf16.msrb.mxu2 %v5806_v49  ;;  %3793 = vmatpush.bf16.msra.mxu3 %v5914_v62  ;;  %v5614_v49 = vor.u32 %v6441_v42, %v5611_v39  ;;  %v6002_v62 = vor.u32 %v6542_v52, %v6001_v47  ;;  %v6364_v42 = vld [vmem:[#allocation4 + $0xbc] sm:$0xf]  ;;  %v5303_v39 = vld [vmem:[#allocation4 + $0xd4] sm:$0xf0]  ;;  %v5471_v47 = vld [vmem:[#allocation4 + $0x224] sm:$0xf0] }
 0x355   :  { %3819 = vmatpush.bf16.msrb.mxu1 %v5526_v51  ;;  %v5415_v51 = vld [vmem:[#allocation4 + $0x1b4] sm:$0xf0] }
 0x357   :  { %3804 = vmatpush.bf16.msrb.mxu0 %v5330_v0  ;;  %v5418_v0 = vor.u32 %v6392_v48, %v5415_v51  ;;  %v5306_v48 = vor.u32 %v6364_v42, %v5303_v39  ;;  %v6357_v51 = vld [vmem:[#allocation4 + $0x84] sm:$0xf]  ;;  %v5393_v39 = vld [vmem:[#allocation4 + $0x168] sm:$0xf] }
 0x358   :  { %3832 = vmatpush.bf16.msrb.mxu2 %v5778_v4  ;;  %3794 = vmatpush.bf16.msra.mxu3 %v5886_v16  ;;  %v6535_v4 = vld [vmem:[#allocation4 + $0x610] sm:$0xf0]  ;;  %v5838_v16 = vor.u32 %v6497_v10, %v5835_v11 }
 0x359   :  { %3820 = vmatpush.bf16.msrb.mxu1 %v5498_v5  ;;  %v6385_v5 = vld [vmem:[#allocation4 + $0x164] sm:$0xf]  ;;  %v5974_v14 = vor.u32 %v6535_v4, %v5973_v2  ;;  %v5645_v2 = vld [vmem:[#allocation4 + $0x360] sm:$0xf]  ;;  %v6452_v4 = vld [vmem:[#allocation4 + $0x378] sm:$0xf0] }
 0x35a   :  { %v5390_v15 = vor.u32 %v6385_v5, %v5387_v9  ;;  %v5278_v5 = vor.u32 %v6357_v51, %v5275_v53  ;;  %v6350_v9 = vld [vmem:[#allocation4 + $0x4c] sm:$0xf]  ;;  %v5562_v51 = vor.u32 %v6431_v45, %v5561_v44  ;;  %v5365_v53 = vld [vmem:[#allocation4 + $0x130] sm:$0xf] }
 0x35b   :  { %3805 = vmatpush.bf16.msrb.mxu0 %v5302_v17  ;;  %3795 = vmatmul.bf16.vlgmr.msra.gmra.mxu3 %v7039_v3  ;;  %v5945_v17 = vld [vmem:[#allocation4 + $0x5c0] sm:$0xf]  ;;  %v5253_v44 = vld [vmem:[#allocation4 + $0x50] sm:$0xf]  ;;  %v6354_v45 = vld [vmem:[#allocation4 + $0x68] sm:$0xf0] }
 0x35c   :  { %3833 = vmatpush.bf16.msrb.mxu2 %v5750_v18  ;;  %3843 = vmatpush.bf16.msrb.mxu3 %v6086_v19  ;;  %v6528_v18 = vld [vmem:[#allocation4 + $0x5d8] sm:$0xf0]  ;;  %v6378_v19 = vld [vmem:[#allocation4 + $0x12c] sm:$0xf] }
 0x35d   :  { %3821 = vmatpush.bf16.msrb.mxu1 %v5470_v55  ;;  %v5807_v55 = vld [vmem:[#allocation4 + $0x4c4] sm:$0xf0]  ;;  %v5946_v28 = vor.u32 %v6528_v18, %v5945_v17  ;;  %v5362_v29 = vor.u32 %v6378_v19, %v5359_v22  ;;  %v6445_v19 = vld [vmem:[#allocation4 + $0x340] sm:$0xf0] }
 0x35e   :  { %v5810_v30 = vor.u32 %v6490_v24, %v5807_v55  ;;  %v6031_v17 = vld [vmem:[#allocation4 + $0x684] sm:$0xf0]  ;;  %v6343_v24 = vld [vmem:[#allocation4 + $0x14] sm:$0xf]  ;;  %v5219_v55 = vld [vmem:[#allocation4 + $0x2c] sm:$0xf0] }
 0x35f   :  { %3806 = vmatpush.bf16.msrb.mxu0 %v5274_v61  ;;  %v5917_v61 = vld [vmem:[#allocation4 + $0x588] sm:$0xf] }
 0x360   :  { %3834 = vmatpush.bf16.msrb.mxu2 %v5722_v23  ;;  %3844 = vmatpush.bf16.msrb.mxu3 %v6058_v54  ;;  %v5530_v23 = vor.u32 %v6420_v26, %v5527_v27  ;;  %v5331_v54 = vld [vmem:[#allocation4 + $0x10c] sm:$0xf0]  ;;  %v5918_v35 = vor.u32 %v6521_v6, %v5917_v61  ;;  %v5617_v18 = vld [vmem:[#allocation4 + $0x328] sm:$0xf]  ;;  %v6455_v26 = vld [vmem:[#allocation4 + $0x394] sm:$0xf] }
 0x361   :  { %3822 = vmatpush.bf16.msrb.mxu1 %v5442_v34  ;;  %v5499_v34 = vld [vmem:[#allocation4 + $0x25c] sm:$0xf0]  ;;  %v5334_v8 = vor.u32 %v6371_v31, %v5331_v54  ;;  %v5618_v61 = vor.u32 %v6445_v19, %v5617_v18  ;;  %v6396_v31 = vld [vmem:[#allocation4 + $0x1b8] sm:$0xf0] }
 0x362   :  { %v5502_v40 = vor.u32 %v6413_v60, %v5499_v34  ;;  %v5421_v6 = vld [vmem:[#allocation4 + $0x1a0] sm:$0xf]  ;;  %v6508_v54 = vld [vmem:[#allocation4 + $0x538] sm:$0xf0]  ;;  %v5222_v60 = vor.u32 %v6343_v24, %v5219_v55 }
 0x363   :  { %3807 = vmatpush.bf16.msrb.mxu0 %v5246_v38  ;;  %v6514_v38 = vld [vmem:[#allocation4 + $0x568] sm:$0xf0]  ;;  %v5757_v24 = vld [vmem:[#allocation4 + $0x440] sm:$0xf]  ;;  %v6480_v55 = vld [vmem:[#allocation4 + $0x458] sm:$0xf0] }
 0x364   :  { %3835 = vmatpush.bf16.msrb.mxu2 %v5694_v41  ;;  %3845 = vmatpush.bf16.msrb.mxu3 %v6030_v43  ;;  %v6476_v41 = vld [vmem:[#allocation4 + $0x43c] sm:$0xf]  ;;  %v5751_v43 = vld [vmem:[#allocation4 + $0x454] sm:$0xf0]  ;;  %v5890_v52 = vor.u32 %v6514_v38, %v5889_v37  ;;  %v5422_v37 = vor.u32 %v6396_v31, %v5421_v6 }
 0x365   :  { %3871 = vmatpush.bf16.msra.mxu1 %v5642_v36  ;;  %v5782_v36 = vor.u32 %v6483_v32, %v5779_v33  ;;  %v5589_v32 = vld [vmem:[#allocation4 + $0x2f0] sm:$0xf]  ;;  %v6438_v33 = vld [vmem:[#allocation4 + $0x308] sm:$0xf0] }
 0x366   :  { %3823 = vmatmul.bf16.vlgmr.msrb.gmra.mxu1 %v7028_v63  ;;  %v5590_v42 = vor.u32 %v6438_v33, %v5589_v32  ;;  %v5281_v32 = vld [vmem:[#allocation4 + $0x88] sm:$0xf]  ;;  %v6361_v33 = vld [vmem:[#allocation4 + $0xa0] sm:$0xf0] }
 0x367   :  { %3808 = vmatpush.bf16.msrb.mxu0 %v5218_v57  ;;  %v5474_v57 = vor.u32 %v6406_v46, %v5471_v47 }
 0x368   :  { %3836 = vmatpush.bf16.msrb.mxu2 %v5666_v59  ;;  %3846 = vmatpush.bf16.msrb.mxu3 %v6002_v62  ;;  %v6553_v59 = vld [vmem:[#allocation4 + $0x6a4] sm:$0xf]  ;;  %v6059_v62 = vld [vmem:[#allocation4 + $0x6bc] sm:$0xf0] }
 0x369   :  { %3872 = vmatpush.bf16.msra.mxu1 %v5614_v49  ;;  %v5754_v49 = vor.u32 %v6476_v41, %v5751_v43  ;;  %v6062_v10 = vor.u32 %v6553_v59, %v6059_v62  ;;  %v5841_v41 = vld [vmem:[#allocation4 + $0x4e8] sm:$0xf]  ;;  %v6501_v43 = vld [vmem:[#allocation4 + $0x500] sm:$0xf0]  ;;  %v6424_v59 = vld [vmem:[#allocation4 + $0x298] sm:$0xf0] }
 0x36a   :  { %3809 = vmatmul.bf16.vlgmr.msrb.gmra.mxu0 %v7031_v21 }
 0x36b   :  { %3857 = vmatpush.bf16.msra.mxu0 %v5418_v0  ;;  %3837 = vmatmul.bf16.vlgmr.msrb.gmra.mxu2 %v7033_v25  ;;  %v6399_v0 = vld [vmem:[#allocation4 + $0x1d4] sm:$0xf] }
 0x36c   :  { %3885 = vmatpush.bf16.msra.mxu2 %v5866_v1  ;;  %3847 = vmatpush.bf16.msrb.mxu3 %v5974_v14  ;;  %v5443_v1 = vld [vmem:[#allocation4 + $0x1ec] sm:$0xf0]  ;;  %v5695_v14 = vld [vmem:[#allocation4 + $0x3e4] sm:$0xf0] }
 0x36d   :  { %3873 = vmatpush.bf16.msra.mxu1 %v5586_v7  ;;  %v5726_v7 = vor.u32 %v6469_v58, %v5723_v50  ;;  %v5446_v11 = vor.u32 %v6399_v0, %v5443_v1  ;;  %v5698_v22 = vor.u32 %v6462_v13, %v5695_v14  ;;  %v6494_v58 = vld [vmem:[#allocation4 + $0x4c8] sm:$0xf0]  ;;  %v5533_v50 = vld [vmem:[#allocation4 + $0x280] sm:$0xf]  ;;  %v6417_v13 = vld [vmem:[#allocation4 + $0x260] sm:$0xf0] }
 0x36e   :  { %v6518_v1 = vld [vmem:[#allocation4 + $0x58c] sm:$0xf] }
 0x36f   :  { %3858 = vmatpush.bf16.msra.mxu0 %v5390_v15  ;;  %v5646_v15 = vor.u32 %v6452_v4, %v5645_v2  ;;  %v5919_v2 = vld [vmem:[#allocation4 + $0x5a4] sm:$0xf0] }
 0x370   :  { %3886 = vmatpush.bf16.msra.mxu2 %v5838_v16  ;;  %3848 = vmatpush.bf16.msrb.mxu3 %v5946_v28  ;;  %v6546_v16 = vld [vmem:[#allocation4 + $0x66c] sm:$0xf]  ;;  %v5667_v28 = vld [vmem:[#allocation4 + $0x3ac] sm:$0xf0]  ;;  %v5922_v14 = vor.u32 %v6518_v1, %v5919_v2  ;;  %v6459_v1 = vld [vmem:[#allocation4 + $0x3b0] sm:$0xf0] }
 0x371   :  { %3874 = vmatpush.bf16.msra.mxu1 %v5558_v20  ;;  %v5250_v20 = vor.u32 %v6350_v9, %v5247_v12  ;;  %v6034_v27 = vor.u32 %v6546_v16, %v6031_v17  ;;  %v5670_v34 = vor.u32 %v6455_v26, %v5667_v28  ;;  %v6375_v9 = vld [vmem:[#allocation4 + $0x110] sm:$0xf0]  ;;  %v5505_v12 = vld [vmem:[#allocation4 + $0x248] sm:$0xf]  ;;  %v5891_v17 = vld [vmem:[#allocation4 + $0x56c] sm:$0xf0] }
 0x372   :  { %v6511_v16 = vld [vmem:[#allocation4 + $0x554] sm:$0xf]  ;;  %v5506_v19 = vor.u32 %v6417_v13, %v5505_v12  ;;  %v6093_v26 = vld [vmem:[#allocation4 + $0x6e0] sm:$0xf]  ;;  %v5477_v28 = vld [vmem:[#allocation4 + $0x210] sm:$0xf] }
 0x373   :  { %3859 = vmatpush.bf16.msra.mxu0 %v5362_v29  ;;  %v6539_v29 = vld [vmem:[#allocation4 + $0x634] sm:$0xf]  ;;  %v5894_v6 = vor.u32 %v6511_v16, %v5891_v17  ;;  %v6009_v2 = vld [vmem:[#allocation4 + $0x638] sm:$0xf]  ;;  %v6536_v12 = vld [vmem:[#allocation4 + $0x618] sm:$0xf0] }
 0x374   :  { %3887 = vmatpush.bf16.msra.mxu2 %v5810_v30  ;;  %3849 = vmatpush.bf16.msrb.mxu3 %v5918_v35  ;;  %v6003_v30 = vld [vmem:[#allocation4 + $0x64c] sm:$0xf0] }
 0x375   :  { %3875 = vmatpush.bf16.msra.mxu1 %v5530_v23  ;;  %v5869_v23 = vld [vmem:[#allocation4 + $0x520] sm:$0xf]  ;;  %v6006_v35 = vor.u32 %v6539_v29, %v6003_v30  ;;  %v6410_v29 = vld [vmem:[#allocation4 + $0x228] sm:$0xf0] }
 0x376   :  { %v5870_v38 = vor.u32 %v6508_v54, %v5869_v23  ;;  %v7063_v30 = vld [vmem:[%s7201_s9] sm:$0xff]  ;;  %v5758_v23 = vor.u32 %v6480_v55, %v5757_v24 }
 0x377   :  { %3860 = vmatpush.bf16.msra.mxu0 %v5334_v8  ;;  %v6532_v8 = vld [vmem:[#allocation4 + $0x5fc] sm:$0xf] }
 0x378   :  { %3888 = vmatpush.bf16.msra.mxu2 %v5782_v36  ;;  %3850 = vmatpush.bf16.msrb.mxu3 %v5890_v52  ;;  %v5975_v36 = vld [vmem:[#allocation4 + $0x614] sm:$0xf0]  ;;  %v6525_v52 = vld [vmem:[#allocation4 + $0x5c4] sm:$0xf] }
 0x379   :  { %3876 = vmatpush.bf16.msra.mxu1 %v5502_v40  ;;  %v6389_v40 = vld [vmem:[#allocation4 + $0x180] sm:$0xf0]  ;;  %v5978_v46 = vor.u32 %v6532_v8, %v5975_v36  ;;  %v5449_v36 = vld [vmem:[#allocation4 + $0x1d8] sm:$0xf] }
 0x37a   :  { %v5394_v47 = vor.u32 %v6389_v40, %v5393_v39  ;;  %v6557_v8 = vld [vmem:[#allocation4 + $0x6c0] sm:$0xf0]  ;;  %v5282_v39 = vor.u32 %v6361_v33, %v5281_v32 }
 0x37b   :  { %3861 = vmatpush.bf16.msra.mxu0 %v5306_v48  ;;  %3851 = vmatmul.bf16.vlgmr.msrb.gmra.mxu3 %v7039_v3  ;;  %v5947_v48 = vld [vmem:[#allocation4 + $0x5dc] sm:$0xf0] }
 0x37c   :  { %3889 = vmatpush.bf16.msra.mxu2 %v5754_v49  ;;  %3899 = vmatpush.bf16.msra.mxu3 %v6090_v56  ;;  %v5842_v49 = vor.u32 %v6501_v43, %v5841_v41  ;;  %v6382_v56 = vld [vmem:[#allocation4 + $0x148] sm:$0xf0]  ;;  %v5950_v62 = vor.u32 %v6525_v52, %v5947_v48 }
 0x37d   :  { %3877 = vmatpush.bf16.msra.mxu1 %v5474_v57  ;;  %v5813_v57 = vld [vmem:[#allocation4 + $0x4b0] sm:$0xf]  ;;  %v5366_v0 = vor.u32 %v6382_v56, %v5365_v53  ;;  %v6466_v48 = vld [vmem:[#allocation4 + $0x3e8] sm:$0xf0]  ;;  %v5254_v53 = vor.u32 %v6354_v45, %v5253_v44 }
 0x37e   :  { %v5814_v4 = vor.u32 %v6494_v58, %v5813_v57 }
 0x37f   :  { %3862 = vmatpush.bf16.msra.mxu0 %v5278_v5  ;;  %v5534_v5 = vor.u32 %v6424_v59, %v5533_v50  ;;  %v5225_v50 = vld [vmem:[#allocation4 + $0x18] sm:$0xf]  ;;  %v6347_v59 = vld [vmem:[#allocation4 + $0x30] sm:$0xf0] }
 0x380   :  { %3890 = vmatpush.bf16.msra.mxu2 %v5726_v7  ;;  %3900 = vmatpush.bf16.msra.mxu3 %v6062_v10  ;;  %v5337_v7 = vld [vmem:[#allocation4 + $0xf8] sm:$0xf] }
 0x381   :  { %3878 = vmatpush.bf16.msra.mxu1 %v5446_v11  ;;  %v5785_v10 = vld [vmem:[#allocation4 + $0x478] sm:$0xf]  ;;  %v6487_v11 = vld [vmem:[#allocation4 + $0x490] sm:$0xf0]  ;;  %v3600_v40 = vpop.f32.mrf.mxu1 }
 0x382   :  { %v5786_v18 = vor.u32 %v6487_v11, %v5785_v10  ;;  %v5981_v11 = vld [vmem:[#allocation4 + $0x600] sm:$0xf] }
 0x383   :  { %3863 = vmatpush.bf16.msra.mxu0 %v5250_v20  ;;  %v5309_v20 = vld [vmem:[#allocation4 + $0xc0] sm:$0xf] }
 0x384   :  { %3891 = vmatpush.bf16.msra.mxu2 %v5698_v22  ;;  %3901 = vmatpush.bf16.msra.mxu3 %v6034_v27  ;;  %v6368_v22 = vld [vmem:[#allocation4 + $0xd8] sm:$0xf0] }
 0x385   :  { %3927 = vmatpush.bf16.msrb.mxu1 %v5646_v15  ;;  %v5338_v15 = vor.u32 %v6375_v9, %v5337_v7  ;;  %v6564_v27 = vld [vmem:[#allocation4 + $0x6f8] sm:$0xf0]  ;;  %v5310_v31 = vor.u32 %v6368_v22, %v5309_v20  ;;  %v5953_v20 = vld [vmem:[#allocation4 + $0x5c8] sm:$0xf]  ;;  %v6529_v22 = vld [vmem:[#allocation4 + $0x5e0] sm:$0xf0] }
 0x386   :  { %3879 = vmatmul.bf16.vlgmr.msra.gmra.mxu1 %v7028_v63  ;;  %v6094_v54 = vor.u32 %v6564_v27, %v6093_v26  ;;  %v2412_v26 = vperm.slane %v7063_v30, 1  ;;  %v5954_v27 = vor.u32 %v6529_v22, %v5953_v20 }
 0x387   :  { %3864 = vmatpush.bf16.msra.mxu0 %v5222_v60  ;;  %v5729_v60 = vld [vmem:[#allocation4 + $0x408] sm:$0xf] }
 0x388   :  { %3892 = vmatpush.bf16.msra.mxu2 %v5670_v34  ;;  %3902 = vmatpush.bf16.msra.mxu3 %v6006_v35  ;;  %v5478_v34 = vor.u32 %v6410_v29, %v5477_v28  ;;  %v6473_v35 = vld [vmem:[#allocation4 + $0x420] sm:$0xf0]  ;;  %v5925_v28 = vld [vmem:[#allocation4 + $0x590] sm:$0xf]  ;;  %v6522_v29 = vld [vmem:[#allocation4 + $0x5a8] sm:$0xf0] }
 0x389   :  { %3928 = vmatpush.bf16.msrb.mxu1 %v5618_v61  ;;  %v3586_v61 = vpop.f32.mrf.mxu0  ;;  %v5730_v41 = vor.u32 %v6473_v35, %v5729_v60  ;;  %v3602_v13 = vpop.f32.mrf.mxu1  ;;  %v6515_v60 = vld [vmem:[#allocation4 + $0x570] sm:$0xf0] }
 0x38a   :  { %3865 = vmatmul.bf16.vlgmr.msra.gmra.mxu0 %v7031_v21 }
 0x38b   :  { %3913 = vmatpush.bf16.msrb.mxu0 %v5422_v37  ;;  %3893 = vmatmul.bf16.vlgmr.msra.gmra.mxu2 %v7033_v25  ;;  %v6065_v37 = vld [vmem:[#allocation4 + $0x6a8] sm:$0xf] }
 0x38c   :  { %3941 = vmatpush.bf16.msrb.mxu2 %v5870_v38  ;;  %3903 = vmatpush.bf16.msra.mxu3 %v5978_v46  ;;  %v6403_v38 = vld [vmem:[#allocation4 + $0x1f0] sm:$0xf0]  ;;  %v6066_v43 = vor.u32 %v6557_v8, %v6065_v37  ;;  %v5701_v46 = vld [vmem:[#allocation4 + $0x3d0] sm:$0xf] }
 0x38d   :  { %3929 = vmatpush.bf16.msrb.mxu1 %v5590_v42  ;;  %v2411_v42 = vperm.slane %v7063_v30, 0  ;;  %v5450_v52 = vor.u32 %v6403_v38, %v5449_v36  ;;  %v5702_v57 = vor.u32 %v6466_v48, %v5701_v46 }
 0x38f   :  { %3914 = vmatpush.bf16.msrb.mxu0 %v5394_v47  ;;  %v3614_v47 = vpop.f32.mrf.mxu2  ;;  %v3587_v56 = vadd.f32 %v3586_v61, %v2411_v42 }
 0x390   :  { %3942 = vmatpush.bf16.msrb.mxu2 %v5842_v49  ;;  %3904 = vmatpush.bf16.msra.mxu3 %v5950_v62  ;;  %v6037_v49 = vld [vmem:[#allocation4 + $0x670] sm:$0xf]  ;;  %v5673_v62 = vld [vmem:[#allocation4 + $0x398] sm:$0xf] }
 0x391   :  { %3930 = vmatpush.bf16.msrb.mxu1 %v5562_v51  ;;  %v6550_v51 = vld [vmem:[#allocation4 + $0x688] sm:$0xf0]  ;;  %v3601_v7 = vadd.f32 %v3600_v40, %v3587_v56  ;;  %v5674_v9 = vor.u32 %v6459_v1, %v5673_v62  ;;  %v3656_v32 = vpop.f32.mrf.mxu1  ;;  %v2413_v62 = vperm.slane %v7063_v30, 2 }
 0x392   :  { %v6038_v58 = vor.u32 %v6550_v51, %v6037_v49 }
 0x393   :  { %3915 = vmatpush.bf16.msrb.mxu0 %v5366_v0  ;;  %v3588_v0 = vpop.f32.mrf.mxu0 }
 0x394   :  { %3943 = vmatpush.bf16.msrb.mxu2 %v5814_v4  ;;  %3905 = vmatpush.bf16.msra.mxu3 %v5922_v14  ;;  %v6543_v4 = vld [vmem:[#allocation4 + $0x650] sm:$0xf0]  ;;  %v3615_v14 = vadd.f32 %v3614_v47, %v3601_v7  ;;  %v3589_v17 = vadd.f32 %v3588_v0, %v2411_v42 }
 0x395   :  { %3931 = vmatpush.bf16.msrb.mxu1 %v5534_v5  ;;  %v5226_v5 = vor.u32 %v6347_v59, %v5225_v50  ;;  %v6010_v10 = vor.u32 %v6543_v4, %v6009_v2 }
 0x397   :  { %3916 = vmatpush.bf16.msrb.mxu0 %v5338_v15  ;;  %v3616_v15 = vpop.f32.mrf.mxu2 }
 0x398   :  { %3944 = vmatpush.bf16.msrb.mxu2 %v5786_v18  ;;  %3906 = vmatpush.bf16.msra.mxu3 %v5894_v6 }
 0x399   :  { %3932 = vmatpush.bf16.msrb.mxu1 %v5506_v19  ;;  %v5982_v19 = vor.u32 %v6536_v12, %v5981_v11  ;;  %v3658_v44 = vpop.f32.mrf.mxu1 }
 0x39b   :  { %3917 = vmatpush.bf16.msrb.mxu0 %v5310_v31  ;;  %3907 = vmatmul.bf16.vlgmr.msra.gmra.mxu3 %v7039_v3  ;;  %v3642_v55 = vpop.f32.mrf.mxu0 }
 0x39c   :  { %3945 = vmatpush.bf16.msrb.mxu2 %v5758_v23  ;;  %3955 = vmatpush.bf16.msrb.mxu3 %v6094_v54  ;;  %v3643_v31 = vadd.f32 %v3642_v55, %v2412_v26  ;;  %v5926_v54 = vor.u32 %v6522_v29, %v5925_v28 }
 0x39d   :  { %3933 = vmatpush.bf16.msrb.mxu1 %v5478_v34  ;;  %v3628_v16 = vpop.f32.mrf.mxu3 }
 0x39e   :  { %v3629_v18 = vadd.f32 %v3628_v16, %v3615_v14  ;;  %v3657_v35 = vadd.f32 %v3656_v32, %v3643_v31 }
 0x39f   :  { %3918 = vmatpush.bf16.msrb.mxu0 %v5282_v39  ;;  %v3670_v33 = vpop.f32.mrf.mxu2 }
 0x3a0   :  { %3946 = vmatpush.bf16.msrb.mxu2 %v5730_v41  ;;  %3956 = vmatpush.bf16.msrb.mxu3 %v6066_v43  ;;  %v6095_v24 = vmul.f32 -1.442695, %v3629_v18  ;;  %v3671_v38 = vadd.f32 %v3670_v33, %v3657_v35 }
 0x3a1   :  { %3934 = vmatpush.bf16.msrb.mxu1 %v5450_v52 }
 0x3a2   :  { %6577 = vpow2.f32 %v6095_v24 }
 0x3a3   :  { %3919 = vmatpush.bf16.msrb.mxu0 %v5254_v53  ;;  %v3644_v36 = vpop.f32.mrf.mxu0 }
 0x3a4   :  { %3947 = vmatpush.bf16.msrb.mxu2 %v5702_v57  ;;  %3957 = vmatpush.bf16.msrb.mxu3 %v6038_v58  ;;  %v3645_v39 = vadd.f32 %v3644_v36, %v2412_v26 }
 0x3a5   :  { %3935 = vmatmul.bf16.vlgmr.msrb.gmra.mxu1 %v7028_v63  ;;  %v3603_v63 = vadd.f32 %v3602_v13, %v3589_v17  ;;  %v3630_v6 = vpop.f32.mrf.mxu3 }
 0x3a6   :  { %v3659_v46 = vadd.f32 %v3658_v44, %v3645_v39  ;;  %v2415_v44 = vperm.slane %v7063_v30, 4 }
 0x3a7   :  { %3920 = vmatpush.bf16.msrb.mxu0 %v5226_v5  ;;  %v3617_v61 = vadd.f32 %v3616_v15, %v3603_v63  ;;  %v3672_v45 = vpop.f32.mrf.mxu2 }
 0x3a8   :  { %3948 = vmatpush.bf16.msrb.mxu2 %v5674_v9  ;;  %3958 = vmatpush.bf16.msrb.mxu3 %v6010_v10  ;;  %v6578_v34 = vpop.eup %6577  ;;  %v3673_v52 = vadd.f32 %v3672_v45, %v3659_v46  ;;  %v3712_v9 = vpop.f32.mrf.mxu1 }
 0x3a9   :  { %v3631_v23 = vadd.f32 %v3630_v6, %v3617_v61  ;;  %v7071_v8 = vadd.f32 1.0, %v6578_v34 }
 0x3aa   :  { %3921 = vmatmul.bf16.vlgmr.msrb.gmra.mxu0 %v7031_v21  ;;  %v5897_v21 = vld [vmem:[#allocation4 + $0x558] sm:$0xf] }
 0x3ab   :  { %3949 = vmatmul.bf16.vlgmr.msrb.gmra.mxu2 %v7033_v25  ;;  %v6102_v25 = vmul.f32 -1.442695, %v3631_v23  ;;  %v5898_v37 = vor.u32 %v6515_v60, %v5897_v21  ;;  %v3698_v59 = vpop.f32.mrf.mxu0  ;;  %vm4032_vm4 = vweird.f32 %v7071_v8  ;;  %v4038_v16 = vand.u32 2147483648, %v7071_v8 }
 0x3ac   :  { %3959 = vmatpush.bf16.msrb.mxu3 %v5982_v19  ;;  %v3699_v5 = vadd.f32 %v3698_v59, %v2413_v62  ;;  %v4036_v19 = vand.u32 2147483647, %v7071_v8 }
 0x3ad   :  { %6579 = vpow2.f32 %v6102_v25  ;;  %v3684_v42 = vpop.f32.mrf.mxu3  ;;  %v4039_v61 = vor.u32 1.1754944e-38, %v4038_v16 }
 0x3ae   :  { %v3685_v40 = vadd.f32 %v3684_v42, %v3671_v38  ;;  %6581 = vrcp.f32 %v7071_v8  ;;  %v3713_v18 = vadd.f32 %v3712_v9, %v3699_v5  ;;  %vm4037_vm9 = vcmp.eq.f32.partialorder %v4036_v19, 8.507059e+37 }
 0x3af   :  { %v3726_v11 = vpop.f32.mrf.mxu2 }
 0x3b0   :  { %3960 = vmatpush.bf16.msrb.mxu3 %v5954_v27  ;;  %v6096_v43 = vmul.f32 -1.442695, %v3685_v40  ;;  %v3727_v63 = vadd.f32 %v3726_v11, %v3713_v18  ;;  %v3714_v34 = vpop.f32.mrf.mxu1 }
 0x3b2   :  { %6583 = vpow2.f32 %v6096_v43 }
 0x3b3   :  { %v6580_v41 = vpop.eup %6579  ;;  %v3700_v24 = vpop.f32.mrf.mxu0 }
 0x3b4   :  { %3961 = vmatpush.bf16.msrb.mxu3 %v5926_v54  ;;  %v7075_v47 = vadd.f32 1.0, %v6580_v41  ;;  %v6582_v48 = vpop.eup %6581  ;;  %v3701_v31 = vadd.f32 %v3700_v24, %v2413_v62 }
 0x3b5   :  { %v3686_v49 = vpop.f32.mrf.mxu3  ;;  %v4028_v56 = vmul.f32 %v6582_v48, %v7071_v8  ;;  %vm4033_vm3 = vweird.f32 %v6582_v48 }
 0x3b6   :  { %v3687_v51 = vadd.f32 %v3686_v49, %v3673_v52  ;;  %6585 = vrcp.f32 %v7075_v47  ;;  %vm7090_vm6 = vmor %vm4032_vm4, %vm4033_vm3  ;;  %vm4137_vm11 = vweird.f32 %v7075_v47  ;;  %v4143_v8 = vand.u32 2147483648, %v7075_v47 }
 0x3b7   :  { %v4029_v50 = vsub.f32 1.0, %v4028_v56  ;;  %v3715_v38 = vadd.f32 %v3714_v34, %v3701_v31  ;;  %v4141_v39 = vand.u32 2147483647, %v7075_v47 }
 0x3b8   :  { %3962 = vmatpush.bf16.msrb.mxu3 %v5898_v37  ;;  %v6584_v53 = vpop.eup %6583  ;;  %v6103_v57 = vmul.f32 -1.442695, %v3687_v51  ;;  %v3728_v37 = vpop.f32.mrf.mxu2  ;;  %v4144_v51 = vor.u32 1.1754944e-38, %v4143_v8 }
 0x3b9   :  { %v4014_v58 = vadd.f32 1.0, %v6584_v53  ;;  %v4030_v1 = vmul.f32 %v6582_v48, %v4029_v50  ;;  %v3729_v45 = vadd.f32 %v3728_v37, %v3715_v38  ;;  %vm4142_vm1 = vcmp.eq.f32.partialorder %v4141_v39, 8.507059e+37 }
 0x3ba   :  { %6587 = vpow2.f32 %v6103_v57 }
 0x3bb   :  { %3963 = vmatmul.bf16.vlgmr.msrb.gmra.mxu3 %v7039_v3  ;;  %6589 = vrcp.f32 %v4014_v58  ;;  %v4031_v12 = vadd.f32 %v6582_v48, %v4030_v1  ;;  %v4053_v17 = vand.u32 2147483648, %v4014_v58  ;;  %v4051_v22 = vand.u32 2147483647, %v4014_v58 }
 0x3bc   :  { %v7079_v3 = vpop.eup %6585  ;;  %vm4047_vm7 = vweird.f32 %v4014_v58 }
 0x3bd   :  { %v4133_v2 = vmul.f32 %v7079_v3, %v7075_v47  ;;  %v4035_v26 = vsel %vm7090_vm6, %v6582_v48, %v4031_v12  ;;  %v4054_v6 = vor.u32 1.1754944e-38, %v4053_v17  ;;  %vm4052_vm10 = vcmp.eq.f32.partialorder %v4051_v22, 8.507059e+37 }
 0x3be   :  { %v3740_v15 = vpop.f32.mrf.mxu3  ;;  %v4040_v33 = vsel %vm4037_vm9, %v4039_v61, %v4035_v26  ;;  %vm4138_vm12 = vweird.f32 %v7079_v3  ;;  %v2414_v48 = vperm.slane %v7063_v30, 3 }
 0x3bf   :  { %v4134_v13 = vsub.f32 1.0, %v4133_v2  ;;  %v3741_v23 = vadd.f32 %v3740_v15, %v3727_v63  ;;  %vm7112_vm14 = vmor %vm4137_vm11, %vm4138_vm12 }
 0x3c0   :  { %v6588_v0 = vpop.eup %6587 }
 0x3c1   :  { %v6590_v4 = vpop.eup %6589  ;;  %v7084_v7 = vadd.f32 1.0, %v6588_v0  ;;  %v4135_v27 = vmul.f32 %v7079_v3, %v4134_v13  ;;  %v6097_v42 = vmul.f32 -1.442695, %v3741_v23 }
 0x3c2   :  { %v4043_v10 = vmul.f32 %v6590_v4, %v4014_v58  ;;  %vm4048_vm5 = vweird.f32 %v6590_v4 }
 0x3c3   :  { %6591 = vrcp.f32 %v7084_v7  ;;  %vm4049_vm8 = vmor %vm4047_vm7, %vm4048_vm5  ;;  %v4136_v60 = vadd.f32 %v7079_v3, %v4135_v27  ;;  %v4158_v36 = vand.u32 2147483648, %v7084_v7  ;;  %v4156_v41 = vand.u32 2147483647, %v7084_v7 }
 0x3c4   :  { %v4044_v14 = vsub.f32 1.0, %v4043_v10  ;;  %vm4152_vm15 = vweird.f32 %v7084_v7  ;;  %6593 = vpow2.f32 %v6097_v42 }
 0x3c5   :  { %v4140_v46 = vsel %vm7112_vm14, %v7079_v3, %v4136_v60  ;;  %v4159_v53 = vor.u32 1.1754944e-38, %v4158_v36  ;;  %vm4157_vm2 = vcmp.eq.f32.partialorder %v4156_v41, 8.507059e+37  ;;  %v3768_v3 = vpop.f32.mrf.mxu1 }
 0x3c6   :  { %v4045_v20 = vmul.f32 %v6590_v4, %v4044_v14  ;;  %v3742_v43 = vpop.f32.mrf.mxu3  ;;  %v4145_v57 = vsel %vm4142_vm1, %v4144_v51, %v4140_v46 }
 0x3c7   :  { %v3754_v49 = vpop.f32.mrf.mxu0  ;;  %v3743_v47 = vadd.f32 %v3742_v43, %v3729_v45 }
 0x3c8   :  { %v4046_v28 = vadd.f32 %v6590_v4, %v4045_v20  ;;  %v3755_v59 = vadd.f32 %v3754_v49, %v2414_v48 }
 0x3c9   :  { %v6592_v29 = vpop.eup %6591  ;;  %v6104_v62 = vmul.f32 -1.442695, %v3743_v47 }
 0x3ca   :  { %v4050_v54 = vsel %vm4049_vm8, %v6590_v4, %v4046_v28  ;;  %v4148_v32 = vmul.f32 %v6592_v29, %v7084_v7  ;;  %vm4153_vm13 = vweird.f32 %v6592_v29  ;;  %v6594_v1 = vpop.eup %6593  ;;  %v3769_v2 = vadd.f32 %v3768_v3, %v3755_v59 }
 0x3cb   :  { %v4055_v21 = vsel %vm4052_vm10, %v4054_v6, %v4050_v54  ;;  %vm4154_vm0 = vmor %vm4152_vm15, %vm4153_vm13  ;;  %6595 = vpow2.f32 %v6104_v62  ;;  %v4015_v4 = vadd.f32 1.0, %v6594_v1 }
 0x3cc   :  { %v4237_v25 = vpack.c.bf16 %v4055_v21, %v4040_v33  ;;  %v4149_v35 = vsub.f32 1.0, %v4148_v32 }
 0x3cd   :  { %6597 = vrcp.f32 %v4015_v4  ;;  %v3770_v14 = vpop.f32.mrf.mxu1  ;;  %vm4062_vm4 = vweird.f32 %v4015_v4  ;;  %v4068_v60 = vand.u32 2147483648, %v4015_v4 }
 0x3ce   :  { %4245 = vst [vmem:[%s7203_s11] sm:$0xff] %v4237_v25  ;;  %v4150_v40 = vmul.f32 %v6592_v29, %v4149_v35  ;;  %v3782_v0 = vpop.f32.mrf.mxu2  ;;  %v4066_v25 = vand.u32 2147483647, %v4015_v4 }
 0x3cf   :  { %v3756_v5 = vpop.f32.mrf.mxu0  ;;  %v3783_v7 = vadd.f32 %v3782_v0, %v3769_v2  ;;  %v4069_v41 = vor.u32 1.1754944e-38, %v4068_v60 }
 0x3d0   :  { %v4151_v52 = vadd.f32 %v6592_v29, %v4150_v40  ;;  %v3757_v10 = vadd.f32 %v3756_v5, %v2414_v48  ;;  %vm4067_vm9 = vcmp.eq.f32.partialorder %v4066_v25, 8.507059e+37 }
 0x3d1   :  { %v6596_v12 = vpop.eup %6595 }
 0x3d2   :  { %v4155_v56 = vsel %vm4154_vm0, %v6592_v29, %v4151_v52  ;;  %v3771_v16 = vadd.f32 %v3770_v14, %v3757_v10  ;;  %v7124_v17 = vadd.f32 1.0, %v6596_v12 }
 0x3d3   :  { %v4160_v58 = vsel %vm4157_vm2, %v4159_v53, %v4155_v56  ;;  %v6598_v19 = vpop.eup %6597 }
 0x3d4   :  { %v4241_v50 = vpack.c.bf16 %v4160_v58, %v4145_v57  ;;  %v4058_v55 = vmul.f32 %v6598_v19, %v4015_v4  ;;  %vm4063_vm3 = vweird.f32 %v6598_v19  ;;  %vm4167_vm12 = vweird.f32 %v7124_v17 }
 0x3d5   :  { %vm7131_vm6 = vmor %vm4062_vm4, %vm4063_vm3  ;;  %v4173_v47 = vand.u32 2147483648, %v7124_v17  ;;  %v4171_v58 = vand.u32 2147483647, %v7124_v17 }
 0x3d6   :  { %4249 = vst [vmem:[%s7203_s11 + $0x1c] sm:$0xff] %v4241_v50  ;;  %v3784_v15 = vpop.f32.mrf.mxu2  ;;  %v4059_v27 = vsub.f32 1.0, %v4058_v55 }
 0x3d7   :  { %v3785_v18 = vadd.f32 %v3784_v15, %v3771_v16  ;;  %v4174_v4 = vor.u32 1.1754944e-38, %v4173_v47  ;;  %vm4172_vm1 = vcmp.eq.f32.partialorder %v4171_v58, 8.507059e+37 }
 0x3d8   :  { %v4060_v61 = vmul.f32 %v6598_v19, %v4059_v27 }
 0x3da   :  { %v4061_v32 = vadd.f32 %v6598_v19, %v4060_v61 }
 0x3dc   :  { %v4065_v36 = vsel %vm7131_vm6, %v6598_v19, %v4061_v32 }
 0x3dd   :  { %v4070_v52 = vsel %vm4067_vm9, %v4069_v41, %v4065_v36 }
 0x3de   :  { %v3796_v9 = vpop.f32.mrf.mxu3 }
 0x3df   :  { %v3797_v11 = vadd.f32 %v3796_v9, %v3783_v7 }
 0x3e1   :  { %v6098_v13 = vmul.f32 -1.442695, %v3797_v11 }
 0x3e3   :  { %6599 = vpow2.f32 %v6098_v13  ;;  %v3824_v50 = vpop.f32.mrf.mxu1 }
 0x3e4   :  { %6601 = vrcp.f32 %v7124_v17 }
 0x3e6   :  { %v3798_v20 = vpop.f32.mrf.mxu3 }
 0x3e7   :  { %v3799_v22 = vadd.f32 %v3798_v20, %v3785_v18  ;;  %v3810_v39 = vpop.f32.mrf.mxu0 }
 0x3e8   :  { %v3811_v56 = vadd.f32 %v3810_v39, %v2415_v44 }
 0x3e9   :  { %v6600_v24 = vpop.eup %6599  ;;  %v6105_v63 = vmul.f32 -1.442695, %v3799_v22 }
 0x3ea   :  { %v4016_v26 = vadd.f32 1.0, %v6600_v24  ;;  %v7127_v28 = vpop.eup %6601  ;;  %v3825_v7 = vadd.f32 %v3824_v50, %v3811_v56 }
 0x3eb   :  { %6603 = vpow2.f32 %v6105_v63  ;;  %v4163_v6 = vmul.f32 %v7127_v28, %v7124_v17  ;;  %vm4168_vm11 = vweird.f32 %v7127_v28  ;;  %v3826_v17 = vpop.f32.mrf.mxu1  ;;  %v2416_v63 = vperm.slane %v7063_v30, 5 }
 0x3ec   :  { %6605 = vrcp.f32 %v4016_v26  ;;  %v4083_v34 = vand.u32 2147483648, %v4016_v26  ;;  %v4081_v37 = vand.u32 2147483647, %v4016_v26  ;;  %vm4077_vm7 = vweird.f32 %v4016_v26  ;;  %vm4169_vm14 = vmor %vm4167_vm12, %vm4168_vm11 }
 0x3ed   :  { %v4164_v33 = vsub.f32 1.0, %v4163_v6 }
 0x3ee   :  { %v4084_v43 = vor.u32 1.1754944e-38, %v4083_v34  ;;  %vm4082_vm10 = vcmp.eq.f32.partialorder %v4081_v37, 8.507059e+37  ;;  %v3838_v3 = vpop.f32.mrf.mxu2 }
 0x3ef   :  { %v4165_v38 = vmul.f32 %v7127_v28, %v4164_v33  ;;  %v3812_v10 = vpop.f32.mrf.mxu0  ;;  %v3839_v13 = vadd.f32 %v3838_v3, %v3825_v7 }
 0x3f0   :  { %v3813_v15 = vadd.f32 %v3812_v10, %v2415_v44 }
 0x3f1   :  { %v6604_v29 = vpop.eup %6603  ;;  %v4166_v49 = vadd.f32 %v7127_v28, %v4165_v38 }
 0x3f2   :  { %v6606_v31 = vpop.eup %6605  ;;  %v4023_v23 = vadd.f32 1.0, %v6604_v29  ;;  %v3827_v19 = vadd.f32 %v3826_v17, %v3813_v15 }
 0x3f3   :  { %v4073_v54 = vmul.f32 %v6606_v31, %v4016_v26  ;;  %vm4078_vm5 = vweird.f32 %v6606_v31  ;;  %v4170_v0 = vsel %vm4169_vm14, %v7127_v28, %v4166_v49  ;;  %v2417_v49 = vperm.slane %v7063_v30, 6 }
 0x3f4   :  { %6607 = vrcp.f32 %v4023_v23  ;;  %vm4079_vm8 = vmor %vm4077_vm7, %vm4078_vm5  ;;  %v4188_v57 = vand.u32 2147483648, %v4023_v23  ;;  %v4186_v62 = vand.u32 2147483647, %v4023_v23  ;;  %vm4182_vm15 = vweird.f32 %v4023_v23 }
 0x3f5   :  { %v4074_v21 = vsub.f32 1.0, %v4073_v54  ;;  %v4175_v11 = vsel %vm4172_vm1, %v4174_v4, %v4170_v0 }
 0x3f6   :  { %v4189_v5 = vor.u32 1.1754944e-38, %v4188_v57  ;;  %vm4187_vm2 = vcmp.eq.f32.partialorder %v4186_v62, 8.507059e+37  ;;  %v3840_v18 = vpop.f32.mrf.mxu2 }
 0x3f7   :  { %v4075_v35 = vmul.f32 %v6606_v31, %v4074_v21  ;;  %v3841_v24 = vadd.f32 %v3840_v18, %v3827_v19 }
 0x3f9   :  { %v4076_v42 = vadd.f32 %v6606_v31, %v4075_v35 }
 0x3fa   :  { %v6608_v40 = vpop.eup %6607 }
 0x3fb   :  { %v4080_v45 = vsel %vm4079_vm8, %v6606_v31, %v4076_v42  ;;  %v4178_v46 = vmul.f32 %v6608_v40, %v4023_v23  ;;  %vm4183_vm13 = vweird.f32 %v6608_v40 }
 0x3fc   :  { %v4085_v48 = vsel %vm4082_vm10, %v4084_v43, %v4080_v45  ;;  %vm4184_vm0 = vmor %vm4182_vm15, %vm4183_vm13 }
 0x3fd   :  { %v4238_v51 = vpack.c.bf16 %v4085_v48, %v4070_v52  ;;  %v4179_v53 = vsub.f32 1.0, %v4178_v46 }
 0x3fe   :  { %v3852_v2 = vpop.f32.mrf.mxu3 }
 0x3ff   :  { %4246 = vst [vmem:[%s7203_s11 + $0x8] sm:$0xff] %v4238_v51  ;;  %v4180_v59 = vmul.f32 %v6608_v40, %v4179_v53  ;;  %v3853_v16 = vadd.f32 %v3852_v2, %v3839_v13 }
 0x401   :  { %v4181_v1 = vadd.f32 %v6608_v40, %v4180_v59  ;;  %v6099_v20 = vmul.f32 -1.442695, %v3853_v16 }
 0x403   :  { %v4185_v9 = vsel %vm4184_vm0, %v6608_v40, %v4181_v1  ;;  %6609 = vpow2.f32 %v6099_v20  ;;  %v3880_v29 = vpop.f32.mrf.mxu1 }
 0x404   :  { %v4190_v12 = vsel %vm4187_vm2, %v4189_v5, %v4185_v9 }
 0x405   :  { %v4242_v14 = vpack.c.bf16 %v4190_v12, %v4175_v11 }
 0x406   :  { %v3854_v22 = vpop.f32.mrf.mxu3 }
 0x407   :  { %4250 = vst [vmem:[%s7203_s11 + $0x24] sm:$0xff] %v4242_v14  ;;  %v3866_v55 = vpop.f32.mrf.mxu0  ;;  %v3855_v26 = vadd.f32 %v3854_v22, %v3841_v24 }
 0x408   :  { %v3867_v27 = vadd.f32 %v3866_v55, %v2416_v63 }
 0x409   :  { %v6106_v28 = vmul.f32 -1.442695, %v3855_v26  ;;  %v6610_v6 = vpop.eup %6609 }
 0x40a   :  { %v3881_v31 = vadd.f32 %v3880_v29, %v3867_v27  ;;  %v4017_v23 = vadd.f32 1.0, %v6610_v6 }
 0x40b   :  { %6611 = vpow2.f32 %v6106_v28  ;;  %v3882_v35 = vpop.f32.mrf.mxu1 }
 0x40c   :  { %6613 = vrcp.f32 %v4017_v23  ;;  %vm4092_vm4 = vweird.f32 %v4017_v23  ;;  %v4098_v30 = vand.u32 2147483648, %v4017_v23  ;;  %v4096_v4 = vand.u32 2147483647, %v4017_v23 }
 0x40e   :  { %v3894_v61 = vpop.f32.mrf.mxu2  ;;  %v4099_v16 = vor.u32 1.1754944e-38, %v4098_v30  ;;  %vm4097_vm9 = vcmp.eq.f32.partialorder %v4096_v4, 8.507059e+37 }
 0x40f   :  { %v3868_v54 = vpop.f32.mrf.mxu0  ;;  %v3895_v32 = vadd.f32 %v3894_v61, %v3881_v31 }
 0x410   :  { %v3869_v21 = vadd.f32 %v3868_v54, %v2416_v63 }
 0x411   :  { %v6612_v34 = vpop.eup %6611 }
 0x412   :  { %v3883_v8 = vadd.f32 %v3882_v35, %v3869_v21  ;;  %v7152_v36 = vadd.f32 1.0, %v6612_v34  ;;  %v6614_v42 = vpop.eup %6613 }
 0x413   :  { %v4088_v43 = vmul.f32 %v6614_v42, %v4017_v23  ;;  %vm4093_vm3 = vweird.f32 %v6614_v42 }
 0x414   :  { %vm7163_vm6 = vmor %vm4092_vm4, %vm4093_vm3  ;;  %vm4197_vm12 = vweird.f32 %v7152_v36  ;;  %v4203_v61 = vand.u32 2147483648, %v7152_v36  ;;  %v4201_v23 = vand.u32 2147483647, %v7152_v36 }
 0x415   :  { %v4089_v46 = vsub.f32 1.0, %v4088_v43 }
 0x416   :  { %v3896_v37 = vpop.f32.mrf.mxu2  ;;  %v4204_v35 = vor.u32 1.1754944e-38, %v4203_v61  ;;  %vm4202_vm1 = vcmp.eq.f32.partialorder %v4201_v23, 8.507059e+37 }
 0x417   :  { %v3897_v38 = vadd.f32 %v3896_v37, %v3883_v8  ;;  %v4090_v53 = vmul.f32 %v6614_v42, %v4089_v46 }
 0x419   :  { %v4091_v59 = vadd.f32 %v6614_v42, %v4090_v53 }
 0x41b   :  { %v4095_v11 = vsel %vm7163_vm6, %v6614_v42, %v4091_v59 }
 0x41c   :  { %v4100_v24 = vsel %vm4097_vm9, %v4099_v16, %v4095_v11 }
 0x41e   :  { %v3908_v33 = vpop.f32.mrf.mxu3 }
 0x41f   :  { %v3909_v60 = vadd.f32 %v3908_v33, %v3895_v32 }
 0x421   :  { %v6100_v25 = vmul.f32 -1.442695, %v3909_v60 }
 0x422   :  { %v3936_v0 = vpop.f32.mrf.mxu1 }
 0x423   :  { %6615 = vpow2.f32 %v6100_v25 }
 0x424   :  { %6617 = vrcp.f32 %v7152_v36 }
 0x426   :  { %v3910_v39 = vpop.f32.mrf.mxu3 }
 0x427   :  { %v3911_v40 = vadd.f32 %v3910_v39, %v3897_v38  ;;  %v3922_v48 = vpop.f32.mrf.mxu0 }
 0x428   :  { %v3923_v50 = vadd.f32 %v3922_v48, %v2417_v49 }
 0x429   :  { %v6616_v41 = vpop.eup %6615  ;;  %v6107_v44 = vmul.f32 -1.442695, %v3911_v40 }
 0x42a   :  { %v4018_v45 = vadd.f32 1.0, %v6616_v41  ;;  %v7155_v52 = vpop.eup %6617  ;;  %v3937_v10 = vadd.f32 %v3936_v0, %v3923_v50  ;;  %v3938_v33 = vpop.f32.mrf.mxu1 }
 0x42b   :  { %6619 = vpow2.f32 %v6107_v44  ;;  %v4193_v47 = vmul.f32 %v7155_v52, %v7152_v36  ;;  %vm4198_vm11 = vweird.f32 %v7155_v52 }
 0x42c   :  { %6621 = vrcp.f32 %v4018_v45  ;;  %v4113_v2 = vand.u32 2147483648, %v4018_v45  ;;  %v4111_v7 = vand.u32 2147483647, %v4018_v45  ;;  %vm4107_vm7 = vweird.f32 %v4018_v45  ;;  %vm4199_vm14 = vmor %vm4197_vm12, %vm4198_vm11 }
 0x42d   :  { %v4194_v62 = vsub.f32 1.0, %v4193_v47 }
 0x42e   :  { %v3950_v1 = vpop.f32.mrf.mxu2  ;;  %v4114_v17 = vor.u32 1.1754944e-38, %v4113_v2  ;;  %vm4112_vm10 = vcmp.eq.f32.partialorder %v4111_v7, 8.507059e+37 }
 0x42f   :  { %v4195_v12 = vmul.f32 %v7155_v52, %v4194_v62  ;;  %v3924_v14 = vpop.f32.mrf.mxu0  ;;  %v3951_v18 = vadd.f32 %v3950_v1, %v3937_v10 }
 0x430   :  { %v3925_v63 = vadd.f32 %v3924_v14, %v2417_v49 }
 0x431   :  { %v6620_v51 = vpop.eup %6619  ;;  %v4196_v27 = vadd.f32 %v7155_v52, %v4195_v12 }
 0x432   :  { %v6622_v56 = vpop.eup %6621  ;;  %v7160_v57 = vadd.f32 1.0, %v6620_v51  ;;  %v3939_v60 = vadd.f32 %v3938_v33, %v3925_v63 }
 0x433   :  { %v4103_v58 = vmul.f32 %v6622_v56, %v4018_v45  ;;  %vm4108_vm5 = vweird.f32 %v6622_v56  ;;  %v4200_v34 = vsel %vm4199_vm14, %v7155_v52, %v4196_v27 }
 0x434   :  { %6623 = vrcp.f32 %v7160_v57  ;;  %vm4109_vm8 = vmor %vm4107_vm7, %vm4108_vm5  ;;  %v4218_v6 = vand.u32 2147483648, %v7160_v57  ;;  %v4216_v32 = vand.u32 2147483647, %v7160_v57  ;;  %vm4212_vm15 = vweird.f32 %v7160_v57 }
 0x435   :  { %v4104_v3 = vsub.f32 1.0, %v4103_v58  ;;  %v4205_v42 = vsel %vm4202_vm1, %v4204_v35, %v4200_v34 }
 0x436   :  { %v3952_v21 = vpop.f32.mrf.mxu2  ;;  %v4219_v37 = vor.u32 1.1754944e-38, %v4218_v6  ;;  %vm4217_vm2 = vcmp.eq.f32.partialorder %v4216_v32, 8.507059e+37 }
 0x437   :  { %v4105_v5 = vmul.f32 %v6622_v56, %v4104_v3  ;;  %v3953_v8 = vadd.f32 %v3952_v21, %v3939_v60 }
 0x439   :  { %v4106_v13 = vadd.f32 %v6622_v56, %v4105_v5 }
 0x43a   :  { %v6624_v15 = vpop.eup %6623 }
 0x43b   :  { %v4110_v19 = vsel %vm4109_vm8, %v6622_v56, %v4106_v13  ;;  %v4208_v20 = vmul.f32 %v6624_v15, %v7160_v57  ;;  %vm4213_vm13 = vweird.f32 %v6624_v15 }
 0x43c   :  { %v4115_v55 = vsel %vm4112_vm10, %v4114_v17, %v4110_v19  ;;  %vm4214_vm0 = vmor %vm4212_vm15, %vm4213_vm13 }
 0x43d   :  { %v4239_v28 = vpack.c.bf16 %v4115_v55, %v4100_v24  ;;  %v4209_v29 = vsub.f32 1.0, %v4208_v20 }
 0x43e   :  { %v3964_v22 = vpop.f32.mrf.mxu3 }
 0x43f   :  { %v3965_v26 = vadd.f32 %v3964_v22, %v3951_v18  ;;  %4247 = vst [vmem:[%s7203_s11 + $0x10] sm:$0xff] %v4239_v28  ;;  %v4210_v54 = vmul.f32 %v6624_v15, %v4209_v29 }
 0x441   :  { %v6101_v31 = vmul.f32 -1.442695, %v3965_v26  ;;  %v4211_v25 = vadd.f32 %v6624_v15, %v4210_v54 }
 0x443   :  { %6625 = vpow2.f32 %v6101_v31  ;;  %v4215_v36 = vsel %vm4214_vm0, %v6624_v15, %v4211_v25 }
 0x444   :  { %v4220_v39 = vsel %vm4217_vm2, %v4219_v37, %v4215_v36 }
 0x445   :  { %v4243_v41 = vpack.c.bf16 %v4220_v39, %v4205_v42 }
 0x446   :  { %v3966_v38 = vpop.f32.mrf.mxu3 }
 0x447   :  { %v3967_v40 = vadd.f32 %v3966_v38, %v3953_v8  ;;  %4251 = vst [vmem:[%s7203_s11 + $0x2c] sm:$0xff] %v4243_v41 }
 0x449   :  { %v6626_v43 = vpop.eup %6625  ;;  %v6108_v44 = vmul.f32 -1.442695, %v3967_v40 }
 0x44a   :  { %v4019_v45 = vadd.f32 1.0, %v6626_v43 }
 0x44b   :  { %6627 = vpow2.f32 %v6108_v44 }
 0x44c   :  { %6629 = vrcp.f32 %v4019_v45  ;;  %v4128_v53 = vand.u32 2147483648, %v4019_v45  ;;  %v4126_v56 = vand.u32 2147483647, %v4019_v45  ;;  %vm4122_vm4 = vweird.f32 %v4019_v45 }
 0x44e   :  { %v4129_v50 = vor.u32 1.1754944e-38, %v4128_v53  ;;  %vm4127_vm6 = vcmp.eq.f32.partialorder %v4126_v56, 8.507059e+37 }
 0x451   :  { %v6628_v46 = vpop.eup %6627 }
 0x452   :  { %v6630_v52 = vpop.eup %6629  ;;  %v4026_v48 = vadd.f32 1.0, %v6628_v46 }
 0x453   :  { %v4118_v49 = vmul.f32 %v6630_v52, %v4019_v45  ;;  %vm4123_vm3 = vweird.f32 %v6630_v52 }
 0x454   :  { %6631 = vrcp.f32 %v4026_v48  ;;  %vm4124_vm5 = vmor %vm4122_vm4, %vm4123_vm3  ;;  %v4233_v30 = vand.u32 2147483648, %v4026_v48  ;;  %v4231_v4 = vand.u32 2147483647, %v4026_v48  ;;  %vm4227_vm8 = vweird.f32 %v4026_v48 }
 0x455   :  { %v4119_v51 = vsub.f32 1.0, %v4118_v49 }
 0x456   :  { %v4234_v7 = vor.u32 1.1754944e-38, %v4233_v30  ;;  %vm4232_vm10 = vcmp.eq.f32.partialorder %v4231_v4, 8.507059e+37 }
 0x457   :  { %v4120_v47 = vmul.f32 %v6630_v52, %v4119_v51 }
 0x459   :  { %v4121_v57 = vadd.f32 %v6630_v52, %v4120_v47 }
 0x45a   :  { %v6632_v58 = vpop.eup %6631 }
 0x45b   :  { %v4125_v59 = vsel %vm4124_vm5, %v6630_v52, %v4121_v57  ;;  %v4223_v62 = vmul.f32 %v6632_v58, %v4026_v48  ;;  %vm4228_vm7 = vweird.f32 %v6632_v58 }
 0x45c   :  { %v4130_v3 = vsel %vm4127_vm6, %v4129_v50, %v4125_v59  ;;  %vm4229_vm9 = vmor %vm4227_vm8, %vm4228_vm7 }
 0x45d   :  { %v4240_v0 = vpack.c.bf16 %v4130_v3, %v4130_v3  ;;  %v4224_v1 = vsub.f32 1.0, %v4223_v62 }
 0x45f   :  { %4248 = vst [vmem:[%s7203_s11 + $0x18] sm:$0xf] %v4240_v0  ;;  %v4225_v2 = vmul.f32 %v6632_v58, %v4224_v1 }
 0x461   :  { %v4226_v5 = vadd.f32 %v6632_v58, %v4225_v2 }
 0x463   :  { %v4230_v9 = vsel %vm4229_vm9, %v6632_v58, %v4226_v5 }
 0x464   :  { %v4235_v10 = vsel %vm4232_vm10, %v4234_v7, %v4230_v9 }
 0x465   :  { %v4244_v11 = vpack.c.bf16 %v4235_v10, %v4235_v10 }
 0x467   :  { %4252 = vst [vmem:[%s7203_s11 + $0x34] sm:$0xf] %v4244_v11 }
 0x468   :  { %4261 = vsyncpa [#allocation3], 1 }
 0x469   :  { %4262 = vsyncpa [#allocation5], 1 }

</bundles_post_ra>
